<compile_context>
chip_gen: v6e
topology: v6e:2x2x1
jax: 0.10.0
libtpu: 0.0.40
codegen_flags: <defaults>
</compile_context>

<pallas_src>
import numpy as np

import jax
import jax.numpy as jnp
from jax import lax
from jax.experimental import pallas as pl
from jax.experimental.pallas import tpu as pltpu


# Fixed geometry for this script (DownSample2 input: 64-ch, 16x16 spatial).
_H = 16
_W = 16
_HO = _H // 2                      # 8
_WO = _W // 2                      # 8
_P_OUT = _HO * _WO                 # 64 output spatial positions

_PARAM_ORDER = (
    "w1", "sc1", "bi1",
    "w2", "sc2", "bi2",
    "w3", "sc3", "bi3",
    "wra", "scra", "bira",
    "wrb", "scrb", "birb",
    "w4", "sc4", "bi4",
    "w5a", "w5b", "sc5", "bi5",
)


# ----------------------------------------------------------------------------
# In-kernel helpers
# ----------------------------------------------------------------------------
def _mish(y):
    """Mish(y) = y * tanh(softplus(y)) with a single exp + approx reciprocal.

    tanh(log(1 + t)) = ((1+t)^2 - 1) / ((1+t)^2 + 1),  t = exp(y).
    Clamp y at 20 (PyTorch softplus threshold); for y > 20 the ratio is 1.0.
    """
    t = jnp.exp(jnp.minimum(y, 20.0))
    u = (1.0 + t) * (1.0 + t)
    return y * (u - 1.0) * pl.reciprocal(u + 1.0, approx=True)


def _cbm_1x1(x_bf16, w_bf16, scale, bias):
    """1x1 conv (plain matmul) + folded BN + Mish.  f32 accumulate/epilogue."""
    y = jnp.dot(x_bf16, w_bf16, preferred_element_type=jnp.float32)
    return _mish(y * scale + bias)


# ----------------------------------------------------------------------------
# The fused DownSample2 kernel (one batch image per grid step)
# ----------------------------------------------------------------------------
def _downsample2_kernel(
    x_ref,                               # (1, 64, 256) bf16 : space-to-depth input
    w1_ref, sc1_ref, bi1_ref,            # (256, 512), (1, 128), (1, 128)
    w2_ref, sc2_ref, bi2_ref,            # (128, 64), (1, 64), (1, 64)
    w3_ref, sc3_ref, bi3_ref,            # (128, 64), (1, 64), (1, 64)
    wra_ref, scra_ref, bira_ref,         # (2, 64, 64), (2, 1, 64), (2, 1, 64)
    wrb_ref, scrb_ref, birb_ref,         # (2, 64, 576), (2, 1, 64), (2, 1, 64)
    w4_ref, sc4_ref, bi4_ref,            # (64, 64), (1, 64), (1, 64)
    w5a_ref, w5b_ref, sc5_ref, bi5_ref,  # (64, 128), (64, 128), (1, 128), (1, 128)
    o_ref,                               # (1, 64, 128) f32
):
    # ---- static border masks, computed ONCE (hoisted; no per-tap broadcasts) ----
    row = lax.broadcasted_iota(jnp.int32, (_P_OUT, 1), 0)     # flat out position
    col = jnp.bitwise_and(row, _WO - 1)                       # out col (ow)
    top_ok = row >= _WO                  # oh >= 1  (valid for dh = -1)
    bot_ok = row < (_P_OUT - _WO)        # oh <= 6  (valid for dh = +1)
    lef_ok = col >= 1                    # ow >= 1  (valid for dw = -1)
    rig_ok = col <= (_WO - 2)            # ow <= 6  (valid for dw = +1)

    def shift_add(z_block, shift, mask):
        zt = pltpu.roll(z_block, shift=shift % _P_OUT, axis=0)   # XLU sublane roll
        return jnp.where(mask, zt, 0.0) if mask is not None else zt

    x = x_ref[0]                         # (64, 256) bf16

    # ---- conv1: 3x3, stride 2, 64 -> 128 : ONE GEMM + 3 shift-adds ----
    z = jnp.dot(x, w1_ref[...], preferred_element_type=jnp.float32)   # (64, 512)
    y1 = (z[:, 0:128]                                     # unshifted taps
          + shift_add(z[:, 128:256], _WO, top_ok)         # taps with kh == 0
          + shift_add(z[:, 256:384], 1, lef_ok)           # taps with kw == 0
          + shift_add(z[:, 384:512], _WO + 1, top_ok & lef_ok))  # tap (0,0)
    x1 = _mish(y1 * sc1_ref[...] + bi1_ref[...])          # (64, 128) f32
    x1b = x1.astype(jnp.bfloat16)

    # ---- conv2 / conv3: 1x1, 128 -> 64 ----
    x2 = _cbm_1x1(x1b, w2_ref[...], sc2_ref[...], bi2_ref[...])        # (64, 64)
    x3 = _cbm_1x1(x1b, w3_ref[...], sc3_ref[...], bi3_ref[...])        # (64, 64)

    # ---- ResBlock(ch=64, nblocks=2): (1x1 mish, 3x3 mish) + fused skip add ----
    r = x3
    for i in range(2):
        h = _cbm_1x1(r.astype(jnp.bfloat16), wra_ref[i], scra_ref[i], bira_ref[i])
        # 3x3 stride-1 conv: one GEMM over all 9 taps, then shift-add per tap.
        zr = jnp.dot(h.astype(jnp.bfloat16), wrb_ref[i],
                     preferred_element_type=jnp.float32)                # (64, 576)
        acc = zr[:, 4 * 64:5 * 64]                      # center tap (dh=0, dw=0)
        for t in range(9):
            if t == 4:
                continue
            dh, dw = t // 3 - 1, t % 3 - 1
            mask = None
            mh = top_ok if dh < 0 else (bot_ok if dh > 0 else None)
            mw = lef_ok if dw < 0 else (rig_ok if dw > 0 else None)
            for m in (mh, mw):
                if m is not None:
                    mask = m if mask is None else (mask & m)
            acc = acc + shift_add(zr[:, t * 64:(t + 1) * 64],
                                  -(dh * _WO + dw), mask)
        h2 = _mish(acc * scrb_ref[i] + birb_ref[i])
        r = r + h2                                                      # residual

    # ---- conv4: 1x1, 64 -> 64 ----
    x4 = _cbm_1x1(r.astype(jnp.bfloat16), w4_ref[...], sc4_ref[...], bi4_ref[...])

    # ---- conv5 on concat([x4, x2], channel): split GEMM, no concat op ----
    y5 = (jnp.dot(x4.astype(jnp.bfloat16), w5a_ref[...], preferred_element_type=jnp.float32)
          + jnp.dot(x2.astype(jnp.bfloat16), w5b_ref[...], preferred_element_type=jnp.float32))
    x5 = _mish(y5 * sc5_ref[...] + bi5_ref[...])                        # (64, 128)

    o_ref[0] = x5.astype(o_ref.dtype)


# ----------------------------------------------------------------------------
# Wrapper: NCHW in / NCHW out, one pallas_call for the whole block
# ----------------------------------------------------------------------------
def _full_block_spec(a):
    nd = a.ndim
    return pl.BlockSpec(a.shape, lambda b: (0,) * nd)


@jax.jit
def downsample2_forward(x_nchw, params):
    n = x_nchw.shape[0]
    # Layout plumbing only: NCHW -> NHWC -> 2x2 space-to-depth, so the strided
    # 3x3 conv becomes a dense GEMM.  s2d[:, o, p*64+c] = x[:, 2a+ph, 2b+pw, c]
    # with o = a*8+b, p = ph*2+pw.  bf16 for the MXU.
    x = jnp.transpose(x_nchw, (0, 2, 3, 1))
    x = x.reshape(n, _HO, 2, _WO, 2, 64)
    x = jnp.transpose(x, (0, 1, 3, 2, 4, 5)).reshape(n, _P_OUT, 4 * 64)
    x = x.astype(jnp.bfloat16)

    weights = [params[k] for k in _PARAM_ORDER]
    in_specs = [pl.BlockSpec((1, _P_OUT, 4 * 64), lambda b: (b, 0, 0))]
    in_specs += [_full_block_spec(a) for a in weights]

    out = pl.pallas_call(
        _downsample2_kernel,
        out_shape=jax.ShapeDtypeStruct((n, _P_OUT, 128), jnp.float32),
        grid_spec=pltpu.PrefetchScalarGridSpec(
            num_scalar_prefetch=0,
            grid=(n,),
            in_specs=in_specs,
            out_specs=pl.BlockSpec((1, _P_OUT, 128), lambda b: (b, 0, 0)),
        ),
        compiler_params=pltpu.CompilerParams(
            dimension_semantics=("parallel",)),   # megacore-shard the batch
    )(x, *weights)

    out = out.reshape(n, _HO, _WO, 128)
    return jnp.transpose(out, (0, 3, 1, 2))       # back to NCHW


# ----------------------------------------------------------------------------
# Parameter construction (synthetic, mimics the module's __init__ shapes)
# ----------------------------------------------------------------------------
def make_downsample2_params(key):
    ks = jax.random.split(key, 9)

    def conv_w(k_, cin, cout, ksz):
        w_ = jax.random.normal(k_, (cout, cin, ksz, ksz), jnp.float32)
        return w_ * (1.0 / np.sqrt(float(cin * ksz * ksz)))

    def bn(cout):
        # BatchNorm2d at PyTorch defaults (inference): gamma=1, beta=0, mean=0, var=1.
        scale = jnp.ones((cout,), jnp.float32) / jnp.sqrt(jnp.ones((cout,)) + 1e-5)
        bias = jnp.zeros((cout,), jnp.float32)
        return scale.reshape(1, cout), bias.reshape(1, cout)

    raw = {}
    raw["w1"] = conv_w(ks[0], 64, 128, 3); raw["sc1"], raw["bi1"] = bn(128)
    raw["w2"] = conv_w(ks[1], 128, 64, 1); raw["sc2"], raw["bi2"] = bn(64)
    raw["w3"] = conv_w(ks[2], 128, 64, 1); raw["sc3"], raw["bi3"] = bn(64)
    raw["r0a"] = conv_w(ks[3], 64, 64, 1); raw["sr0a"], raw["br0a"] = bn(64)
    raw["r0b"] = conv_w(ks[4], 64, 64, 3); raw["sr0b"], raw["br0b"] = bn(64)
    raw["r1a"] = conv_w(ks[5], 64, 64, 1); raw["sr1a"], raw["br1a"] = bn(64)
    raw["r1b"] = conv_w(ks[6], 64, 64, 3); raw["sr1b"], raw["br1b"] = bn(64)
    raw["w4"] = conv_w(ks[7], 64, 64, 1); raw["sc4"], raw["bi4"] = bn(64)
    raw["w5"] = conv_w(ks[8], 128, 128, 1); raw["sc5"], raw["bi5"] = bn(128)

    def w1x1(w_):   # (Cout, Cin, 1, 1) -> (Cin, Cout) bf16
        return jnp.transpose(w_[:, :, 0, 0], (1, 0)).astype(jnp.bfloat16)

    def pack_conv1(w_):
        """(128, 64, 3, 3) -> (256, 512) operating on the space-to-depth input.

        Rows = parity plane (ph*2+pw)*64 + cin.  4 column blocks of 128:
        block 0 = unshifted taps, 1 = +1 output-h shift (kh==0),
        2 = +1 output-w shift (kw==0), 3 = both (tap (0,0)).
        """
        w = np.asarray(w_, np.float32)

        def tap(kh, kw):  # (64 in, 128 out)
            return w[:, :, kh, kw].T

        big = np.zeros((256, 512), np.float32)
        big[0:64,     0:128] = tap(1, 1)     # plane (0,0)
        big[64:128,   0:128] = tap(1, 2)     # plane (0,1)
        big[128:192,  0:128] = tap(2, 1)     # plane (1,0)
        big[192:256,  0:128] = tap(2, 2)     # plane (1,1)
        big[128:192, 128:256] = tap(0, 1)    # kh==0 taps
        big[192:256, 128:256] = tap(0, 2)
        big[64:128,  256:384] = tap(1, 0)    # kw==0 taps
        big[192:256, 256:384] = tap(2, 0)
        big[192:256, 384:512] = tap(0, 0)    # corner tap
        return jnp.asarray(big, jnp.bfloat16)

    def pack_3x3(w_):
        """(64, 64, 3, 3) -> (64, 576): tap t = kh*3+kw occupies cols t*64:(t+1)*64."""
        w = np.asarray(w_, np.float32)
        big = np.zeros((64, 9 * 64), np.float32)
        for kh in range(3):
            for kw in range(3):
                t = kh * 3 + kw
                big[:, t * 64:(t + 1) * 64] = w[:, :, kh, kw].T
        return jnp.asarray(big, jnp.bfloat16)

    w5_2d = w1x1(raw["w5"])   # rows 0..63 -> conv4 channels, 64..127 -> conv2 channels

    kp = {
        "w1": pack_conv1(raw["w1"]), "sc1": raw["sc1"], "bi1": raw["bi1"],
        "w2": w1x1(raw["w2"]), "sc2": raw["sc2"], "bi2": raw["bi2"],
        "w3": w1x1(raw["w3"]), "sc3": raw["sc3"], "bi3": raw["bi3"],
        "wra": jnp.stack([w1x1(raw["r0a"]), w1x1(raw["r1a"])]),
        "scra": jnp.stack([raw["sr0a"], raw["sr1a"]]),
        "bira": jnp.stack([raw["br0a"], raw["br1a"]]),
        "wrb": jnp.stack([pack_3x3(raw["r0b"]), pack_3x3(raw["r1b"])]),
        "scrb": jnp.stack([raw["sr0b"], raw["sr1b"]]),
        "birb": jnp.stack([raw["br0b"], raw["br1b"]]),
        "w4": w1x1(raw["w4"]), "sc4": raw["sc4"], "bi4": raw["bi4"],
        "w5a": w5_2d[:64, :], "w5b": w5_2d[64:, :],
        "sc5": raw["sc5"], "bi5": raw["bi5"],
    }
    return kp, raw


# ----------------------------------------------------------------------------
# Pure-JAX reference (lax.conv based) for validation
# ----------------------------------------------------------------------------
def _conv_bn_mish_ref(x, w_oihw, scale, bias, stride):
    k = w_oihw.shape[-1]
    pad = (k - 1) // 2
    w_hwio = jnp.transpose(w_oihw, (2, 3, 1, 0)).astype(jnp.bfloat16)
    y = jax.lax.conv_general_dilated(
        x.astype(jnp.bfloat16), w_hwio,
        window_strides=(stride, stride),
        padding=[(pad, pad), (pad, pad)],
        dimension_numbers=("NHWC", "HWIO", "NHWC"),
        preferred_element_type=jnp.float32)
    y = y * scale.reshape(1, 1, 1, -1) + bias.reshape(1, 1, 1, -1)
    sp = jnp.where(y > 20.0, y, jnp.log1p(jnp.exp(jnp.minimum(y, 20.0))))
    return y * jnp.tanh(sp)


def downsample2_reference(x_nchw, raw):
    x = jnp.transpose(x_nchw, (0, 2, 3, 1))
    x1 = _conv_bn_mish_ref(x, raw["w1"], raw["sc1"], raw["bi1"], 2)
    x2 = _conv_bn_mish_ref(x1, raw["w2"], raw["sc2"], raw["bi2"], 1)
    x3 = _conv_bn_mish_ref(x1, raw["w3"], raw["sc3"], raw["bi3"], 1)
    r = x3
    for i in range(2):
        h = _conv_bn_mish_ref(r, raw[f"r{i}a"], raw[f"sr{i}a"], raw[f"br{i}a"], 1)
        h = _conv_bn_mish_ref(h, raw[f"r{i}b"], raw[f"sr{i}b"], raw[f"br{i}b"], 1)
        r = r + h
    x4 = _conv_bn_mish_ref(r, raw["w4"], raw["sc4"], raw["bi4"], 1)
    x4 = jnp.concatenate([x4, x2], axis=-1)
    x5 = _conv_bn_mish_ref(x4, raw["w5"], raw["sc5"], raw["bi5"], 1)
    return jnp.transpose(x5, (0, 3, 1, 2))


if __name__ == "__main__":
    key = jax.random.PRNGKey(0)
    k_in, k_par = jax.random.split(key)

    # DownSample2 takes a 64-channel feature map (NCHW).
    x = jax.random.normal(k_in, (2, 64, _H, _W), jnp.float32)
    kparams, raw = make_downsample2_params(k_par)

    out = downsample2_forward(x, kparams)
    out = jax.block_until_ready(out)

    assert out.shape == (2, 128, _HO, _WO), out.shape
    assert bool(jnp.all(jnp.isfinite(out)))

    # Structural correctness check against a plain-JAX conv reference
    # (loose tolerance absorbs bf16 MXU + approx-reciprocal differences).
    ref = downsample2_reference(x, raw)
    err = float(jnp.max(jnp.abs(out - ref)))
    assert err < 0.2, f"max abs err vs reference: {err}"

    print("KERNEL_OK")
</pallas_src>

<mosaic_0001>
module attributes {stable_mosaic.version = 11 : i64} {
  func.func @_downsample2_kernel(%arg0: i32, %arg1: memref<1x64x256xbf16, #tpu.memory_space<vmem>>, %arg2: memref<256x512xbf16, #tpu.memory_space<vmem>>, %arg3: memref<1x128xf32, #tpu.memory_space<vmem>>, %arg4: memref<1x128xf32, #tpu.memory_space<vmem>>, %arg5: memref<128x64xbf16, #tpu.memory_space<vmem>>, %arg6: memref<1x64xf32, #tpu.memory_space<vmem>>, %arg7: memref<1x64xf32, #tpu.memory_space<vmem>>, %arg8: memref<128x64xbf16, #tpu.memory_space<vmem>>, %arg9: memref<1x64xf32, #tpu.memory_space<vmem>>, %arg10: memref<1x64xf32, #tpu.memory_space<vmem>>, %arg11: memref<2x64x64xbf16, #tpu.memory_space<vmem>>, %arg12: memref<2x1x64xf32, #tpu.memory_space<vmem>>, %arg13: memref<2x1x64xf32, #tpu.memory_space<vmem>>, %arg14: memref<2x64x576xbf16, #tpu.memory_space<vmem>>, %arg15: memref<2x1x64xf32, #tpu.memory_space<vmem>>, %arg16: memref<2x1x64xf32, #tpu.memory_space<vmem>>, %arg17: memref<64x64xbf16, #tpu.memory_space<vmem>>, %arg18: memref<1x64xf32, #tpu.memory_space<vmem>>, %arg19: memref<1x64xf32, #tpu.memory_space<vmem>>, %arg20: memref<64x128xbf16, #tpu.memory_space<vmem>>, %arg21: memref<64x128xbf16, #tpu.memory_space<vmem>>, %arg22: memref<1x128xf32, #tpu.memory_space<vmem>>, %arg23: memref<1x128xf32, #tpu.memory_space<vmem>>, %arg24: memref<1x64x128xf32, #tpu.memory_space<vmem>>) attributes {dimension_semantics = [#tpu.dimension_semantics<parallel>], iteration_bounds = array<i64: 2>, scalar_prefetch = 0 : i64, scratch_operands = 0 : i64, tpu.core_type = #tpu.core_type<tc>, window_params = [{transform_indices = @transform_0, window_bounds = array<i64: 1, 64, 256>}, {pipeline_mode = #tpu.pipeline_mode<synchronous>, transform_indices = @transform_1, window_bounds = array<i64: 256, 512>}, {pipeline_mode = #tpu.pipeline_mode<synchronous>, transform_indices = @transform_2, window_bounds = array<i64: 1, 128>}, {pipeline_mode = #tpu.pipeline_mode<synchronous>, transform_indices = @transform_3, window_bounds = array<i64: 1, 128>}, {pipeline_mode = #tpu.pipeline_mode<synchronous>, transform_indices = @transform_4, window_bounds = array<i64: 128, 64>}, {pipeline_mode = #tpu.pipeline_mode<synchronous>, transform_indices = @transform_5, window_bounds = array<i64: 1, 64>}, {pipeline_mode = #tpu.pipeline_mode<synchronous>, transform_indices = @transform_6, window_bounds = array<i64: 1, 64>}, {pipeline_mode = #tpu.pipeline_mode<synchronous>, transform_indices = @transform_7, window_bounds = array<i64: 128, 64>}, {pipeline_mode = #tpu.pipeline_mode<synchronous>, transform_indices = @transform_8, window_bounds = array<i64: 1, 64>}, {pipeline_mode = #tpu.pipeline_mode<synchronous>, transform_indices = @transform_9, window_bounds = array<i64: 1, 64>}, {pipeline_mode = #tpu.pipeline_mode<synchronous>, transform_indices = @transform_10, window_bounds = array<i64: 2, 64, 64>}, {pipeline_mode = #tpu.pipeline_mode<synchronous>, transform_indices = @transform_11, window_bounds = array<i64: 2, 1, 64>}, {pipeline_mode = #tpu.pipeline_mode<synchronous>, transform_indices = @transform_12, window_bounds = array<i64: 2, 1, 64>}, {pipeline_mode = #tpu.pipeline_mode<synchronous>, transform_indices = @transform_13, window_bounds = array<i64: 2, 64, 576>}, {pipeline_mode = #tpu.pipeline_mode<synchronous>, transform_indices = @transform_14, window_bounds = array<i64: 2, 1, 64>}, {pipeline_mode = #tpu.pipeline_mode<synchronous>, transform_indices = @transform_15, window_bounds = array<i64: 2, 1, 64>}, {pipeline_mode = #tpu.pipeline_mode<synchronous>, transform_indices = @transform_16, window_bounds = array<i64: 64, 64>}, {pipeline_mode = #tpu.pipeline_mode<synchronous>, transform_indices = @transform_17, window_bounds = array<i64: 1, 64>}, {pipeline_mode = #tpu.pipeline_mode<synchronous>, transform_indices = @transform_18, window_bounds = array<i64: 1, 64>}, {pipeline_mode = #tpu.pipeline_mode<synchronous>, transform_indices = @transform_19, window_bounds = array<i64: 64, 128>}, {pipeline_mode = #tpu.pipeline_mode<synchronous>, transform_indices = @transform_20, window_bounds = array<i64: 64, 128>}, {pipeline_mode = #tpu.pipeline_mode<synchronous>, transform_indices = @transform_21, window_bounds = array<i64: 1, 128>}, {pipeline_mode = #tpu.pipeline_mode<synchronous>, transform_indices = @transform_22, window_bounds = array<i64: 1, 128>}, {transform_indices = @transform_23, window_bounds = array<i64: 1, 64, 128>}]} {
    %0 = tpu.iota {dimensions = array<i32: 0>} : vector<64x1xi32>
    %c7_i32 = arith.constant 7 : i32
    %1 = vector.broadcast %c7_i32 : i32 to vector<64x1xi32>
    %2 = arith.andi %0, %1 : vector<64x1xi32>
    %c8_i32 = arith.constant 8 : i32
    %3 = vector.broadcast %c8_i32 : i32 to vector<64x1xi32>
    %4 = arith.cmpi sge, %0, %3 : vector<64x1xi32>
    %c56_i32 = arith.constant 56 : i32
    %5 = vector.broadcast %c56_i32 : i32 to vector<64x1xi32>
    %6 = arith.cmpi slt, %0, %5 : vector<64x1xi32>
    %c1_i32 = arith.constant 1 : i32
    %7 = vector.broadcast %c1_i32 : i32 to vector<64x1xi32>
    %8 = arith.cmpi sge, %2, %7 : vector<64x1xi32>
    %c6_i32 = arith.constant 6 : i32
    %9 = vector.broadcast %c6_i32 : i32 to vector<64x1xi32>
    %10 = arith.cmpi sle, %2, %9 : vector<64x1xi32>
    %c0 = arith.constant 0 : index
    %c0_0 = arith.constant 0 : index
    %c0_1 = arith.constant 0 : index
    %11 = vector.load %arg1[%c0, %c0_0, %c0_1] : memref<1x64x256xbf16, #tpu.memory_space<vmem>>, vector<1x64x256xbf16>
    %12 = vector.shape_cast %11 : vector<1x64x256xbf16> to vector<64x256xbf16>
    %c0_2 = arith.constant 0 : index
    %c0_3 = arith.constant 0 : index
    %13 = vector.load %arg2[%c0_2, %c0_3] : memref<256x512xbf16, #tpu.memory_space<vmem>>, vector<256x512xbf16>
    %cst = arith.constant dense<0.000000e+00> : vector<64x512xf32>
    %14 = tpu.matmul %12, %13, %cst {dimension_numbers = #tpu.dot_dimension_numbers<[1], [0], [0], [1], [0, 0, 1, 1], [], []>} : vector<64x256xbf16>, vector<256x512xbf16>, vector<64x512xf32> -> vector<64x512xf32>
    %15 = vector.extract_strided_slice %14 {offsets = [0, 0], sizes = [64, 128], strides = [1, 1]} : vector<64x512xf32> to vector<64x128xf32>
    %16 = vector.extract_strided_slice %14 {offsets = [0, 128], sizes = [64, 128], strides = [1, 1]} : vector<64x512xf32> to vector<64x128xf32>
    %c8_i32_4 = arith.constant 8 : i32
    %17 = tpu.dynamic_rotate %16 by %c8_i32_4 dim 0 : vector<64x128xf32>, i32 -> vector<64x128xf32>
    %cst_5 = arith.constant 0.000000e+00 : f32
    %18 = vector.shape_cast %4 : vector<64x1xi1> to vector<64x1xi1>
    %19 = vector.broadcast %18 : vector<64x1xi1> to vector<64x128xi1>
    %20 = vector.broadcast %cst_5 : f32 to vector<64x128xf32>
    %21 = arith.select %19, %17, %20 : vector<64x128xi1>, vector<64x128xf32>
    %22 = arith.addf %15, %21 : vector<64x128xf32>
    %23 = vector.extract_strided_slice %14 {offsets = [0, 256], sizes = [64, 128], strides = [1, 1]} : vector<64x512xf32> to vector<64x128xf32>
    %c1_i32_6 = arith.constant 1 : i32
    %24 = tpu.dynamic_rotate %23 by %c1_i32_6 dim 0 : vector<64x128xf32>, i32 -> vector<64x128xf32>
    %cst_7 = arith.constant 0.000000e+00 : f32
    %25 = vector.shape_cast %8 : vector<64x1xi1> to vector<64x1xi1>
    %26 = vector.broadcast %25 : vector<64x1xi1> to vector<64x128xi1>
    %27 = vector.broadcast %cst_7 : f32 to vector<64x128xf32>
    %28 = arith.select %26, %24, %27 : vector<64x128xi1>, vector<64x128xf32>
    %29 = arith.addf %22, %28 : vector<64x128xf32>
    %30 = vector.extract_strided_slice %14 {offsets = [0, 384], sizes = [64, 128], strides = [1, 1]} : vector<64x512xf32> to vector<64x128xf32>
    %31 = arith.andi %4, %8 : vector<64x1xi1>
    %c9_i32 = arith.constant 9 : i32
    %32 = tpu.dynamic_rotate %30 by %c9_i32 dim 0 : vector<64x128xf32>, i32 -> vector<64x128xf32>
    %cst_8 = arith.constant 0.000000e+00 : f32
    %33 = vector.shape_cast %31 : vector<64x1xi1> to vector<64x1xi1>
    %34 = vector.broadcast %33 : vector<64x1xi1> to vector<64x128xi1>
    %35 = vector.broadcast %cst_8 : f32 to vector<64x128xf32>
    %36 = arith.select %34, %32, %35 : vector<64x128xi1>, vector<64x128xf32>
    %37 = arith.addf %29, %36 : vector<64x128xf32>
    %c0_9 = arith.constant 0 : index
    %c0_10 = arith.constant 0 : index
    %38 = vector.load %arg3[%c0_9, %c0_10] : memref<1x128xf32, #tpu.memory_space<vmem>>, vector<1x128xf32>
    %39 = vector.broadcast %38 : vector<1x128xf32> to vector<64x128xf32>
    %40 = arith.mulf %37, %39 : vector<64x128xf32>
    %c0_11 = arith.constant 0 : index
    %c0_12 = arith.constant 0 : index
    %41 = vector.load %arg4[%c0_11, %c0_12] : memref<1x128xf32, #tpu.memory_space<vmem>>, vector<1x128xf32>
    %42 = vector.broadcast %41 : vector<1x128xf32> to vector<64x128xf32>
    %43 = arith.addf %40, %42 : vector<64x128xf32>
    %cst_13 = arith.constant 2.000000e+01 : f32
    %44 = vector.broadcast %cst_13 : f32 to vector<64x128xf32>
    %45 = arith.minimumf %43, %44 : vector<64x128xf32>
    %46 = math.exp %45 : vector<64x128xf32>
    %cst_14 = arith.constant 1.000000e+00 : f32
    %47 = vector.broadcast %cst_14 : f32 to vector<64x128xf32>
    %48 = arith.addf %47, %46 : vector<64x128xf32>
    %cst_15 = arith.constant 1.000000e+00 : f32
    %49 = vector.broadcast %cst_15 : f32 to vector<64x128xf32>
    %50 = arith.addf %49, %46 : vector<64x128xf32>
    %51 = arith.mulf %48, %50 : vector<64x128xf32>
    %cst_16 = arith.constant 1.000000e+00 : f32
    %52 = vector.broadcast %cst_16 : f32 to vector<64x128xf32>
    %53 = arith.subf %51, %52 : vector<64x128xf32>
    %54 = arith.mulf %43, %53 : vector<64x128xf32>
    %cst_17 = arith.constant 1.000000e+00 : f32
    %55 = vector.broadcast %cst_17 : f32 to vector<64x128xf32>
    %56 = arith.addf %51, %55 : vector<64x128xf32>
    %57 = tpu.reciprocal %56 {approx = true} : vector<64x128xf32> -> vector<64x128xf32>
    %58 = arith.mulf %54, %57 : vector<64x128xf32>
    %59 = arith.truncf %58 : vector<64x128xf32> to vector<64x128xbf16>
    %c0_18 = arith.constant 0 : index
    %c0_19 = arith.constant 0 : index
    %60 = vector.load %arg5[%c0_18, %c0_19] : memref<128x64xbf16, #tpu.memory_space<vmem>>, vector<128x64xbf16>
    %c0_20 = arith.constant 0 : index
    %c0_21 = arith.constant 0 : index
    %61 = vector.load %arg6[%c0_20, %c0_21] : memref<1x64xf32, #tpu.memory_space<vmem>>, vector<1x64xf32>
    %c0_22 = arith.constant 0 : index
    %c0_23 = arith.constant 0 : index
    %62 = vector.load %arg7[%c0_22, %c0_23] : memref<1x64xf32, #tpu.memory_space<vmem>>, vector<1x64xf32>
    %cst_24 = arith.constant dense<0.000000e+00> : vector<64x64xf32>
    %63 = tpu.matmul %59, %60, %cst_24 {dimension_numbers = #tpu.dot_dimension_numbers<[1], [0], [0], [1], [0, 0, 1, 1], [], []>} : vector<64x128xbf16>, vector<128x64xbf16>, vector<64x64xf32> -> vector<64x64xf32>
    %64 = vector.broadcast %61 : vector<1x64xf32> to vector<64x64xf32>
    %65 = arith.mulf %63, %64 : vector<64x64xf32>
    %66 = vector.broadcast %62 : vector<1x64xf32> to vector<64x64xf32>
    %67 = arith.addf %65, %66 : vector<64x64xf32>
    %cst_25 = arith.constant 2.000000e+01 : f32
    %68 = vector.broadcast %cst_25 : f32 to vector<64x64xf32>
    %69 = arith.minimumf %67, %68 : vector<64x64xf32>
    %70 = math.exp %69 : vector<64x64xf32>
    %cst_26 = arith.constant 1.000000e+00 : f32
    %71 = vector.broadcast %cst_26 : f32 to vector<64x64xf32>
    %72 = arith.addf %71, %70 : vector<64x64xf32>
    %cst_27 = arith.constant 1.000000e+00 : f32
    %73 = vector.broadcast %cst_27 : f32 to vector<64x64xf32>
    %74 = arith.addf %73, %70 : vector<64x64xf32>
    %75 = arith.mulf %72, %74 : vector<64x64xf32>
    %cst_28 = arith.constant 1.000000e+00 : f32
    %76 = vector.broadcast %cst_28 : f32 to vector<64x64xf32>
    %77 = arith.subf %75, %76 : vector<64x64xf32>
    %78 = arith.mulf %67, %77 : vector<64x64xf32>
    %cst_29 = arith.constant 1.000000e+00 : f32
    %79 = vector.broadcast %cst_29 : f32 to vector<64x64xf32>
    %80 = arith.addf %75, %79 : vector<64x64xf32>
    %81 = tpu.reciprocal %80 {approx = true} : vector<64x64xf32> -> vector<64x64xf32>
    %82 = arith.mulf %78, %81 : vector<64x64xf32>
    %c0_30 = arith.constant 0 : index
    %c0_31 = arith.constant 0 : index
    %83 = vector.load %arg8[%c0_30, %c0_31] : memref<128x64xbf16, #tpu.memory_space<vmem>>, vector<128x64xbf16>
    %c0_32 = arith.constant 0 : index
    %c0_33 = arith.constant 0 : index
    %84 = vector.load %arg9[%c0_32, %c0_33] : memref<1x64xf32, #tpu.memory_space<vmem>>, vector<1x64xf32>
    %c0_34 = arith.constant 0 : index
    %c0_35 = arith.constant 0 : index
    %85 = vector.load %arg10[%c0_34, %c0_35] : memref<1x64xf32, #tpu.memory_space<vmem>>, vector<1x64xf32>
    %cst_36 = arith.constant dense<0.000000e+00> : vector<64x64xf32>
    %86 = tpu.matmul %59, %83, %cst_36 {dimension_numbers = #tpu.dot_dimension_numbers<[1], [0], [0], [1], [0, 0, 1, 1], [], []>} : vector<64x128xbf16>, vector<128x64xbf16>, vector<64x64xf32> -> vector<64x64xf32>
    %87 = vector.broadcast %84 : vector<1x64xf32> to vector<64x64xf32>
    %88 = arith.mulf %86, %87 : vector<64x64xf32>
    %89 = vector.broadcast %85 : vector<1x64xf32> to vector<64x64xf32>
    %90 = arith.addf %88, %89 : vector<64x64xf32>
    %cst_37 = arith.constant 2.000000e+01 : f32
    %91 = vector.broadcast %cst_37 : f32 to vector<64x64xf32>
    %92 = arith.minimumf %90, %91 : vector<64x64xf32>
    %93 = math.exp %92 : vector<64x64xf32>
    %cst_38 = arith.constant 1.000000e+00 : f32
    %94 = vector.broadcast %cst_38 : f32 to vector<64x64xf32>
    %95 = arith.addf %94, %93 : vector<64x64xf32>
    %cst_39 = arith.constant 1.000000e+00 : f32
    %96 = vector.broadcast %cst_39 : f32 to vector<64x64xf32>
    %97 = arith.addf %96, %93 : vector<64x64xf32>
    %98 = arith.mulf %95, %97 : vector<64x64xf32>
    %cst_40 = arith.constant 1.000000e+00 : f32
    %99 = vector.broadcast %cst_40 : f32 to vector<64x64xf32>
    %100 = arith.subf %98, %99 : vector<64x64xf32>
    %101 = arith.mulf %90, %100 : vector<64x64xf32>
    %cst_41 = arith.constant 1.000000e+00 : f32
    %102 = vector.broadcast %cst_41 : f32 to vector<64x64xf32>
    %103 = arith.addf %98, %102 : vector<64x64xf32>
    %104 = tpu.reciprocal %103 {approx = true} : vector<64x64xf32> -> vector<64x64xf32>
    %105 = arith.mulf %101, %104 : vector<64x64xf32>
    %106 = arith.truncf %105 : vector<64x64xf32> to vector<64x64xbf16>
    %c0_42 = arith.constant 0 : index
    %c0_43 = arith.constant 0 : index
    %c0_44 = arith.constant 0 : index
    %107 = vector.load %arg11[%c0_42, %c0_43, %c0_44] : memref<2x64x64xbf16, #tpu.memory_space<vmem>>, vector<1x64x64xbf16>
    %108 = vector.shape_cast %107 : vector<1x64x64xbf16> to vector<64x64xbf16>
    %c0_45 = arith.constant 0 : index
    %c0_46 = arith.constant 0 : index
    %c0_47 = arith.constant 0 : index
    %109 = vector.load %arg12[%c0_45, %c0_46, %c0_47] : memref<2x1x64xf32, #tpu.memory_space<vmem>>, vector<1x1x64xf32>
    %110 = vector.shape_cast %109 : vector<1x1x64xf32> to vector<1x64xf32>
    %c0_48 = arith.constant 0 : index
    %c0_49 = arith.constant 0 : index
    %c0_50 = arith.constant 0 : index
    %111 = vector.load %arg13[%c0_48, %c0_49, %c0_50] : memref<2x1x64xf32, #tpu.memory_space<vmem>>, vector<1x1x64xf32>
    %112 = vector.shape_cast %111 : vector<1x1x64xf32> to vector<1x64xf32>
    %cst_51 = arith.constant dense<0.000000e+00> : vector<64x64xf32>
    %113 = tpu.matmul %106, %108, %cst_51 {dimension_numbers = #tpu.dot_dimension_numbers<[1], [0], [0], [1], [0, 0, 1, 1], [], []>} : vector<64x64xbf16>, vector<64x64xbf16>, vector<64x64xf32> -> vector<64x64xf32>
    %114 = vector.broadcast %110 : vector<1x64xf32> to vector<64x64xf32>
    %115 = arith.mulf %113, %114 : vector<64x64xf32>
    %116 = vector.broadcast %112 : vector<1x64xf32> to vector<64x64xf32>
    %117 = arith.addf %115, %116 : vector<64x64xf32>
    %cst_52 = arith.constant 2.000000e+01 : f32
    %118 = vector.broadcast %cst_52 : f32 to vector<64x64xf32>
    %119 = arith.minimumf %117, %118 : vector<64x64xf32>
    %120 = math.exp %119 : vector<64x64xf32>
    %cst_53 = arith.constant 1.000000e+00 : f32
    %121 = vector.broadcast %cst_53 : f32 to vector<64x64xf32>
    %122 = arith.addf %121, %120 : vector<64x64xf32>
    %cst_54 = arith.constant 1.000000e+00 : f32
    %123 = vector.broadcast %cst_54 : f32 to vector<64x64xf32>
    %124 = arith.addf %123, %120 : vector<64x64xf32>
    %125 = arith.mulf %122, %124 : vector<64x64xf32>
    %cst_55 = arith.constant 1.000000e+00 : f32
    %126 = vector.broadcast %cst_55 : f32 to vector<64x64xf32>
    %127 = arith.subf %125, %126 : vector<64x64xf32>
    %128 = arith.mulf %117, %127 : vector<64x64xf32>
    %cst_56 = arith.constant 1.000000e+00 : f32
    %129 = vector.broadcast %cst_56 : f32 to vector<64x64xf32>
    %130 = arith.addf %125, %129 : vector<64x64xf32>
    %131 = tpu.reciprocal %130 {approx = true} : vector<64x64xf32> -> vector<64x64xf32>
    %132 = arith.mulf %128, %131 : vector<64x64xf32>
    %133 = arith.truncf %132 : vector<64x64xf32> to vector<64x64xbf16>
    %c0_57 = arith.constant 0 : index
    %c0_58 = arith.constant 0 : index
    %c0_59 = arith.constant 0 : index
    %134 = vector.load %arg14[%c0_57, %c0_58, %c0_59] : memref<2x64x576xbf16, #tpu.memory_space<vmem>>, vector<1x64x576xbf16>
    %135 = vector.shape_cast %134 : vector<1x64x576xbf16> to vector<64x576xbf16>
    %cst_60 = arith.constant dense<0.000000e+00> : vector<64x576xf32>
    %136 = tpu.matmul %133, %135, %cst_60 {dimension_numbers = #tpu.dot_dimension_numbers<[1], [0], [0], [1], [0, 0, 1, 1], [], []>} : vector<64x64xbf16>, vector<64x576xbf16>, vector<64x576xf32> -> vector<64x576xf32>
    %137 = vector.extract_strided_slice %136 {offsets = [0, 256], sizes = [64, 64], strides = [1, 1]} : vector<64x576xf32> to vector<64x64xf32>
    %138 = arith.andi %4, %8 : vector<64x1xi1>
    %139 = vector.extract_strided_slice %136 {offsets = [0, 0], sizes = [64, 64], strides = [1, 1]} : vector<64x576xf32> to vector<64x64xf32>
    %c9_i32_61 = arith.constant 9 : i32
    %140 = tpu.dynamic_rotate %139 by %c9_i32_61 dim 0 : vector<64x64xf32>, i32 -> vector<64x64xf32>
    %cst_62 = arith.constant 0.000000e+00 : f32
    %141 = vector.shape_cast %138 : vector<64x1xi1> to vector<64x1xi1>
    %142 = vector.broadcast %141 : vector<64x1xi1> to vector<64x64xi1>
    %143 = vector.broadcast %cst_62 : f32 to vector<64x64xf32>
    %144 = arith.select %142, %140, %143 : vector<64x64xi1>, vector<64x64xf32>
    %145 = arith.addf %137, %144 : vector<64x64xf32>
    %146 = vector.extract_strided_slice %136 {offsets = [0, 64], sizes = [64, 64], strides = [1, 1]} : vector<64x576xf32> to vector<64x64xf32>
    %c8_i32_63 = arith.constant 8 : i32
    %147 = tpu.dynamic_rotate %146 by %c8_i32_63 dim 0 : vector<64x64xf32>, i32 -> vector<64x64xf32>
    %cst_64 = arith.constant 0.000000e+00 : f32
    %148 = vector.shape_cast %4 : vector<64x1xi1> to vector<64x1xi1>
    %149 = vector.broadcast %148 : vector<64x1xi1> to vector<64x64xi1>
    %150 = vector.broadcast %cst_64 : f32 to vector<64x64xf32>
    %151 = arith.select %149, %147, %150 : vector<64x64xi1>, vector<64x64xf32>
    %152 = arith.addf %145, %151 : vector<64x64xf32>
    %153 = arith.andi %4, %10 : vector<64x1xi1>
    %154 = vector.extract_strided_slice %136 {offsets = [0, 128], sizes = [64, 64], strides = [1, 1]} : vector<64x576xf32> to vector<64x64xf32>
    %c7_i32_65 = arith.constant 7 : i32
    %155 = tpu.dynamic_rotate %154 by %c7_i32_65 dim 0 : vector<64x64xf32>, i32 -> vector<64x64xf32>
    %cst_66 = arith.constant 0.000000e+00 : f32
    %156 = vector.shape_cast %153 : vector<64x1xi1> to vector<64x1xi1>
    %157 = vector.broadcast %156 : vector<64x1xi1> to vector<64x64xi1>
    %158 = vector.broadcast %cst_66 : f32 to vector<64x64xf32>
    %159 = arith.select %157, %155, %158 : vector<64x64xi1>, vector<64x64xf32>
    %160 = arith.addf %152, %159 : vector<64x64xf32>
    %161 = vector.extract_strided_slice %136 {offsets = [0, 192], sizes = [64, 64], strides = [1, 1]} : vector<64x576xf32> to vector<64x64xf32>
    %c1_i32_67 = arith.constant 1 : i32
    %162 = tpu.dynamic_rotate %161 by %c1_i32_67 dim 0 : vector<64x64xf32>, i32 -> vector<64x64xf32>
    %cst_68 = arith.constant 0.000000e+00 : f32
    %163 = vector.shape_cast %8 : vector<64x1xi1> to vector<64x1xi1>
    %164 = vector.broadcast %163 : vector<64x1xi1> to vector<64x64xi1>
    %165 = vector.broadcast %cst_68 : f32 to vector<64x64xf32>
    %166 = arith.select %164, %162, %165 : vector<64x64xi1>, vector<64x64xf32>
    %167 = arith.addf %160, %166 : vector<64x64xf32>
    %168 = vector.extract_strided_slice %136 {offsets = [0, 320], sizes = [64, 64], strides = [1, 1]} : vector<64x576xf32> to vector<64x64xf32>
    %c63_i32 = arith.constant 63 : i32
    %169 = tpu.dynamic_rotate %168 by %c63_i32 dim 0 : vector<64x64xf32>, i32 -> vector<64x64xf32>
    %cst_69 = arith.constant 0.000000e+00 : f32
    %170 = vector.shape_cast %10 : vector<64x1xi1> to vector<64x1xi1>
    %171 = vector.broadcast %170 : vector<64x1xi1> to vector<64x64xi1>
    %172 = vector.broadcast %cst_69 : f32 to vector<64x64xf32>
    %173 = arith.select %171, %169, %172 : vector<64x64xi1>, vector<64x64xf32>
    %174 = arith.addf %167, %173 : vector<64x64xf32>
    %175 = arith.andi %6, %8 : vector<64x1xi1>
    %176 = vector.extract_strided_slice %136 {offsets = [0, 384], sizes = [64, 64], strides = [1, 1]} : vector<64x576xf32> to vector<64x64xf32>
    %c57_i32 = arith.constant 57 : i32
    %177 = tpu.dynamic_rotate %176 by %c57_i32 dim 0 : vector<64x64xf32>, i32 -> vector<64x64xf32>
    %cst_70 = arith.constant 0.000000e+00 : f32
    %178 = vector.shape_cast %175 : vector<64x1xi1> to vector<64x1xi1>
    %179 = vector.broadcast %178 : vector<64x1xi1> to vector<64x64xi1>
    %180 = vector.broadcast %cst_70 : f32 to vector<64x64xf32>
    %181 = arith.select %179, %177, %180 : vector<64x64xi1>, vector<64x64xf32>
    %182 = arith.addf %174, %181 : vector<64x64xf32>
    %183 = vector.extract_strided_slice %136 {offsets = [0, 448], sizes = [64, 64], strides = [1, 1]} : vector<64x576xf32> to vector<64x64xf32>
    %c56_i32_71 = arith.constant 56 : i32
    %184 = tpu.dynamic_rotate %183 by %c56_i32_71 dim 0 : vector<64x64xf32>, i32 -> vector<64x64xf32>
    %cst_72 = arith.constant 0.000000e+00 : f32
    %185 = vector.shape_cast %6 : vector<64x1xi1> to vector<64x1xi1>
    %186 = vector.broadcast %185 : vector<64x1xi1> to vector<64x64xi1>
    %187 = vector.broadcast %cst_72 : f32 to vector<64x64xf32>
    %188 = arith.select %186, %184, %187 : vector<64x64xi1>, vector<64x64xf32>
    %189 = arith.addf %182, %188 : vector<64x64xf32>
    %190 = arith.andi %6, %10 : vector<64x1xi1>
    %191 = vector.extract_strided_slice %136 {offsets = [0, 512], sizes = [64, 64], strides = [1, 1]} : vector<64x576xf32> to vector<64x64xf32>
    %c55_i32 = arith.constant 55 : i32
    %192 = tpu.dynamic_rotate %191 by %c55_i32 dim 0 : vector<64x64xf32>, i32 -> vector<64x64xf32>
    %cst_73 = arith.constant 0.000000e+00 : f32
    %193 = vector.shape_cast %190 : vector<64x1xi1> to vector<64x1xi1>
    %194 = vector.broadcast %193 : vector<64x1xi1> to vector<64x64xi1>
    %195 = vector.broadcast %cst_73 : f32 to vector<64x64xf32>
    %196 = arith.select %194, %192, %195 : vector<64x64xi1>, vector<64x64xf32>
    %197 = arith.addf %189, %196 : vector<64x64xf32>
    %c0_74 = arith.constant 0 : index
    %c0_75 = arith.constant 0 : index
    %c0_76 = arith.constant 0 : index
    %198 = vector.load %arg15[%c0_74, %c0_75, %c0_76] : memref<2x1x64xf32, #tpu.memory_space<vmem>>, vector<1x1x64xf32>
    %199 = vector.shape_cast %198 : vector<1x1x64xf32> to vector<1x64xf32>
    %200 = vector.broadcast %199 : vector<1x64xf32> to vector<64x64xf32>
    %201 = arith.mulf %197, %200 : vector<64x64xf32>
    %c0_77 = arith.constant 0 : index
    %c0_78 = arith.constant 0 : index
    %c0_79 = arith.constant 0 : index
    %202 = vector.load %arg16[%c0_77, %c0_78, %c0_79] : memref<2x1x64xf32, #tpu.memory_space<vmem>>, vector<1x1x64xf32>
    %203 = vector.shape_cast %202 : vector<1x1x64xf32> to vector<1x64xf32>
    %204 = vector.broadcast %203 : vector<1x64xf32> to vector<64x64xf32>
    %205 = arith.addf %201, %204 : vector<64x64xf32>
    %cst_80 = arith.constant 2.000000e+01 : f32
    %206 = vector.broadcast %cst_80 : f32 to vector<64x64xf32>
    %207 = arith.minimumf %205, %206 : vector<64x64xf32>
    %208 = math.exp %207 : vector<64x64xf32>
    %cst_81 = arith.constant 1.000000e+00 : f32
    %209 = vector.broadcast %cst_81 : f32 to vector<64x64xf32>
    %210 = arith.addf %209, %208 : vector<64x64xf32>
    %cst_82 = arith.constant 1.000000e+00 : f32
    %211 = vector.broadcast %cst_82 : f32 to vector<64x64xf32>
    %212 = arith.addf %211, %208 : vector<64x64xf32>
    %213 = arith.mulf %210, %212 : vector<64x64xf32>
    %cst_83 = arith.constant 1.000000e+00 : f32
    %214 = vector.broadcast %cst_83 : f32 to vector<64x64xf32>
    %215 = arith.subf %213, %214 : vector<64x64xf32>
    %216 = arith.mulf %205, %215 : vector<64x64xf32>
    %cst_84 = arith.constant 1.000000e+00 : f32
    %217 = vector.broadcast %cst_84 : f32 to vector<64x64xf32>
    %218 = arith.addf %213, %217 : vector<64x64xf32>
    %219 = tpu.reciprocal %218 {approx = true} : vector<64x64xf32> -> vector<64x64xf32>
    %220 = arith.mulf %216, %219 : vector<64x64xf32>
    %221 = arith.addf %105, %220 : vector<64x64xf32>
    %222 = arith.truncf %221 : vector<64x64xf32> to vector<64x64xbf16>
    %c1 = arith.constant 1 : index
    %c0_85 = arith.constant 0 : index
    %c0_86 = arith.constant 0 : index
    %223 = vector.load %arg11[%c1, %c0_85, %c0_86] : memref<2x64x64xbf16, #tpu.memory_space<vmem>>, vector<1x64x64xbf16>
    %224 = vector.shape_cast %223 : vector<1x64x64xbf16> to vector<64x64xbf16>
    %c1_87 = arith.constant 1 : index
    %c0_88 = arith.constant 0 : index
    %c0_89 = arith.constant 0 : index
    %225 = vector.load %arg12[%c1_87, %c0_88, %c0_89] : memref<2x1x64xf32, #tpu.memory_space<vmem>>, vector<1x1x64xf32>
    %226 = vector.shape_cast %225 : vector<1x1x64xf32> to vector<1x64xf32>
    %c1_90 = arith.constant 1 : index
    %c0_91 = arith.constant 0 : index
    %c0_92 = arith.constant 0 : index
    %227 = vector.load %arg13[%c1_90, %c0_91, %c0_92] : memref<2x1x64xf32, #tpu.memory_space<vmem>>, vector<1x1x64xf32>
    %228 = vector.shape_cast %227 : vector<1x1x64xf32> to vector<1x64xf32>
    %cst_93 = arith.constant dense<0.000000e+00> : vector<64x64xf32>
    %229 = tpu.matmul %222, %224, %cst_93 {dimension_numbers = #tpu.dot_dimension_numbers<[1], [0], [0], [1], [0, 0, 1, 1], [], []>} : vector<64x64xbf16>, vector<64x64xbf16>, vector<64x64xf32> -> vector<64x64xf32>
    %230 = vector.broadcast %226 : vector<1x64xf32> to vector<64x64xf32>
    %231 = arith.mulf %229, %230 : vector<64x64xf32>
    %232 = vector.broadcast %228 : vector<1x64xf32> to vector<64x64xf32>
    %233 = arith.addf %231, %232 : vector<64x64xf32>
    %cst_94 = arith.constant 2.000000e+01 : f32
    %234 = vector.broadcast %cst_94 : f32 to vector<64x64xf32>
    %235 = arith.minimumf %233, %234 : vector<64x64xf32>
    %236 = math.exp %235 : vector<64x64xf32>
    %cst_95 = arith.constant 1.000000e+00 : f32
    %237 = vector.broadcast %cst_95 : f32 to vector<64x64xf32>
    %238 = arith.addf %237, %236 : vector<64x64xf32>
    %cst_96 = arith.constant 1.000000e+00 : f32
    %239 = vector.broadcast %cst_96 : f32 to vector<64x64xf32>
    %240 = arith.addf %239, %236 : vector<64x64xf32>
    %241 = arith.mulf %238, %240 : vector<64x64xf32>
    %cst_97 = arith.constant 1.000000e+00 : f32
    %242 = vector.broadcast %cst_97 : f32 to vector<64x64xf32>
    %243 = arith.subf %241, %242 : vector<64x64xf32>
    %244 = arith.mulf %233, %243 : vector<64x64xf32>
    %cst_98 = arith.constant 1.000000e+00 : f32
    %245 = vector.broadcast %cst_98 : f32 to vector<64x64xf32>
    %246 = arith.addf %241, %245 : vector<64x64xf32>
    %247 = tpu.reciprocal %246 {approx = true} : vector<64x64xf32> -> vector<64x64xf32>
    %248 = arith.mulf %244, %247 : vector<64x64xf32>
    %249 = arith.truncf %248 : vector<64x64xf32> to vector<64x64xbf16>
    %c1_99 = arith.constant 1 : index
    %c0_100 = arith.constant 0 : index
    %c0_101 = arith.constant 0 : index
    %250 = vector.load %arg14[%c1_99, %c0_100, %c0_101] : memref<2x64x576xbf16, #tpu.memory_space<vmem>>, vector<1x64x576xbf16>
    %251 = vector.shape_cast %250 : vector<1x64x576xbf16> to vector<64x576xbf16>
    %cst_102 = arith.constant dense<0.000000e+00> : vector<64x576xf32>
    %252 = tpu.matmul %249, %251, %cst_102 {dimension_numbers = #tpu.dot_dimension_numbers<[1], [0], [0], [1], [0, 0, 1, 1], [], []>} : vector<64x64xbf16>, vector<64x576xbf16>, vector<64x576xf32> -> vector<64x576xf32>
    %253 = vector.extract_strided_slice %252 {offsets = [0, 256], sizes = [64, 64], strides = [1, 1]} : vector<64x576xf32> to vector<64x64xf32>
    %254 = arith.andi %4, %8 : vector<64x1xi1>
    %255 = vector.extract_strided_slice %252 {offsets = [0, 0], sizes = [64, 64], strides = [1, 1]} : vector<64x576xf32> to vector<64x64xf32>
    %c9_i32_103 = arith.constant 9 : i32
    %256 = tpu.dynamic_rotate %255 by %c9_i32_103 dim 0 : vector<64x64xf32>, i32 -> vector<64x64xf32>
    %cst_104 = arith.constant 0.000000e+00 : f32
    %257 = vector.shape_cast %254 : vector<64x1xi1> to vector<64x1xi1>
    %258 = vector.broadcast %257 : vector<64x1xi1> to vector<64x64xi1>
    %259 = vector.broadcast %cst_104 : f32 to vector<64x64xf32>
    %260 = arith.select %258, %256, %259 : vector<64x64xi1>, vector<64x64xf32>
    %261 = arith.addf %253, %260 : vector<64x64xf32>
    %262 = vector.extract_strided_slice %252 {offsets = [0, 64], sizes = [64, 64], strides = [1, 1]} : vector<64x576xf32> to vector<64x64xf32>
    %c8_i32_105 = arith.constant 8 : i32
    %263 = tpu.dynamic_rotate %262 by %c8_i32_105 dim 0 : vector<64x64xf32>, i32 -> vector<64x64xf32>
    %cst_106 = arith.constant 0.000000e+00 : f32
    %264 = vector.shape_cast %4 : vector<64x1xi1> to vector<64x1xi1>
    %265 = vector.broadcast %264 : vector<64x1xi1> to vector<64x64xi1>
    %266 = vector.broadcast %cst_106 : f32 to vector<64x64xf32>
    %267 = arith.select %265, %263, %266 : vector<64x64xi1>, vector<64x64xf32>
    %268 = arith.addf %261, %267 : vector<64x64xf32>
    %269 = arith.andi %4, %10 : vector<64x1xi1>
    %270 = vector.extract_strided_slice %252 {offsets = [0, 128], sizes = [64, 64], strides = [1, 1]} : vector<64x576xf32> to vector<64x64xf32>
    %c7_i32_107 = arith.constant 7 : i32
    %271 = tpu.dynamic_rotate %270 by %c7_i32_107 dim 0 : vector<64x64xf32>, i32 -> vector<64x64xf32>
    %cst_108 = arith.constant 0.000000e+00 : f32
    %272 = vector.shape_cast %269 : vector<64x1xi1> to vector<64x1xi1>
    %273 = vector.broadcast %272 : vector<64x1xi1> to vector<64x64xi1>
    %274 = vector.broadcast %cst_108 : f32 to vector<64x64xf32>
    %275 = arith.select %273, %271, %274 : vector<64x64xi1>, vector<64x64xf32>
    %276 = arith.addf %268, %275 : vector<64x64xf32>
    %277 = vector.extract_strided_slice %252 {offsets = [0, 192], sizes = [64, 64], strides = [1, 1]} : vector<64x576xf32> to vector<64x64xf32>
    %c1_i32_109 = arith.constant 1 : i32
    %278 = tpu.dynamic_rotate %277 by %c1_i32_109 dim 0 : vector<64x64xf32>, i32 -> vector<64x64xf32>
    %cst_110 = arith.constant 0.000000e+00 : f32
    %279 = vector.shape_cast %8 : vector<64x1xi1> to vector<64x1xi1>
    %280 = vector.broadcast %279 : vector<64x1xi1> to vector<64x64xi1>
    %281 = vector.broadcast %cst_110 : f32 to vector<64x64xf32>
    %282 = arith.select %280, %278, %281 : vector<64x64xi1>, vector<64x64xf32>
    %283 = arith.addf %276, %282 : vector<64x64xf32>
    %284 = vector.extract_strided_slice %252 {offsets = [0, 320], sizes = [64, 64], strides = [1, 1]} : vector<64x576xf32> to vector<64x64xf32>
    %c63_i32_111 = arith.constant 63 : i32
    %285 = tpu.dynamic_rotate %284 by %c63_i32_111 dim 0 : vector<64x64xf32>, i32 -> vector<64x64xf32>
    %cst_112 = arith.constant 0.000000e+00 : f32
    %286 = vector.shape_cast %10 : vector<64x1xi1> to vector<64x1xi1>
    %287 = vector.broadcast %286 : vector<64x1xi1> to vector<64x64xi1>
    %288 = vector.broadcast %cst_112 : f32 to vector<64x64xf32>
    %289 = arith.select %287, %285, %288 : vector<64x64xi1>, vector<64x64xf32>
    %290 = arith.addf %283, %289 : vector<64x64xf32>
    %291 = arith.andi %6, %8 : vector<64x1xi1>
    %292 = vector.extract_strided_slice %252 {offsets = [0, 384], sizes = [64, 64], strides = [1, 1]} : vector<64x576xf32> to vector<64x64xf32>
    %c57_i32_113 = arith.constant 57 : i32
    %293 = tpu.dynamic_rotate %292 by %c57_i32_113 dim 0 : vector<64x64xf32>, i32 -> vector<64x64xf32>
    %cst_114 = arith.constant 0.000000e+00 : f32
    %294 = vector.shape_cast %291 : vector<64x1xi1> to vector<64x1xi1>
    %295 = vector.broadcast %294 : vector<64x1xi1> to vector<64x64xi1>
    %296 = vector.broadcast %cst_114 : f32 to vector<64x64xf32>
    %297 = arith.select %295, %293, %296 : vector<64x64xi1>, vector<64x64xf32>
    %298 = arith.addf %290, %297 : vector<64x64xf32>
    %299 = vector.extract_strided_slice %252 {offsets = [0, 448], sizes = [64, 64], strides = [1, 1]} : vector<64x576xf32> to vector<64x64xf32>
    %c56_i32_115 = arith.constant 56 : i32
    %300 = tpu.dynamic_rotate %299 by %c56_i32_115 dim 0 : vector<64x64xf32>, i32 -> vector<64x64xf32>
    %cst_116 = arith.constant 0.000000e+00 : f32
    %301 = vector.shape_cast %6 : vector<64x1xi1> to vector<64x1xi1>
    %302 = vector.broadcast %301 : vector<64x1xi1> to vector<64x64xi1>
    %303 = vector.broadcast %cst_116 : f32 to vector<64x64xf32>
    %304 = arith.select %302, %300, %303 : vector<64x64xi1>, vector<64x64xf32>
    %305 = arith.addf %298, %304 : vector<64x64xf32>
    %306 = arith.andi %6, %10 : vector<64x1xi1>
    %307 = vector.extract_strided_slice %252 {offsets = [0, 512], sizes = [64, 64], strides = [1, 1]} : vector<64x576xf32> to vector<64x64xf32>
    %c55_i32_117 = arith.constant 55 : i32
    %308 = tpu.dynamic_rotate %307 by %c55_i32_117 dim 0 : vector<64x64xf32>, i32 -> vector<64x64xf32>
    %cst_118 = arith.constant 0.000000e+00 : f32
    %309 = vector.shape_cast %306 : vector<64x1xi1> to vector<64x1xi1>
    %310 = vector.broadcast %309 : vector<64x1xi1> to vector<64x64xi1>
    %311 = vector.broadcast %cst_118 : f32 to vector<64x64xf32>
    %312 = arith.select %310, %308, %311 : vector<64x64xi1>, vector<64x64xf32>
    %313 = arith.addf %305, %312 : vector<64x64xf32>
    %c1_119 = arith.constant 1 : index
    %c0_120 = arith.constant 0 : index
    %c0_121 = arith.constant 0 : index
    %314 = vector.load %arg15[%c1_119, %c0_120, %c0_121] : memref<2x1x64xf32, #tpu.memory_space<vmem>>, vector<1x1x64xf32>
    %315 = vector.shape_cast %314 : vector<1x1x64xf32> to vector<1x64xf32>
    %316 = vector.broadcast %315 : vector<1x64xf32> to vector<64x64xf32>
    %317 = arith.mulf %313, %316 : vector<64x64xf32>
    %c1_122 = arith.constant 1 : index
    %c0_123 = arith.constant 0 : index
    %c0_124 = arith.constant 0 : index
    %318 = vector.load %arg16[%c1_122, %c0_123, %c0_124] : memref<2x1x64xf32, #tpu.memory_space<vmem>>, vector<1x1x64xf32>
    %319 = vector.shape_cast %318 : vector<1x1x64xf32> to vector<1x64xf32>
    %320 = vector.broadcast %319 : vector<1x64xf32> to vector<64x64xf32>
    %321 = arith.addf %317, %320 : vector<64x64xf32>
    %cst_125 = arith.constant 2.000000e+01 : f32
    %322 = vector.broadcast %cst_125 : f32 to vector<64x64xf32>
    %323 = arith.minimumf %321, %322 : vector<64x64xf32>
    %324 = math.exp %323 : vector<64x64xf32>
    %cst_126 = arith.constant 1.000000e+00 : f32
    %325 = vector.broadcast %cst_126 : f32 to vector<64x64xf32>
    %326 = arith.addf %325, %324 : vector<64x64xf32>
    %cst_127 = arith.constant 1.000000e+00 : f32
    %327 = vector.broadcast %cst_127 : f32 to vector<64x64xf32>
    %328 = arith.addf %327, %324 : vector<64x64xf32>
    %329 = arith.mulf %326, %328 : vector<64x64xf32>
    %cst_128 = arith.constant 1.000000e+00 : f32
    %330 = vector.broadcast %cst_128 : f32 to vector<64x64xf32>
    %331 = arith.subf %329, %330 : vector<64x64xf32>
    %332 = arith.mulf %321, %331 : vector<64x64xf32>
    %cst_129 = arith.constant 1.000000e+00 : f32
    %333 = vector.broadcast %cst_129 : f32 to vector<64x64xf32>
    %334 = arith.addf %329, %333 : vector<64x64xf32>
    %335 = tpu.reciprocal %334 {approx = true} : vector<64x64xf32> -> vector<64x64xf32>
    %336 = arith.mulf %332, %335 : vector<64x64xf32>
    %337 = arith.addf %221, %336 : vector<64x64xf32>
    %338 = arith.truncf %337 : vector<64x64xf32> to vector<64x64xbf16>
    %c0_130 = arith.constant 0 : index
    %c0_131 = arith.constant 0 : index
    %339 = vector.load %arg17[%c0_130, %c0_131] : memref<64x64xbf16, #tpu.memory_space<vmem>>, vector<64x64xbf16>
    %c0_132 = arith.constant 0 : index
    %c0_133 = arith.constant 0 : index
    %340 = vector.load %arg18[%c0_132, %c0_133] : memref<1x64xf32, #tpu.memory_space<vmem>>, vector<1x64xf32>
    %c0_134 = arith.constant 0 : index
    %c0_135 = arith.constant 0 : index
    %341 = vector.load %arg19[%c0_134, %c0_135] : memref<1x64xf32, #tpu.memory_space<vmem>>, vector<1x64xf32>
    %cst_136 = arith.constant dense<0.000000e+00> : vector<64x64xf32>
    %342 = tpu.matmul %338, %339, %cst_136 {dimension_numbers = #tpu.dot_dimension_numbers<[1], [0], [0], [1], [0, 0, 1, 1], [], []>} : vector<64x64xbf16>, vector<64x64xbf16>, vector<64x64xf32> -> vector<64x64xf32>
    %343 = vector.broadcast %340 : vector<1x64xf32> to vector<64x64xf32>
    %344 = arith.mulf %342, %343 : vector<64x64xf32>
    %345 = vector.broadcast %341 : vector<1x64xf32> to vector<64x64xf32>
    %346 = arith.addf %344, %345 : vector<64x64xf32>
    %cst_137 = arith.constant 2.000000e+01 : f32
    %347 = vector.broadcast %cst_137 : f32 to vector<64x64xf32>
    %348 = arith.minimumf %346, %347 : vector<64x64xf32>
    %349 = math.exp %348 : vector<64x64xf32>
    %cst_138 = arith.constant 1.000000e+00 : f32
    %350 = vector.broadcast %cst_138 : f32 to vector<64x64xf32>
    %351 = arith.addf %350, %349 : vector<64x64xf32>
    %cst_139 = arith.constant 1.000000e+00 : f32
    %352 = vector.broadcast %cst_139 : f32 to vector<64x64xf32>
    %353 = arith.addf %352, %349 : vector<64x64xf32>
    %354 = arith.mulf %351, %353 : vector<64x64xf32>
    %cst_140 = arith.constant 1.000000e+00 : f32
    %355 = vector.broadcast %cst_140 : f32 to vector<64x64xf32>
    %356 = arith.subf %354, %355 : vector<64x64xf32>
    %357 = arith.mulf %346, %356 : vector<64x64xf32>
    %cst_141 = arith.constant 1.000000e+00 : f32
    %358 = vector.broadcast %cst_141 : f32 to vector<64x64xf32>
    %359 = arith.addf %354, %358 : vector<64x64xf32>
    %360 = tpu.reciprocal %359 {approx = true} : vector<64x64xf32> -> vector<64x64xf32>
    %361 = arith.mulf %357, %360 : vector<64x64xf32>
    %362 = arith.truncf %361 : vector<64x64xf32> to vector<64x64xbf16>
    %c0_142 = arith.constant 0 : index
    %c0_143 = arith.constant 0 : index
    %363 = vector.load %arg20[%c0_142, %c0_143] : memref<64x128xbf16, #tpu.memory_space<vmem>>, vector<64x128xbf16>
    %cst_144 = arith.constant dense<0.000000e+00> : vector<64x128xf32>
    %364 = tpu.matmul %362, %363, %cst_144 {dimension_numbers = #tpu.dot_dimension_numbers<[1], [0], [0], [1], [0, 0, 1, 1], [], []>} : vector<64x64xbf16>, vector<64x128xbf16>, vector<64x128xf32> -> vector<64x128xf32>
    %365 = arith.truncf %82 : vector<64x64xf32> to vector<64x64xbf16>
    %c0_145 = arith.constant 0 : index
    %c0_146 = arith.constant 0 : index
    %366 = vector.load %arg21[%c0_145, %c0_146] : memref<64x128xbf16, #tpu.memory_space<vmem>>, vector<64x128xbf16>
    %cst_147 = arith.constant dense<0.000000e+00> : vector<64x128xf32>
    %367 = tpu.matmul %365, %366, %cst_147 {dimension_numbers = #tpu.dot_dimension_numbers<[1], [0], [0], [1], [0, 0, 1, 1], [], []>} : vector<64x64xbf16>, vector<64x128xbf16>, vector<64x128xf32> -> vector<64x128xf32>
    %368 = arith.addf %364, %367 : vector<64x128xf32>
    %c0_148 = arith.constant 0 : index
    %c0_149 = arith.constant 0 : index
    %369 = vector.load %arg22[%c0_148, %c0_149] : memref<1x128xf32, #tpu.memory_space<vmem>>, vector<1x128xf32>
    %370 = vector.broadcast %369 : vector<1x128xf32> to vector<64x128xf32>
    %371 = arith.mulf %368, %370 : vector<64x128xf32>
    %c0_150 = arith.constant 0 : index
    %c0_151 = arith.constant 0 : index
    %372 = vector.load %arg23[%c0_150, %c0_151] : memref<1x128xf32, #tpu.memory_space<vmem>>, vector<1x128xf32>
    %373 = vector.broadcast %372 : vector<1x128xf32> to vector<64x128xf32>
    %374 = arith.addf %371, %373 : vector<64x128xf32>
    %cst_152 = arith.constant 2.000000e+01 : f32
    %375 = vector.broadcast %cst_152 : f32 to vector<64x128xf32>
    %376 = arith.minimumf %374, %375 : vector<64x128xf32>
    %377 = math.exp %376 : vector<64x128xf32>
    %cst_153 = arith.constant 1.000000e+00 : f32
    %378 = vector.broadcast %cst_153 : f32 to vector<64x128xf32>
    %379 = arith.addf %378, %377 : vector<64x128xf32>
    %cst_154 = arith.constant 1.000000e+00 : f32
    %380 = vector.broadcast %cst_154 : f32 to vector<64x128xf32>
    %381 = arith.addf %380, %377 : vector<64x128xf32>
    %382 = arith.mulf %379, %381 : vector<64x128xf32>
    %cst_155 = arith.constant 1.000000e+00 : f32
    %383 = vector.broadcast %cst_155 : f32 to vector<64x128xf32>
    %384 = arith.subf %382, %383 : vector<64x128xf32>
    %385 = arith.mulf %374, %384 : vector<64x128xf32>
    %cst_156 = arith.constant 1.000000e+00 : f32
    %386 = vector.broadcast %cst_156 : f32 to vector<64x128xf32>
    %387 = arith.addf %382, %386 : vector<64x128xf32>
    %388 = tpu.reciprocal %387 {approx = true} : vector<64x128xf32> -> vector<64x128xf32>
    %389 = arith.mulf %385, %388 : vector<64x128xf32>
    %c0_157 = arith.constant 0 : index
    %c0_158 = arith.constant 0 : index
    %c0_159 = arith.constant 0 : index
    %390 = vector.load %arg24[%c0_157, %c0_158, %c0_159] : memref<1x64x128xf32, #tpu.memory_space<vmem>>, vector<1x64x128xf32>
    %391 = vector.shape_cast %390 : vector<1x64x128xf32> to vector<64x128xf32>
    %392 = vector.shape_cast %389 : vector<64x128xf32> to vector<1x64x128xf32>
    tpu.vector_store %arg24[%c0_157, %c0_158, %c0_159], %392 {strides = array<i32>} : memref<1x64x128xf32, #tpu.memory_space<vmem>>, vector<1x64x128xf32>,
    return
  }
  func.func @transform_0(%arg0: i32) -> (i32, i32, i32) {
    %c0_i32 = arith.constant 0 : i32
    %c0_i32_0 = arith.constant 0 : i32
    %c0_i32_1 = arith.constant 0 : i32
    return %arg0, %c0_i32, %c0_i32_0 : i32, i32, i32
  }
  func.func @transform_1(%arg0: i32) -> (i32, i32) {
    %c0_i32 = arith.constant 0 : i32
    %c0_i32_0 = arith.constant 0 : i32
    %c0_i32_1 = arith.constant 0 : i32
    return %c0_i32, %c0_i32_0 : i32, i32
  }
  func.func @transform_2(%arg0: i32) -> (i32, i32) {
    %c0_i32 = arith.constant 0 : i32
    %c0_i32_0 = arith.constant 0 : i32
    %c0_i32_1 = arith.constant 0 : i32
    return %c0_i32, %c0_i32_0 : i32, i32
  }
  func.func @transform_3(%arg0: i32) -> (i32, i32) {
    %c0_i32 = arith.constant 0 : i32
    %c0_i32_0 = arith.constant 0 : i32
    %c0_i32_1 = arith.constant 0 : i32
    return %c0_i32, %c0_i32_0 : i32, i32
  }
  func.func @transform_4(%arg0: i32) -> (i32, i32) {
    %c0_i32 = arith.constant 0 : i32
    %c0_i32_0 = arith.constant 0 : i32
    %c0_i32_1 = arith.constant 0 : i32
    return %c0_i32, %c0_i32_0 : i32, i32
  }
  func.func @transform_5(%arg0: i32) -> (i32, i32) {
    %c0_i32 = arith.constant 0 : i32
    %c0_i32_0 = arith.constant 0 : i32
    %c0_i32_1 = arith.constant 0 : i32
    return %c0_i32, %c0_i32_0 : i32, i32
  }
  func.func @transform_6(%arg0: i32) -> (i32, i32) {
    %c0_i32 = arith.constant 0 : i32
    %c0_i32_0 = arith.constant 0 : i32
    %c0_i32_1 = arith.constant 0 : i32
    return %c0_i32, %c0_i32_0 : i32, i32
  }
  func.func @transform_7(%arg0: i32) -> (i32, i32) {
    %c0_i32 = arith.constant 0 : i32
    %c0_i32_0 = arith.constant 0 : i32
    %c0_i32_1 = arith.constant 0 : i32
    return %c0_i32, %c0_i32_0 : i32, i32
  }
  func.func @transform_8(%arg0: i32) -> (i32, i32) {
    %c0_i32 = arith.constant 0 : i32
    %c0_i32_0 = arith.constant 0 : i32
    %c0_i32_1 = arith.constant 0 : i32
    return %c0_i32, %c0_i32_0 : i32, i32
  }
  func.func @transform_9(%arg0: i32) -> (i32, i32) {
    %c0_i32 = arith.constant 0 : i32
    %c0_i32_0 = arith.constant 0 : i32
    %c0_i32_1 = arith.constant 0 : i32
    return %c0_i32, %c0_i32_0 : i32, i32
  }
  func.func @transform_10(%arg0: i32) -> (i32, i32, i32) {
    %c0_i32 = arith.constant 0 : i32
    %c0_i32_0 = arith.constant 0 : i32
    %c0_i32_1 = arith.constant 0 : i32
    %c0_i32_2 = arith.constant 0 : i32
    return %c0_i32, %c0_i32_0, %c0_i32_1 : i32, i32, i32
  }
  func.func @transform_11(%arg0: i32) -> (i32, i32, i32) {
    %c0_i32 = arith.constant 0 : i32
    %c0_i32_0 = arith.constant 0 : i32
    %c0_i32_1 = arith.constant 0 : i32
    %c0_i32_2 = arith.constant 0 : i32
    return %c0_i32, %c0_i32_0, %c0_i32_1 : i32, i32, i32
  }
  func.func @transform_12(%arg0: i32) -> (i32, i32, i32) {
    %c0_i32 = arith.constant 0 : i32
    %c0_i32_0 = arith.constant 0 : i32
    %c0_i32_1 = arith.constant 0 : i32
    %c0_i32_2 = arith.constant 0 : i32
    return %c0_i32, %c0_i32_0, %c0_i32_1 : i32, i32, i32
  }
  func.func @transform_13(%arg0: i32) -> (i32, i32, i32) {
    %c0_i32 = arith.constant 0 : i32
    %c0_i32_0 = arith.constant 0 : i32
    %c0_i32_1 = arith.constant 0 : i32
    %c0_i32_2 = arith.constant 0 : i32
    return %c0_i32, %c0_i32_0, %c0_i32_1 : i32, i32, i32
  }
  func.func @transform_14(%arg0: i32) -> (i32, i32, i32) {
    %c0_i32 = arith.constant 0 : i32
    %c0_i32_0 = arith.constant 0 : i32
    %c0_i32_1 = arith.constant 0 : i32
    %c0_i32_2 = arith.constant 0 : i32
    return %c0_i32, %c0_i32_0, %c0_i32_1 : i32, i32, i32
  }
  func.func @transform_15(%arg0: i32) -> (i32, i32, i32) {
    %c0_i32 = arith.constant 0 : i32
    %c0_i32_0 = arith.constant 0 : i32
    %c0_i32_1 = arith.constant 0 : i32
    %c0_i32_2 = arith.constant 0 : i32
    return %c0_i32, %c0_i32_0, %c0_i32_1 : i32, i32, i32
  }
  func.func @transform_16(%arg0: i32) -> (i32, i32) {
    %c0_i32 = arith.constant 0 : i32
    %c0_i32_0 = arith.constant 0 : i32
    %c0_i32_1 = arith.constant 0 : i32
    return %c0_i32, %c0_i32_0 : i32, i32
  }
  func.func @transform_17(%arg0: i32) -> (i32, i32) {
    %c0_i32 = arith.constant 0 : i32
    %c0_i32_0 = arith.constant 0 : i32
    %c0_i32_1 = arith.constant 0 : i32
    return %c0_i32, %c0_i32_0 : i32, i32
  }
  func.func @transform_18(%arg0: i32) -> (i32, i32) {
    %c0_i32 = arith.constant 0 : i32
    %c0_i32_0 = arith.constant 0 : i32
    %c0_i32_1 = arith.constant 0 : i32
    return %c0_i32, %c0_i32_0 : i32, i32
  }
  func.func @transform_19(%arg0: i32) -> (i32, i32) {
    %c0_i32 = arith.constant 0 : i32
    %c0_i32_0 = arith.constant 0 : i32
    %c0_i32_1 = arith.constant 0 : i32
    return %c0_i32, %c0_i32_0 : i32, i32
  }
  func.func @transform_20(%arg0: i32) -> (i32, i32) {
    %c0_i32 = arith.constant 0 : i32
    %c0_i32_0 = arith.constant 0 : i32
    %c0_i32_1 = arith.constant 0 : i32
    return %c0_i32, %c0_i32_0 : i32, i32
  }
  func.func @transform_21(%arg0: i32) -> (i32, i32) {
    %c0_i32 = arith.constant 0 : i32
    %c0_i32_0 = arith.constant 0 : i32
    %c0_i32_1 = arith.constant 0 : i32
    return %c0_i32, %c0_i32_0 : i32, i32
  }
  func.func @transform_22(%arg0: i32) -> (i32, i32) {
    %c0_i32 = arith.constant 0 : i32
    %c0_i32_0 = arith.constant 0 : i32
    %c0_i32_1 = arith.constant 0 : i32
    return %c0_i32, %c0_i32_0 : i32, i32
  }
  func.func @transform_23(%arg0: i32) -> (i32, i32, i32) {
    %c0_i32 = arith.constant 0 : i32
    %c0_i32_0 = arith.constant 0 : i32
    %c0_i32_1 = arith.constant 0 : i32
    return %arg0, %c0_i32, %c0_i32_0 : i32, i32, i32
  }
}

</mosaic_0001>

<bundles_post_ra>
// kernel: downsample2_forward.1
= control target key start
LH: loop header
LB: loop body
LE: loop exit
PB: predicated region body
PF: predicated region fallthrough
CT: control target
= control target key end

     0   :  { %s8312_s0 = inlined_call_operand.vmem [shape: bf16[2,64,256], index: 0, kind: input, shape index: {}]   ;;  %s8313_s1 = inlined_call_operand.vmem [shape: bf16[256,512], index: 1, kind: input, shape index: {}]   ;;  %s8314_s2 = inlined_call_operand.vmem [shape: f32[1,128], index: 2, kind: input, shape index: {}]   ;;  %s8315_s3 = inlined_call_operand.vmem [shape: f32[1,128], index: 3, kind: input, shape index: {}]   ;;  %s8316_s4 = inlined_call_operand.vmem [shape: bf16[128,64], index: 4, kind: input, shape index: {}]   ;;  %s8317_s5 = inlined_call_operand.vmem [shape: f32[1,64], index: 5, kind: input, shape index: {}]   ;;  %s8318_s6 = inlined_call_operand.vmem [shape: f32[1,64], index: 6, kind: input, shape index: {}]   ;;  %s8319_s7 = inlined_call_operand.vmem [shape: bf16[128,64], index: 7, kind: input, shape index: {}]   ;;  %s8320_s8 = inlined_call_operand.vmem [shape: f32[1,64], index: 8, kind: input, shape index: {}]   ;;  %s8321_s9 = inlined_call_operand.vmem [shape: f32[1,64], index: 9, kind: input, shape index: {}]   ;;  %s8322_s10 = inlined_call_operand.vmem [shape: bf16[2,64,64], index: 10, kind: input, shape index: {}]   ;;  %s8323_s11 = inlined_call_operand.vmem [shape: f32[2,1,64], index: 11, kind: input, shape index: {}]   ;;  %s8324_s12 = inlined_call_operand.vmem [shape: f32[2,1,64], index: 12, kind: input, shape index: {}]   ;;  %s8325_s13 = inlined_call_operand.vmem [shape: bf16[2,64,576], index: 13, kind: input, shape index: {}]   ;;  %s8326_s14 = inlined_call_operand.vmem [shape: f32[2,1,64], index: 14, kind: input, shape index: {}]   ;;  %s8327_s15 = inlined_call_operand.vmem [shape: f32[2,1,64], index: 15, kind: input, shape index: {}]   ;;  %s8328_s16 = inlined_call_operand.vmem [shape: bf16[64,64], index: 16, kind: input, shape index: {}]   ;;  %s8329_s17 = inlined_call_operand.vmem [shape: f32[1,64], index: 17, kind: input, shape index: {}]   ;;  %s8330_s18 = inlined_call_operand.vmem [shape: f32[1,64], index: 18, kind: input, shape index: {}]   ;;  %s8331_s19 = inlined_call_operand.vmem [shape: bf16[64,128], index: 19, kind: input, shape index: {}]   ;;  %s8332_s20 = inlined_call_operand.vmem [shape: bf16[64,128], index: 20, kind: input, shape index: {}]   ;;  %s8333_s21 = inlined_call_operand.vmem [shape: f32[1,128], index: 21, kind: input, shape index: {}]   ;;  %s8334_s22 = inlined_call_operand.vmem [shape: f32[1,128], index: 22, kind: input, shape index: {}]   ;;  %s8335_s23 = inlined_call_operand.hbm [shape: f32[2,64,128], index: 23, kind: output, shape index: {}]  }
   0x1   :  { %8406 = sst [smem:[#allocation27_spill]] %s8312_s0 }
   0x2   :  { %8407 = sst [smem:[#allocation28_spill]] %s8313_s1 }
   0x3   :  { %8408 = sst [smem:[#allocation29_spill]] %s8314_s2 }
   0x4   :  { %8409 = sst [smem:[#allocation30_spill]] %s8315_s3 }
   0x5   :  { %8410 = sst [smem:[#allocation31_spill]] %s8316_s4 }
   0x6   :  { %8411 = sst [smem:[#allocation32_spill]] %s8317_s5 }
   0x7   :  { %8412 = sst [smem:[#allocation33_spill]] %s8318_s6 }
   0x8   :  { %8413 = sst [smem:[#allocation34_spill]] %s8319_s7 }
   0x9   :  { %8414 = sst [smem:[#allocation35_spill]] %s8320_s8 }
   0xa   :  { %8415 = sst [smem:[#allocation36_spill]] %s8321_s9 }
   0xb   :  { %8416 = sst [smem:[#allocation37_spill]] %s8335_s23 }
   0xc   :  { %28 = vsyncpa [#allocation3], 0 }
   0xd   :  { %30 = vsyncpa [#allocation3 + $0x1], 0  ;;  %s6217_s4 = smov 0   ;;  %s6219_s30 = smov 0  }
   0xe   :  { %s6221_s24 = smov 0   ;;  %s6223_s25 = smov 0  }
   0xf LB: > { %8417 = sst [smem:[#allocation5_spill]] %s6078_s4  ;;  %s6238_s5 = sadd.s32 4294967295, %s6090_s25   ;;  %s6090_s25 = sphi %s6223_s25, %s8615_s25   ;;  %s6086_s24 = sphi %s6221_s24, %s8617_s24   ;;  %s6082_s30 = sphi %s6219_s30, %s8619_s30   ;;  %s6078_s4 = sphi %s6217_s4, %s8618_s4  }
  0x10   : > { %8418 = sst [smem:[#allocation6_spill]] %s6086_s24  ;;  %s4917_s1 = sadd.s32 4294967294, %s6090_s25  }
  0x11   : > { %8419 = sst [smem:[#allocation7_spill]] %s6090_s25  ;;  %s6242_s26 = sadd.s32 1, %s6090_s25  }
  0x12   : > { %8420 = sst [smem:[#allocation8_spill]] %s6242_s26  ;;  %s531_s2 = sadd.s32 1, %s6086_s24 }
  0x13   : > { %s528_s6 = ssub.s32 %s6090_s25, %s6242_s26  ;;  %p541_p0 = scmp.ne.s32.totalorder %s6086_s24, %s6082_s30 }
  0x14   : > { %p529_p1 = scmp.eq.s32.totalorder %s528_s6, 0  ;;  %p542_p2 = scmp.eq.s32.totalorder %s6238_s5, 1 }
  0x15   : > { %p547_p3 = scmp.ne.s32.totalorder %s6082_s30, %s6078_s4  ;;  %p548_p4 = scmp.eq.s32.totalorder %s4917_s1, 1 }
  0x16   : > { %s6253_s27 = scalar_select %p529_p1, %s6086_s24, %s531_s2  }
  0x17   : > { %p6255_p5 = por %p542_p2, %p541_p0  ;;  %p6259_p6 = por %p548_p4, %p547_p3 }
  0x18   : > { %8421 = sst [smem:[#allocation9_spill]] %s6253_s27  ;;  %p4920_p7 = scmp.ge.s32.totalorder %s6090_s25, 1 }
  0x19   : > { %s8423_s28 = scalar_select %p6259_p6, 1, 0 }
  0x1a   : > { %p640_p8 = scmp.lt.s32.totalorder %s6090_s25, 3 }
  0x1b   : > { %8424 = sst [smem:[#allocation10_spill]] %s8423_s28 }
  0x1c   : > { %p641_p9 = pnand %p4920_p7, %p640_p8 }
  0x1e   : > { %644 = sbr.rel (%p641_p9) target bundleno = 2455 (0x997), region = 112 }
  0x23   : > { %s8425_s0 = sld [smem:[#allocation28_spill]]  ;;  %p704_p10 = scmp.lt.s32.totalorder %s6238_s5, 1  ;;  %vm8380_vm9 = vcmask 523264  }
  0x24   : > { %s8426_s3 = sld [smem:[#allocation27_spill]]  ;;  %s8551_s28 = smov 64  }
  0x25   : > { %s705_s27 = scalar_select %p704_p10, %s6238_s5, 1 }
  0x26   : > { %s8427_s29 = sld [smem:[#allocation34_spill]] }
  0x27   : > { %s5247_s1 = sshll.u32 %s705_s27, 6  ;;  %s8428_s25 = sld [smem:[#allocation31_spill]] }
  0x28   : > { %s8434_s24 = sld [smem:[#allocation29_spill]] }
  0x29   : > { %v5540_v0 = vld [vmem:[%s8425_s0 + $0xec] ss:$16 sps:$4 sm:$0xff]   ;;  %v5542_v1 = vld [vmem:[%s8425_s0 + $0xe8] ss:$16 sps:$4 sm:$0xff]   ;;  %v5543_v2 = vld [vmem:[%s8425_s0 + $0xe4] ss:$16 sps:$4 sm:$0xff]  }
  0x2a   : > { %1264 = vmatprep.subr.bf16.mxu1 %v5540_v0  ;;  %v5545_v3 = vld [vmem:[%s8425_s0 + $0xe0] ss:$16 sps:$4 sm:$0xff]   ;;  %v5546_v4 = vld [vmem:[%s8425_s0 + $0xcc] ss:$16 sps:$4 sm:$0xff]   ;;  %v5548_v5 = vld [vmem:[%s8425_s0 + $0xc8] ss:$16 sps:$4 sm:$0xff]   ;;  %1191 = vmatprep.subr.bf16.mxu0 %v5543_v2  ;;  %s6402_s6 = scalar_lea.vmem %s8426_s3, %s5247_s1 }
  0x2b   : > { %1265 = vmatpush1.bf16.msra.mxu1 %v5542_v1  ;;  %v5549_v6 = vld [vmem:[%s8425_s0 + $0xc4] ss:$16 sps:$4 sm:$0xff]   ;;  %1192 = vmatpush1.bf16.msra.mxu0 %v5545_v3  ;;  %v5551_v7 = vld [vmem:[%s8425_s0 + $0xc0] ss:$16 sps:$4 sm:$0xff]   ;;  %v5552_v8 = vld [vmem:[%s8425_s0 + $0xac] ss:$16 sps:$4 sm:$0xff]  }
  0x2c   : > { %1266 = vmatprep.subr.bf16.mxu1 %v5546_v4  ;;  %1193 = vmatprep.subr.bf16.mxu0 %v5549_v6  ;;  %v5554_v9 = vld [vmem:[%s8425_s0 + $0xa8] ss:$16 sps:$4 sm:$0xff]   ;;  %v5555_v10 = vld [vmem:[%s8425_s0 + $0xa4] ss:$16 sps:$4 sm:$0xff]   ;;  %v5558_v11 = vld [vmem:[%s8425_s0 + $0x8c] ss:$16 sps:$4 sm:$0xff]  }
  0x2d   : > { %v5557_v12 = vld [vmem:[%s8425_s0 + $0xa0] ss:$16 sps:$4 sm:$0xff]   ;;  %v5561_v13 = vld [vmem:[%s8425_s0 + $0x84] ss:$16 sps:$4 sm:$0xff]   ;;  %v5560_v14 = vld [vmem:[%s8425_s0 + $0x88] ss:$16 sps:$4 sm:$0xff]   ;;  %s8429_s2 = smov %s8428_s25 }
  0x2e   : > { %v5564_v15 = vld [vmem:[%s8425_s0 + $0x6c] ss:$16 sps:$4 sm:$0xff]   ;;  %v5563_v16 = vld [vmem:[%s8425_s0 + $0x80] ss:$16 sps:$4 sm:$0xff]   ;;  %v5567_v17 = vld [vmem:[%s8425_s0 + $0x64] ss:$16 sps:$4 sm:$0xff]  }
  0x2f   : > { %1267 = vmatpush1.bf16.msra.mxu1 %v5548_v5  ;;  %1194 = vmatpush1.bf16.msra.mxu0 %v5551_v7  ;;  %v5566_v18 = vld [vmem:[%s8425_s0 + $0x68] ss:$16 sps:$4 sm:$0xff]   ;;  %v5570_v19 = vld [vmem:[%s8425_s0 + $0x4c] ss:$16 sps:$4 sm:$0xff]   ;;  %v5569_v20 = vld [vmem:[%s8425_s0 + $0x60] ss:$16 sps:$4 sm:$0xff]  }
  0x30   : > { %1268 = vmatprep.subr.bf16.mxu1 %v5552_v8  ;;  %1195 = vmatprep.subr.bf16.mxu0 %v5555_v10  ;;  %v5573_v21 = vld [vmem:[%s8425_s0 + $0x44] ss:$16 sps:$4 sm:$0xff]   ;;  %v5572_v22 = vld [vmem:[%s8425_s0 + $0x48] ss:$16 sps:$4 sm:$0xff]   ;;  %v5576_v23 = vld [vmem:[%s8425_s0 + $0x2c] ss:$16 sps:$4 sm:$0xff]  }
  0x31   : > { %v5575_v24 = vld [vmem:[%s8425_s0 + $0x40] ss:$16 sps:$4 sm:$0xff]   ;;  %v5579_v25 = vld [vmem:[%s8425_s0 + $0x24] ss:$16 sps:$4 sm:$0xff]   ;;  %v5578_v26 = vld [vmem:[%s8425_s0 + $0x28] ss:$16 sps:$4 sm:$0xff]  }
  0x32   : > { %v5582_v27 = vld [vmem:[%s8425_s0 + $0xc] ss:$16 sps:$4 sm:$0xff]   ;;  %v5581_v28 = vld [vmem:[%s8425_s0 + $0x20] ss:$16 sps:$4 sm:$0xff]   ;;  %v5585_v29 = vld [vmem:[%s8425_s0 + $0x4] ss:$16 sps:$4 sm:$0xff]  }
  0x33   : > { %1269 = vmatpush1.bf16.msra.mxu1 %v5554_v9  ;;  %1196 = vmatpush1.bf16.msra.mxu0 %v5557_v12  ;;  %v5584_v30 = vld [vmem:[%s8425_s0 + $0x8] ss:$16 sps:$4 sm:$0xff]   ;;  %v5588_v31 = vld [vmem:[%s8425_s0 + $0x1ec] ss:$16 sps:$4 sm:$0xff]   ;;  %v5587_v32 = vld [vmem:[%s8425_s0] ss:$16 sps:$4 sm:$0xff]  }
  0x34   : > { %1270 = vmatprep.subr.bf16.mxu1 %v5558_v11  ;;  %1197 = vmatprep.subr.bf16.mxu0 %v5561_v13  ;;  %v5591_v33 = vld [vmem:[%s8425_s0 + $0x1e4] ss:$16 sps:$4 sm:$0xff]   ;;  %v5590_v34 = vld [vmem:[%s8425_s0 + $0x1e8] ss:$16 sps:$4 sm:$0xff]   ;;  %v5594_v35 = vld [vmem:[%s8425_s0 + $0x1cc] ss:$16 sps:$4 sm:$0xff]  }
  0x35   : > { %v5593_v36 = vld [vmem:[%s8425_s0 + $0x1e0] ss:$16 sps:$4 sm:$0xff]   ;;  %v5597_v37 = vld [vmem:[%s8425_s0 + $0x1c4] ss:$16 sps:$4 sm:$0xff]   ;;  %v5596_v38 = vld [vmem:[%s8425_s0 + $0x1c8] ss:$16 sps:$4 sm:$0xff]  }
  0x36   : > { %v5600_v39 = vld [vmem:[%s8425_s0 + $0x1ac] ss:$16 sps:$4 sm:$0xff]   ;;  %v5599_v40 = vld [vmem:[%s8425_s0 + $0x1c0] ss:$16 sps:$4 sm:$0xff]   ;;  %v5603_v41 = vld [vmem:[%s8425_s0 + $0x1a4] ss:$16 sps:$4 sm:$0xff]  }
  0x37   : > { %1271 = vmatpush1.bf16.msra.mxu1 %v5560_v14  ;;  %1198 = vmatpush1.bf16.msra.mxu0 %v5563_v16  ;;  %v5602_v42 = vld [vmem:[%s8425_s0 + $0x1a8] ss:$16 sps:$4 sm:$0xff]   ;;  %v5606_v43 = vld [vmem:[%s8425_s0 + $0x18c] ss:$16 sps:$4 sm:$0xff]   ;;  %v5605_v44 = vld [vmem:[%s8425_s0 + $0x1a0] ss:$16 sps:$4 sm:$0xff]  }
  0x38   : > { %1272 = vmatprep.subr.bf16.mxu1 %v5564_v15  ;;  %1199 = vmatprep.subr.bf16.mxu0 %v5567_v17  ;;  %v5609_v45 = vld [vmem:[%s8425_s0 + $0x184] ss:$16 sps:$4 sm:$0xff]   ;;  %v5608_v46 = vld [vmem:[%s8425_s0 + $0x188] ss:$16 sps:$4 sm:$0xff]   ;;  %v5612_v48 = vld [vmem:[%s8425_s0 + $0x16c] ss:$16 sps:$4 sm:$0xff]  }
  0x39   : > { %v5638_v47 = vld [vmem:[%s6402_s6 + $0x4] ss:$8 sps:$4 sm:$0xff]   ;;  %v5611_v49 = vld [vmem:[%s8425_s0 + $0x180] ss:$16 sps:$4 sm:$0xff]   ;;  %v5614_v50 = vld [vmem:[%s8425_s0 + $0x168] ss:$16 sps:$4 sm:$0xff]  }
  0x3a   : > { %1296 = vmatprep.mubr.bf16.mxu1 %v5638_v47  ;;  %v5615_v51 = vld [vmem:[%s8425_s0 + $0x164] ss:$16 sps:$4 sm:$0xff]   ;;  %1223 = vmatprep.mubr.bf16.mxu0 %v5638_v47  ;;  %v5617_v52 = vld [vmem:[%s8425_s0 + $0x160] ss:$16 sps:$4 sm:$0xff]   ;;  %v5618_v53 = vld [vmem:[%s8425_s0 + $0x14c] ss:$16 sps:$4 sm:$0xff]  }
  0x3b   : > { %1273 = vmatpush1.bf16.msra.mxu1 %v5566_v18  ;;  %1200 = vmatpush1.bf16.msra.mxu0 %v5569_v20  ;;  %v5621_v54 = vld [vmem:[%s8425_s0 + $0x144] ss:$16 sps:$4 sm:$0xff]   ;;  %v5620_v55 = vld [vmem:[%s8425_s0 + $0x148] ss:$16 sps:$4 sm:$0xff]   ;;  %v5624_v56 = vld [vmem:[%s8425_s0 + $0x12c] ss:$16 sps:$4 sm:$0xff]  }
  0x3c   : > { %1274 = vmatprep.subr.bf16.mxu1 %v5570_v19  ;;  %1201 = vmatprep.subr.bf16.mxu0 %v5573_v21  ;;  %v5623_v57 = vld [vmem:[%s8425_s0 + $0x140] ss:$16 sps:$4 sm:$0xff]   ;;  %v5627_v58 = vld [vmem:[%s8425_s0 + $0x124] ss:$16 sps:$4 sm:$0xff]   ;;  %v5626_v59 = vld [vmem:[%s8425_s0 + $0x128] ss:$16 sps:$4 sm:$0xff]  }
  0x3d   : > { %v5630_v60 = vld [vmem:[%s8425_s0 + $0x10c] ss:$16 sps:$4 sm:$0xff]   ;;  %v5629_v61 = vld [vmem:[%s8425_s0 + $0x120] ss:$16 sps:$4 sm:$0xff]   ;;  %v5633_v62 = vld [vmem:[%s8425_s0 + $0x104] ss:$16 sps:$4 sm:$0xff]  }
  0x3e   : > { %v5632_v63 = vld [vmem:[%s8425_s0 + $0x108] ss:$16 sps:$4 sm:$0xff]   ;;  %v5635_v0 = vld [vmem:[%s8425_s0 + $0x100] ss:$16 sps:$4 sm:$0xff]   ;;  %v5639_v2 = vld [vmem:[%s6402_s6 + $0x14] ss:$8 sps:$4 sm:$0xff]  }
  0x3f   : > { %1275 = vmatpush1.bf16.msra.mxu1 %v5572_v22  ;;  %1202 = vmatpush1.bf16.msra.mxu0 %v5575_v24  ;;  %v5636_v1 = vld [vmem:[%s6402_s6] ss:$8 sps:$4 sm:$0xff]   ;;  %v5641_v3 = vld [vmem:[%s6402_s6 + $0x10] ss:$8 sps:$4 sm:$0xff]   ;;  %v5642_v4 = vld [vmem:[%s6402_s6 + $0x24] ss:$8 sps:$4 sm:$0xff]   ;;  %v710_v24 = vlaneseq }
  0x40   : > { %1276 = vmatprep.subr.bf16.mxu1 %v5576_v23  ;;  %1203 = vmatprep.subr.bf16.mxu0 %v5579_v25  ;;  %v5644_v5 = vld [vmem:[%s6402_s6 + $0x20] ss:$8 sps:$4 sm:$0xff]   ;;  %v5645_v6 = vld [vmem:[%s6402_s6 + $0x34] ss:$8 sps:$4 sm:$0xff]   ;;  %v5647_v7 = vld [vmem:[%s6402_s6 + $0x30] ss:$8 sps:$4 sm:$0xff]  }
  0x41   : > { %v5648_v8 = vld [vmem:[%s8427_s29 + $0x38] sm:$0xff]   ;;  %v5650_v10 = vld [vmem:[%s8427_s29 + $0x30] sm:$0xff]   ;;  %v5652_v12 = vld [vmem:[%s8427_s29 + $0x28] sm:$0xff]   ;;  %s8435_s4 = sld [smem:[#allocation30_spill]]  ;;  %s8394_s1 = smov 64  }
  0x42   : > { %v5649_v9 = vld [vmem:[%s8428_s25 + $0x38] sm:$0xff]   ;;  %v5651_v11 = vld [vmem:[%s8429_s2 + $0x30] sm:$0xff]   ;;  %v5653_v13 = vld [vmem:[%s8429_s2 + $0x28] sm:$0xff]   ;;  %s8449_s23 = sld [smem:[#allocation32_spill]] }
  0x43   : > { %1277 = vmatpush1.bf16.msra.mxu1 %v5578_v26  ;;  %1204 = vmatpush1.bf16.msra.mxu0 %v5581_v28  ;;  %v5654_v14 = vld [vmem:[%s8427_s29 + $0x20] sm:$0xff]   ;;  %v5656_v16 = vld [vmem:[%s8427_s29 + $0x18] sm:$0xff]   ;;  %v5658_v18 = vld [vmem:[%s8427_s29 + $0x10] sm:$0xff]   ;;  %v6522_v26 = vshrl.u32 %v710_v24, 7  ;;  %s8450_s8 = sld [smem:[#allocation35_spill]] }
  0x44   : > { %1278 = vmatprep.subr.bf16.mxu1 %v5582_v27  ;;  %1205 = vmatprep.subr.bf16.mxu0 %v5585_v29  ;;  %v5655_v15 = vld [vmem:[%s8429_s2 + $0x20] sm:$0xff]   ;;  %v5657_v17 = vld [vmem:[%s8429_s2 + $0x18] sm:$0xff]   ;;  %v5659_v19 = vld [vmem:[%s8429_s2 + $0x10] sm:$0xff]   ;;  %s8451_s25 = sld [smem:[#allocation33_spill]] }
  0x45   : > { %v5660_v20 = vld [vmem:[%s8427_s29 + $0x8] sm:$0xff]   ;;  %v5662_v22 = vld [vmem:[%s8427_s29] sm:$0xff]   ;;  %v6529_v29 = vadd.s32 16, %v6522_v26  ;;  %vm8384_vm0 = vcmp.lt.s32.totalorder %v6522_v26, 1  ;;  %s8453_s9 = sld [smem:[#allocation36_spill]]  ;;  %vm8385_vm10 = vcmp.lt.s32.totalorder %v6522_v26, 7 }
  0x46   : > { %v5661_v21 = vld [vmem:[%s8429_s2 + $0x8] sm:$0xff]   ;;  %v5663_v23 = vld [vmem:[%s8429_s2] sm:$0xff]   ;;  %s8611_s2 = sld [smem:[#allocation37_spill]] }
  0x47   : > { %1279 = vmatpush1.bf16.msra.mxu1 %v5584_v30  ;;  %1206 = vmatpush1.bf16.msra.mxu0 %v5587_v32  ;;  %v6536_v32 = vadd.s32 24, %v6522_v26 }
  0x48   : > { %1280 = vmatprep.subr.bf16.mxu1 %v5588_v31  ;;  %1207 = vmatprep.subr.bf16.mxu0 %v5591_v33 }
  0x4a   : > { %s8452_s0 = smov %s8451_s25 }
  0x4b   : > { %1281 = vmatpush2.bf16.msra.mxu1 %v5590_v34  ;;  %1208 = vmatpush2.bf16.msra.mxu0 %v5593_v36 }
  0x4c   : > { %1282 = vmatprep.subr.bf16.mxu1 %v5594_v35  ;;  %1209 = vmatprep.subr.bf16.mxu0 %v5597_v37  ;;  %v8356_v35 = vand.u32 7, %v6529_v29 }
  0x4e   : > { %vm6550_vm1 = vcmp.ge.s32.totalorder %v8356_v35, 1 }
  0x4f   : > { %1283 = vmatpush2.bf16.msra.mxu1 %v5596_v38  ;;  %1210 = vmatpush2.bf16.msra.mxu0 %v5599_v40 }
  0x50   : > { %1284 = vmatprep.subr.bf16.mxu1 %v5600_v39  ;;  %1211 = vmatprep.subr.bf16.mxu0 %v5603_v41  ;;  %v8355_v39 = vand.u32 7, %v6536_v32 }
  0x52   : > { %vm6572_vm2 = vcmp.ge.s32.totalorder %v8355_v39, 1 }
  0x53   : > { %1285 = vmatpush2.bf16.msra.mxu1 %v5602_v42  ;;  %1212 = vmatpush2.bf16.msra.mxu0 %v5605_v44 }
  0x54   : > { %1286 = vmatprep.subr.bf16.mxu1 %v5606_v43  ;;  %1213 = vmatprep.subr.bf16.mxu0 %v5609_v45  ;;  %v6545_v43 = vadd.s32 32, %v6522_v26 }
  0x57   : > { %1287 = vmatpush2.bf16.msra.mxu1 %v5608_v46  ;;  %1214 = vmatpush2.bf16.msra.mxu0 %v5611_v49 }
  0x58   : > { %1288 = vmatprep.subr.bf16.mxu1 %v5612_v48  ;;  %1215 = vmatprep.subr.bf16.mxu0 %v5615_v51  ;;  %v6563_v51 = vadd.s32 8, %v6522_v26 }
  0x5b   : > { %1289 = vmatpush2.bf16.msra.mxu1 %v5614_v50  ;;  %1216 = vmatpush2.bf16.msra.mxu0 %v5617_v52 }
  0x5c   : > { %1290 = vmatprep.subr.bf16.mxu1 %v5618_v53  ;;  %1217 = vmatprep.subr.bf16.mxu0 %v5621_v54 }
  0x5f   : > { %1291 = vmatpush2.bf16.msra.mxu1 %v5620_v55  ;;  %1218 = vmatpush2.bf16.msra.mxu0 %v5623_v57  ;;  %v6568_v55 = vadd.s32 40, %v6522_v26 }
  0x60   : > { %1292 = vmatprep.subr.bf16.mxu1 %v5624_v56  ;;  %1219 = vmatprep.subr.bf16.mxu0 %v5627_v58 }
  0x63   : > { %1293 = vmatpush2.bf16.msra.mxu1 %v5626_v59  ;;  %1220 = vmatpush2.bf16.msra.mxu0 %v5629_v61  ;;  %v8354_v59 = vand.u32 7, %v6545_v43  ;;  %v6582_v61 = vld [vmem:[%s8434_s24] ss:$0 sm:$0xff] }
  0x64   : > { %1294 = vmatprep.subr.bf16.mxu1 %v5630_v60  ;;  %1221 = vmatprep.subr.bf16.mxu0 %v5633_v62 }
  0x65   : > { %vm6608_vm3 = vcmp.ge.s32.totalorder %v8354_v59, 1 }
  0x67   : > { %1295 = vmatpush2.bf16.msra.mxu1 %v5632_v63  ;;  %1222 = vmatpush2.bf16.msra.mxu0 %v5635_v0 }
  0x68   : > { %5353 = vmatprep.subr.bf16.mxu1 %v5648_v8  ;;  %5329 = vmatprep.subr.bf16.mxu0 %v5649_v9 }
  0x6a   : > { %1297 = vmatmul.mubr.bf16.vlgmr.msra.gmra.mxu1 %v5636_v1  ;;  %1224 = vmatmul.mubr.bf16.vlgmr.msra.gmra.mxu0 %v5636_v1  ;;  %v6587_v1 = vadd.s32 48, %v6522_v26 }
  0x6b   : > { %1306 = vmatprep.mubr.bf16.mxu1 %v5639_v2  ;;  %1233 = vmatprep.mubr.bf16.mxu0 %v5639_v2  ;;  %v6590_v2 = vadd.s32 56, %v6522_v26 }
  0x6c   : > { %5354 = vmatpush3.bf16.msra.mxu1 %v5648_v8  ;;  %5330 = vmatpush3.bf16.msra.mxu0 %v5649_v9 }
  0x6d   : > { %5355 = vmatprep.subr.bf16.mxu1 %v5650_v10  ;;  %5331 = vmatprep.subr.bf16.mxu0 %v5651_v11 }
  0x70   : > { %5356 = vmatpush3.bf16.msra.mxu1 %v5650_v10  ;;  %5332 = vmatpush3.bf16.msra.mxu0 %v5651_v11  ;;  %v8352_v11 = vand.u32 7, %v6568_v55 }
  0x71   : > { %5357 = vmatprep.subr.bf16.mxu1 %v5652_v12  ;;  %5333 = vmatprep.subr.bf16.mxu0 %v5653_v13 }
  0x72   : > { %1307 = vmatmul.mubr.bf16.gmra.mxu1 %v5641_v3  ;;  %1234 = vmatmul.mubr.bf16.gmra.mxu0 %v5641_v3  ;;  %vm6628_vm5 = vcmp.ge.s32.totalorder %v8352_v11, 1 }
  0x73   : > { %1316 = vmatprep.mubr.bf16.mxu1 %v5642_v4  ;;  %1243 = vmatprep.mubr.bf16.mxu0 %v5642_v4 }
  0x74   : > { %5358 = vmatpush3.bf16.msra.mxu1 %v5652_v12  ;;  %5334 = vmatpush3.bf16.msra.mxu0 %v5653_v13 }
  0x75   : > { %5359 = vmatprep.subr.bf16.mxu1 %v5654_v14  ;;  %5335 = vmatprep.subr.bf16.mxu0 %v5655_v15 }
  0x78   : > { %5360 = vmatpush3.bf16.msra.mxu1 %v5654_v14  ;;  %5336 = vmatpush3.bf16.msra.mxu0 %v5655_v15  ;;  %v6602_v15 = vld [vmem:[%s8435_s4] ss:$0 sm:$0xff]  ;;  %s701_s4 = sand.u32 1, %s6082_s30  }
  0x79   : > { %5361 = vmatprep.subr.bf16.mxu1 %v5656_v16  ;;  %5337 = vmatprep.subr.bf16.mxu0 %v5657_v17 }
  0x7a   : > { %1317 = vmatmul.mubr.bf16.gmra.mxu1 %v5644_v5  ;;  %1244 = vmatmul.mubr.bf16.gmra.mxu0 %v5644_v5 }
  0x7b   : > { %1326 = vmatprep.mubr.bf16.mxu1 %v5645_v6  ;;  %1253 = vmatprep.mubr.bf16.mxu0 %v5645_v6 }
  0x7c   : > { %5362 = vmatpush3.bf16.msra.mxu1 %v5656_v16  ;;  %5338 = vmatpush3.bf16.msra.mxu0 %v5657_v17 }
  0x7d   : > { %5363 = vmatprep.subr.bf16.mxu1 %v5658_v18  ;;  %5339 = vmatprep.subr.bf16.mxu0 %v5659_v19 }
  0x80   : > { %5364 = vmatpush3.bf16.msra.mxu1 %v5658_v18  ;;  %5340 = vmatpush3.bf16.msra.mxu0 %v5659_v19 }
  0x81   : > { %5365 = vmatprep.subr.bf16.mxu1 %v5660_v20  ;;  %5341 = vmatprep.subr.bf16.mxu0 %v5661_v21 }
  0x82   : > { %1327 = vmatmul.mubr.bf16.gmra.mxu1 %v5647_v7  ;;  %1254 = vmatmul.mubr.bf16.gmra.mxu0 %v5647_v7  ;;  %v8357_v7 = vand.u32 7, %v6563_v51 }
  0x84   : > { %5366 = vmatpush3.bf16.msra.mxu1 %v5660_v20  ;;  %5342 = vmatpush3.bf16.msra.mxu0 %v5661_v21  ;;  %v8351_v20 = vand.u32 7, %v6587_v1  ;;  %v8350_v21 = vand.u32 7, %v6590_v2  ;;  %vm6620_vm4 = vcmp.ge.s32.totalorder %v8357_v7, 1 }
  0x85   : > { %5367 = vmatprep.subr.bf16.mxu1 %v5662_v22  ;;  %5343 = vmatprep.subr.bf16.mxu0 %v5663_v23 }
  0x86   : > { %vm6641_vm6 = vcmp.ge.s32.totalorder %v8351_v20, 1  ;;  %vm6651_vm7 = vcmp.ge.s32.totalorder %v8350_v21, 1 }
  0x88   : > { %5368 = vmatpush3.bf16.msra.mxu1 %v5662_v22  ;;  %5344 = vmatpush3.bf16.msra.mxu0 %v5663_v23 }
 0x12a   : > { %v6520_v25 = vpop.f32.mrf.mxu1  ;;  %v6524_v27 = vpop.f32.mrf.mxu0 }
 0x12c   : > { %v6526_v28 = vpop.f32.mrf.mxu1  ;;  %v6531_v30 = vpop.f32.mrf.mxu0 }
 0x12d   : > { %v1426_v40 = vrot.slane %v6526_v28, 7 }
 0x12e   : > { %v6533_v31 = vpop.f32.mrf.mxu1  ;;  %v6538_v33 = vpop.f32.mrf.mxu0 }
 0x12f   : > { %v1370_v41 = vrot.slane %v6533_v31, 7 }
 0x130   : > { %v1304_v34 = vpop.f32.mrf.mxu1  ;;  %v1231_v37 = vpop.f32.mrf.mxu0 }
 0x131   : > { %v1427_v36 = vrot.slane %v1304_v34, 7 }
 0x132   : > { %v1308_v38 = vpop.f32.mrf.mxu1  ;;  %v1235_v45 = vpop.f32.mrf.mxu0 }
 0x133   : > { %v1371_v42 = vrot.slane %v1308_v38, 7  ;;  %v1440_v47 = vsel %vm8384_vm0, %v1426_v40, %v1427_v36  ;;  %v1363_v48 = vadd.f32 %v1235_v45, %v1231_v37 }
 0x134   : > { %v1310_v46 = vpop.f32.mrf.mxu1  ;;  %v1237_v53 = vpop.f32.mrf.mxu0  ;;  %v1460_v60 = vsel %vm6550_vm1, %v1440_v47, 0.0 }
 0x135   : > { %v1383_v49 = vsel %vm8384_vm0, %v1370_v41, %v1371_v42  ;;  %v1428_v50 = vrot.slane %v1310_v46, 7 }
 0x136   : > { %v1404_v52 = vsel %vm6550_vm1, %v1383_v49, 0.0  ;;  %v1312_v54 = vpop.f32.mrf.mxu1  ;;  %v1239_v63 = vpop.f32.mrf.mxu0 }
 0x137   : > { %v1412_v56 = vadd.f32 %v1404_v52, %v1363_v48  ;;  %v1372_v57 = vrot.slane %v1312_v54, 7  ;;  %v1439_v62 = vsel %vm8384_vm0, %v1427_v36, %v1428_v50  ;;  %v1364_v4 = vadd.f32 %v1239_v63, %v1237_v53 }
 0x138   : > { %v1314_v0 = vpop.f32.mrf.mxu1  ;;  %v1241_v9 = vpop.f32.mrf.mxu0  ;;  %v1461_v16 = vsel %vm6572_vm2, %v1439_v62, 0.0  ;;  %v8438_v36 = vmov 0  ;;  %v1369_v52 = vrot.slane %v6520_v25, 7 }
 0x139   : > { %v1468_v3 = vadd.f32 %v1460_v60, %v1412_v56  ;;  %v1382_v5 = vsel %vm8384_vm0, %v1371_v42, %v1372_v57  ;;  %v1429_v6 = vrot.slane %v1314_v0, 7  ;;  %v8439_v36 = vsel %vm6620_vm4, 4294967295, %v8438_v36 }
 0x13a   : > { %v1405_v8 = vsel %vm6572_vm2, %v1382_v5, 0.0  ;;  %v1318_v10 = vpop.f32.mrf.mxu1  ;;  %v1245_v18 = vpop.f32.mrf.mxu0  ;;  %8440 = vst [vmem:[#allocation11_spill] sm:$0xff] %v8439_v36  ;;  %v8353_v60 = vand.u32 7, %v6522_v26 }
 0x13b   : > { %v1483_v12 = vmul.f32 %v6582_v61, %v1468_v3  ;;  %v1413_v13 = vadd.f32 %v1405_v8, %v1364_v4  ;;  %v1373_v14 = vrot.slane %v1318_v10, 7  ;;  %v1438_v23 = vsel %vm8384_vm0, %v1428_v50, %v1429_v6 }
 0x13c   : > { %v1320_v19 = vpop.f32.mrf.mxu1  ;;  %v1365_v24 = vadd.f32 %v1245_v18, %v1241_v9  ;;  %v1247_v42 = vpop.f32.mrf.mxu0  ;;  %v1462_v53 = vsel %vm6608_vm3, %v1438_v23, 0.0  ;;  %v1384_v3 = vsel %vm8384_vm0, %v1369_v52, %v1370_v41  ;;  %v1362_v41 = vadd.f32 %v6538_v33, %v6531_v30 }
 0x13d   : > { %v1469_v22 = vadd.f32 %v1461_v16, %v1413_v13  ;;  %v1381_v34 = vsel %vm8384_vm0, %v1372_v57, %v1373_v14  ;;  %v1430_v38 = vrot.slane %v1320_v19, 7  ;;  %v6633_v47 = vadd.f32 %v6602_v15, %v1483_v12 }
 0x13e   : > { %v1406_v37 = vsel %vm6608_vm3, %v1381_v34, 0.0  ;;  %v1322_v45 = vpop.f32.mrf.mxu1  ;;  %v1249_v54 = vpop.f32.mrf.mxu0  ;;  %vm6672_vm8 = vcmp.ge.s32.totalorder %v8353_v60, 1  ;;  %v1403_v33 = vsel %vm6620_vm4, %v1384_v3, 0.0 }
 0x13f   : > { %v1484_v48 = vmul.f32 %v6582_v61, %v1469_v22  ;;  %v1414_v49 = vadd.f32 %v1406_v37, %v1365_v24  ;;  %v1374_v50 = vrot.slane %v1322_v45, 7  ;;  %v1366_v0 = vadd.f32 %v1249_v54, %v1247_v42 }
 0x140   : > { %v1324_v56 = vpop.f32.mrf.mxu1  ;;  %v1437_v4 = vsel %vm8384_vm0, %v1429_v6, %v1430_v38  ;;  %v1251_v9 = vpop.f32.mrf.mxu0  ;;  %v1506_v12 = vmin.f32 %v6633_v47, 20.0 }
 0x141   : > { %v6647_v62 = vadd.f32 %v6602_v15, %v1484_v48  ;;  %v1470_v63 = vadd.f32 %v1462_v53, %v1414_v49  ;;  %v1380_v5 = vsel %vm8384_vm0, %v1373_v14, %v1374_v50  ;;  %v1431_v8 = vrot.slane %v1324_v56, 7 }
 0x142   : > { %v1328_v10 = vpop.f32.mrf.mxu1  ;;  %v1407_v31 = vsel %vm6628_vm5, %v1380_v5, 0.0  ;;  %v1255_v19 = vpop.f32.mrf.mxu0  ;;  %v8447_v14 = vmov 0  ;;  %v1463_v24 = vsel %vm6628_vm5, %v1437_v4, 0.0  ;;  %v1516_v53 = vmul.f32 1.442695, %v1506_v12 }
 0x143   : > { %v1507_v13 = vmin.f32 %v6647_v62, 20.0  ;;  %v1485_v16 = vmul.f32 %v6582_v61, %v1470_v63  ;;  %v1415_v18 = vadd.f32 %v1407_v31, %v1366_v0  ;;  %v1375_v6 = vrot.slane %v1328_v10, 7 }
 0x144   : > { %v1330_v22 = vpop.f32.mrf.mxu1  ;;  %v8448_v14 = vsel %vm6672_vm8, 4294967295, %v8447_v14  ;;  %v1436_v34 = vsel %vm8384_vm0, %v1430_v38, %v1431_v8  ;;  %v1367_v30 = vadd.f32 %v1255_v19, %v1251_v9  ;;  %v1257_v48 = vpop.f32.mrf.mxu0  ;;  %5740 = vpow2.f32 %v1516_v53 }
 0x145   : > { %v6677_v23 = vadd.f32 %v6602_v15, %v1485_v16  ;;  %v1471_v37 = vadd.f32 %v1463_v24, %v1415_v18  ;;  %v1379_v42 = vsel %vm8384_vm0, %v1374_v50, %v1375_v6  ;;  %v1432_v45 = vrot.slane %v1330_v22, 7 }
 0x146   : > { %v1332_v49 = vpop.f32.mrf.mxu1  ;;  %v1518_v54 = vmul.f32 1.442695, %v1507_v13  ;;  %v1408_v56 = vsel %vm6641_vm6, %v1379_v42, 0.0  ;;  %v1464_v3 = vsel %vm6641_vm6, %v1436_v34, 0.0  ;;  %v1259_v5 = vpop.f32.mrf.mxu0 }
 0x147   : > { %v1376_v63 = vrot.slane %v1332_v49, 7  ;;  %v1508_v0 = vmin.f32 %v6677_v23, 20.0  ;;  %v1486_v38 = vmul.f32 %v6582_v61, %v1471_v37  ;;  %v1416_v4 = vadd.f32 %v1408_v56, %v1367_v30 }
 0x148   : > { %v1435_v50 = vsel %vm8384_vm0, %v1431_v8, %v1432_v45  ;;  %v1368_v10 = vadd.f32 %v1259_v5, %v1257_v48  ;;  %v1334_v13 = vpop.f32.mrf.mxu1  ;;  %v1261_v22 = vpop.f32.mrf.mxu0  ;;  %v1411_v8 = vadd.f32 %v1403_v33, %v1362_v41  ;;  %5742 = vpow2.f32 %v1518_v54 }
 0x149   : > { %v1385_v9 = vsel %vm8384_vm0, %v1376_v63, %v1369_v52  ;;  %v1378_v12 = vsel %vm8384_vm0, %v1375_v6, %v1376_v63  ;;  %v6700_v16 = vadd.f32 %v6602_v15, %v1486_v38  ;;  %v1472_v31 = vadd.f32 %v1464_v3, %v1416_v4 }
 0x14a   : > { %v1402_v18 = vsel %vm6672_vm8, %v1385_v9, 0.0  ;;  %v1409_v19 = vsel %vm6651_vm7, %v1378_v12, 0.0  ;;  %v1465_v30 = vsel %vm6651_vm7, %v1435_v50, 0.0  ;;  %v1433_v37 = vrot.slane %v1334_v13, 7 }
 0x14b   : > { %v1410_v24 = vadd.f32 %v1402_v18, %v6524_v27  ;;  %v1417_v52 = vadd.f32 %v1409_v19, %v1368_v10  ;;  %v1509_v34 = vmin.f32 %v6700_v16, 20.0  ;;  %v1487_v6 = vmul.f32 %v6582_v61, %v1472_v31 }
 0x14c   : > { %v1520_v42 = vmul.f32 1.442695, %v1508_v0  ;;  %v1441_v27 = vsel %vm8384_vm0, %v1433_v37, %v1426_v40 }
 0x14d   : > { %v1481_v45 = vmul.f32 %v6582_v61, %v1410_v24  ;;  %v1473_v48 = vadd.f32 %v1465_v30, %v1417_v52  ;;  %v1522_v49 = vmul.f32 1.442695, %v1509_v34  ;;  %v6713_v41 = vadd.f32 %v6602_v15, %v1487_v6 }
 0x14e   : > { %v1459_v56 = vsel %vm6620_vm4, %v1441_v27, 0.0 }
 0x14f   : > { %v1488_v33 = vmul.f32 %v6582_v61, %v1473_v48  ;;  %v6723_v53 = vadd.f32 %v6602_v15, %v1481_v45  ;;  %5744 = vpow2.f32 %v1522_v49  ;;  %v1467_v63 = vadd.f32 %v1459_v56, %v1411_v8 }
 0x150   : > { %5746 = vpow2.f32 %v1520_v42  ;;  %v1510_v54 = vmin.f32 %v6713_v41, 20.0 }
 0x151   : > { %v6727_v0 = vadd.f32 %v6602_v15, %v1488_v33  ;;  %v1504_v28 = vmin.f32 %v6723_v53, 20.0  ;;  %v1482_v40 = vmul.f32 %v6582_v61, %v1467_v63  ;;  %v5741_v12 = vpop.eup %5740 }
 0x152   : > { %v1524_v5 = vmul.f32 1.442695, %v1510_v54  ;;  %v1530_v18 = vadd.f32 1.0, %v5741_v12 }
 0x153   : > { %v1511_v38 = vmin.f32 %v6727_v0, 20.0  ;;  %v1512_v4 = vmul.f32 1.442695, %v1504_v28  ;;  %v1497_v3 = vadd.f32 %v6602_v15, %v1482_v40 }
 0x154   : > { %v1538_v8 = vmul.f32 %v1530_v18, %v1530_v18 }
 0x155   : > { %v1526_v50 = vmul.f32 1.442695, %v1511_v38  ;;  %v1505_v9 = vmin.f32 %v1497_v3, 20.0  ;;  %5748 = vpow2.f32 %v1512_v4  ;;  %v5743_v13 = vpop.eup %5742 }
 0x156   : > { %v1531_v22 = vadd.f32 1.0, %v5743_v13  ;;  %v1562_v37 = vadd.f32 1.0, %v1538_v8 }
 0x157   : > { %5750 = vpow2.f32 %v1526_v50  ;;  %v1514_v10 = vmul.f32 1.442695, %v1505_v9 }
 0x158   : > { %5752 = vpow2.f32 %v1524_v5  ;;  %v1539_v52 = vmul.f32 %v1531_v22, %v1531_v22 }
 0x159   : > { %5754 = vpow2.f32 %v1514_v10 }
 0x15a   : > { %v1563_v48 = vadd.f32 1.0, %v1539_v52  ;;  %5756 = vrcp.f32 %v1562_v37  ;;  %v5001_v12 = vadd.f32 -1.0, %v1539_v52 }
 0x15c   : > { %v5745_v31 = vpop.eup %5744  ;;  %5758 = vrcp.f32 %v1563_v48 }
 0x15d   : > { %v5747_v19 = vpop.eup %5746  ;;  %v1533_v61 = vadd.f32 1.0, %v5745_v31 }
 0x15e   : > { %v1532_v24 = vadd.f32 1.0, %v5747_v19 }
 0x15f   : > { %v1541_v15 = vmul.f32 %v1533_v61, %v1533_v61  ;;  %v5000_v61 = vadd.f32 -1.0, %v1538_v8 }
 0x160   : > { %v1540_v42 = vmul.f32 %v1532_v24, %v1532_v24 }
 0x161   : > { %v1565_v33 = vadd.f32 1.0, %v1541_v15  ;;  %v5003_v19 = vadd.f32 -1.0, %v1541_v15  ;;  %v1554_v52 = vmul.f32 %v5000_v61, %v6633_v47 }
 0x162   : > { %v5749_v34 = vpop.eup %5748  ;;  %v1564_v28 = vadd.f32 1.0, %v1540_v42 }
 0x163   : > { %v1528_v6 = vadd.f32 1.0, %v5749_v34  ;;  %5760 = vrcp.f32 %v1565_v33  ;;  %v5002_v34 = vadd.f32 -1.0, %v1540_v42 }
 0x164   : > { %v5751_v30 = vpop.eup %5750 }
 0x165   : > { %v5753_v45 = vpop.eup %5752  ;;  %v1536_v49 = vmul.f32 %v1528_v6, %v1528_v6  ;;  %v1535_v56 = vadd.f32 1.0, %v5751_v30  ;;  %v1555_v30 = vmul.f32 %v5001_v12, %v6647_v62  ;;  %v1556_v15 = vmul.f32 %v5002_v34, %v6677_v23  ;;  %v5014_v12 = vld [vmem:[%s8449_s23] ss:$0 sm:$0xff] }
 0x166   : > { %v5755_v27 = vpop.eup %5754  ;;  %v1534_v40 = vadd.f32 1.0, %v5753_v45 }
 0x167   : > { %v1529_v63 = vadd.f32 1.0, %v5755_v27  ;;  %v1560_v54 = vadd.f32 1.0, %v1536_v49  ;;  %v1543_v4 = vmul.f32 %v1535_v56, %v1535_v56  ;;  %v5757_v13 = vpop.eup %5756  ;;  %v4998_v31 = vadd.f32 -1.0, %v1536_v49 }
 0x168   : > { %v1542_v50 = vmul.f32 %v1534_v40, %v1534_v40  ;;  %v1557_v27 = vmul.f32 %v5003_v19, %v6700_v16  ;;  %v6768_v19 = vld [vmem:[%s8453_s9] ss:$0 sm:$0xff] }
 0x169   : > { %v1537_v38 = vmul.f32 %v1529_v63, %v1529_v63  ;;  %5762 = vrcp.f32 %v1560_v54  ;;  %v1567_v9 = vadd.f32 1.0, %v1543_v4  ;;  %v5759_v22 = vpop.eup %5758  ;;  %v1552_v45 = vmul.f32 %v4998_v31, %v6723_v53  ;;  %v6763_v31 = vld [vmem:[%s8451_s25] ss:$0 sm:$0xff] }
 0x16a   : > { %5764 = vrcp.f32 %v1564_v28  ;;  %v1566_v10 = vadd.f32 1.0, %v1542_v50  ;;  %v1579_v56 = vmul.f32 %v5759_v22, %v1555_v30  ;;  %v1578_v54 = vmul.f32 %v5757_v13, %v1554_v52  ;;  %v6758_v13 = vld [vmem:[%s8450_s8] ss:$0 sm:$0xff] }
 0x16b   : > { %v1561_v5 = vadd.f32 1.0, %v1537_v38  ;;  %v4999_v18 = vadd.f32 -1.0, %v1537_v38  ;;  %v5005_v42 = vadd.f32 -1.0, %v1543_v4  ;;  %v5004_v38 = vadd.f32 -1.0, %v1542_v50  ;;  %v5664_v50 = vld [vmem:[%s8322_s10 + $0x18] sm:$0xff]  }
 0x16c   : > { %v1585_v62 = vpack.c.bf16 %v1579_v56, %v1578_v54  ;;  %5377 = vmatprep.subr.bf16.mxu0 %v5664_v50 }
 0x16d   : > { %5766 = vrcp.f32 %v1561_v5  ;;  %v1553_v48 = vmul.f32 %v4999_v18, %v1497_v3  ;;  %v1559_v47 = vmul.f32 %v5005_v42, %v6727_v0  ;;  %v1558_v23 = vmul.f32 %v5004_v38, %v6713_v41  ;;  %v5665_v0 = vld [vmem:[%s8322_s10 + $0x10] sm:$0xff]   ;;  %v5666_v41 = vld [vmem:[%s8322_s10 + $0x8] sm:$0xff]  }
 0x16e   : > { %5768 = vrcp.f32 %v1567_v9 }
 0x16f   : > { %5770 = vrcp.f32 %v1566_v10  ;;  %v5667_v10 = vld [vmem:[%s8322_s10] sm:$0xff]  }
 0x170   : > { %v5761_v24 = vpop.eup %5760 }
 0x171   : > { %v1581_v8 = vmul.f32 %v5761_v24, %v1557_v27 }
 0x176   : > { %v5763_v6 = vpop.eup %5762 }
 0x177   : > { %v5765_v37 = vpop.eup %5764  ;;  %v1576_v49 = vmul.f32 %v5763_v6, %v1552_v45 }
 0x178   : > { %v1580_v40 = vmul.f32 %v5765_v37, %v1556_v15 }
 0x17a   : > { %v5767_v33 = vpop.eup %5766  ;;  %v1586_v53 = vpack.c.bf16 %v1581_v8, %v1580_v40 }
 0x17b   : > { %v1577_v63 = vmul.f32 %v5767_v33, %v1553_v48  ;;  %v5769_v5 = vpop.eup %5768 }
 0x17c   : > { %v5771_v16 = vpop.eup %5770  ;;  %v1583_v3 = vmul.f32 %v5769_v5, %v1559_v47 }
 0x17d   : > { %v1584_v28 = vpack.c.bf16 %v1577_v63, %v1576_v49  ;;  %v1582_v9 = vmul.f32 %v5771_v16, %v1558_v23 }
 0x17f   : > { %5345 = vmatprep.mubr.bf16.mxu0 %v1584_v28  ;;  %5369 = vmatprep.mubr.bf16.mxu1 %v1584_v28  ;;  %v1587_v4 = vpack.c.bf16 %v1583_v3, %v1582_v9 }
 0x180   : > { %5346 = vmatmul.mubr.bf16.vlgmr.msra.gmra.mxu0 %v1585_v62  ;;  %5370 = vmatmul.mubr.bf16.vlgmr.msra.gmra.mxu1 %v1585_v62 }
 0x181   : > { %5349 = vmatprep.mubr.bf16.mxu0 %v1586_v53  ;;  %5373 = vmatprep.mubr.bf16.mxu1 %v1586_v53 }
 0x182   : > { %5378 = vmatpush3.bf16.msra.mxu0 %v5664_v50 }
 0x183   : > { %5379 = vmatprep.subr.bf16.mxu0 %v5665_v0 }
 0x186   : > { %5380 = vmatpush3.bf16.msra.mxu0 %v5665_v0 }
 0x187   : > { %5381 = vmatprep.subr.bf16.mxu0 %v5666_v41 }
 0x188   : > { %5350 = vmatmul.mubr.bf16.gmra.mxu0 %v1587_v4  ;;  %5374 = vmatmul.mubr.bf16.gmra.mxu1 %v1587_v4 }
 0x18a   : > { %5382 = vmatpush3.bf16.msra.mxu0 %v5666_v41 }
 0x18b   : > { %5383 = vmatprep.subr.bf16.mxu0 %v5667_v10 }
 0x18e   : > { %5384 = vmatpush3.bf16.msra.mxu0 %v5667_v10 }
 0x240   : > { %v5347_v18 = vpop.f32.mrf.mxu0  ;;  %v5371_v22 = vpop.f32.mrf.mxu1 }
 0x241   : > { %v1727_v61 = vmul.f32 %v5347_v18, %v5014_v12  ;;  %v1966_v24 = vmul.f32 %v5371_v22, %v6758_v13 }
 0x242   : > { %v1688_v34 = vpop.f32.mrf.mxu0  ;;  %v1927_v6 = vpop.f32.mrf.mxu1 }
 0x243   : > { %v6772_v30 = vadd.f32 %v6763_v31, %v1727_v61  ;;  %v6775_v37 = vadd.f32 %v6768_v19, %v1966_v24  ;;  %v1725_v45 = vmul.f32 %v5014_v12, %v1688_v34  ;;  %v1964_v48 = vmul.f32 %v6758_v13, %v1927_v6 }
 0x244   : > { %v5348_v27 = vpop.f32.mrf.mxu0  ;;  %v5372_v33 = vpop.f32.mrf.mxu1 }
 0x245   : > { %v1749_v52 = vmin.f32 %v6772_v30, 20.0  ;;  %v1988_v56 = vmin.f32 %v6775_v37, 20.0  ;;  %v6781_v49 = vadd.f32 %v6763_v31, %v1725_v45  ;;  %v6784_v63 = vadd.f32 %v6768_v19, %v1964_v48 }
 0x246   : > { %v1728_v15 = vmul.f32 %v5348_v27, %v5014_v12  ;;  %v1967_v8 = vmul.f32 %v5372_v33, %v6758_v13  ;;  %v1691_v54 = vpop.f32.mrf.mxu0  ;;  %v1930_v42 = vpop.f32.mrf.mxu1 }
 0x247   : > { %v1759_v28 = vmul.f32 1.442695, %v1749_v52  ;;  %v1998_v40 = vmul.f32 1.442695, %v1988_v56  ;;  %v1747_v62 = vmin.f32 %v6781_v49, 20.0  ;;  %v1986_v38 = vmin.f32 %v6784_v63, 20.0 }
 0x248   : > { %v6790_v5 = vadd.f32 %v6763_v31, %v1728_v15  ;;  %v6793_v53 = vadd.f32 %v6768_v19, %v1967_v8  ;;  %v1726_v47 = vmul.f32 %v5014_v12, %v1691_v54  ;;  %v1965_v16 = vmul.f32 %v6758_v13, %v1930_v42  ;;  %v5351_v23 = vpop.f32.mrf.mxu0  ;;  %v5375_v3 = vpop.f32.mrf.mxu1 }
 0x249   : > { %5772 = vpow2.f32 %v1759_v28  ;;  %v1755_v9 = vmul.f32 1.442695, %v1747_v62  ;;  %v1994_v4 = vmul.f32 1.442695, %v1986_v38  ;;  %v1731_v50 = vmul.f32 %v5351_v23, %v5014_v12 }
 0x24a   : > { %5774 = vpow2.f32 %v1998_v40  ;;  %v1750_v0 = vmin.f32 %v6790_v5, 20.0  ;;  %v1989_v41 = vmin.f32 %v6793_v53, 20.0  ;;  %v6799_v10 = vadd.f32 %v6763_v31, %v1726_v47  ;;  %v6801_v18 = vpop.f32.mrf.mxu0  ;;  %v1943_v22 = vpop.f32.mrf.mxu1 }
 0x24b   : > { %8454 = vst [vmem:[#allocation12_spill] sm:$0xff] %v6801_v18  ;;  %5776 = vpow2.f32 %v1755_v9  ;;  %v6804_v61 = vadd.f32 %v6768_v19, %v1965_v16  ;;  %v6807_v24 = vadd.f32 %v6763_v31, %v1731_v50  ;;  %v1970_v34 = vmul.f32 %v5375_v3, %v6758_v13 }
 0x24c   : > { %5778 = vpow2.f32 %v1994_v4  ;;  %v1761_v6 = vmul.f32 1.442695, %v1750_v0  ;;  %v2000_v45 = vmul.f32 1.442695, %v1989_v41  ;;  %v1748_v48 = vmin.f32 %v6799_v10, 20.0  ;;  %v5352_v27 = vpop.f32.mrf.mxu0  ;;  %v5376_v33 = vpop.f32.mrf.mxu1 }
 0x24d   : > { %v1987_v52 = vmin.f32 %v6804_v61, 20.0  ;;  %v1753_v56 = vmin.f32 %v6807_v24, 20.0  ;;  %v6814_v15 = vadd.f32 %v6768_v19, %v1970_v34  ;;  %v1968_v54 = vmul.f32 %v6758_v13, %v1943_v22 }
 0x24e   : > { %5780 = vpow2.f32 %v1761_v6  ;;  %v1757_v8 = vmul.f32 1.442695, %v1748_v48  ;;  %v1732_v42 = vmul.f32 %v5352_v27, %v5014_v12  ;;  %v1946_v16 = vpop.f32.mrf.mxu1  ;;  %v1971_v23 = vmul.f32 %v5376_v33, %v6758_v13 }
 0x24f   : > { %5782 = vpow2.f32 %v2000_v45  ;;  %v1996_v28 = vmul.f32 1.442695, %v1987_v52  ;;  %v1767_v40 = vmul.f32 1.442695, %v1753_v56  ;;  %v1992_v62 = vmin.f32 %v6814_v15, 20.0 }
 0x250   : > { %5784 = vpow2.f32 %v1757_v8  ;;  %v6819_v38 = vadd.f32 %v6768_v19, %v1968_v54  ;;  %v6822_v47 = vadd.f32 %v6763_v31, %v1732_v42  ;;  %v6828_v4 = vadd.f32 %v6768_v19, %v1971_v23 }
 0x251   : > { %5786 = vpow2.f32 %v1996_v28  ;;  %v2006_v3 = vmul.f32 1.442695, %v1992_v62  ;;  %v1969_v50 = vmul.f32 %v6758_v13, %v1946_v16 }
 0x252   : > { %5788 = vpow2.f32 %v1767_v40  ;;  %v1990_v12 = vmin.f32 %v6819_v38, 20.0  ;;  %v1754_v9 = vmin.f32 %v6822_v47, 20.0  ;;  %v1993_v31 = vmin.f32 %v6828_v4, 20.0 }
 0x253   : > { %5790 = vpow2.f32 %v2006_v3  ;;  %v6833_v34 = vadd.f32 %v6768_v19, %v1969_v50 }
 0x254   : > { %v2002_v0 = vmul.f32 1.442695, %v1990_v12  ;;  %v1769_v41 = vmul.f32 1.442695, %v1754_v9  ;;  %v2008_v48 = vmul.f32 1.442695, %v1993_v31 }
 0x255   : > { %v1991_v42 = vmin.f32 %v6833_v34, 20.0 }
 0x256   : > { %v5773_v22 = vpop.eup %5772  ;;  %5792 = vpow2.f32 %v2002_v0 }
 0x257   : > { %v5775_v6 = vpop.eup %5774  ;;  %v1773_v45 = vadd.f32 1.0, %v5773_v22  ;;  %5794 = vpow2.f32 %v1769_v41  ;;  %v2004_v0 = vmul.f32 1.442695, %v1991_v42 }
 0x258   : > { %v5777_v27 = vpop.eup %5776  ;;  %v2012_v33 = vadd.f32 1.0, %v5775_v6  ;;  %5796 = vpow2.f32 %v2008_v48 }
 0x259   : > { %v5779_v52 = vpop.eup %5778  ;;  %v1781_v56 = vmul.f32 %v1773_v45, %v1773_v45  ;;  %v1771_v8 = vadd.f32 1.0, %v5777_v27 }
 0x25a   : > { %v2020_v13 = vmul.f32 %v2012_v33, %v2012_v33  ;;  %v2010_v54 = vadd.f32 1.0, %v5779_v52 }
 0x25b   : > { %v5781_v28 = vpop.eup %5780  ;;  %v1805_v40 = vadd.f32 1.0, %v1781_v56  ;;  %v1779_v62 = vmul.f32 %v1771_v8, %v1771_v8 }
 0x25c   : > { %v5783_v19 = vpop.eup %5782  ;;  %v2044_v16 = vadd.f32 1.0, %v2020_v13  ;;  %v2018_v23 = vmul.f32 %v2010_v54, %v2010_v54  ;;  %v1774_v3 = vadd.f32 1.0, %v5781_v28  ;;  %v5036_v60 = vadd.f32 -1.0, %v2020_v13 }
 0x25d   : > { %v5785_v12 = vpop.eup %5784  ;;  %v1803_v9 = vadd.f32 1.0, %v1779_v62  ;;  %5798 = vrcp.f32 %v1805_v40  ;;  %v2013_v22 = vadd.f32 1.0, %v5783_v19  ;;  %v5016_v39 = vadd.f32 -1.0, %v1779_v62 }
 0x25e   : > { %v5787_v50 = vpop.eup %5786  ;;  %v1782_v31 = vmul.f32 %v1774_v3, %v1774_v3  ;;  %5800 = vrcp.f32 %v2044_v16  ;;  %v2042_v6 = vadd.f32 1.0, %v2018_v23  ;;  %v1772_v45 = vadd.f32 1.0, %v5785_v12 }
 0x25f   : > { %v5789_v41 = vpop.eup %5788  ;;  %v2011_v48 = vadd.f32 1.0, %v5787_v50  ;;  %5802 = vrcp.f32 %v1803_v9  ;;  %v2021_v33 = vmul.f32 %v2013_v22, %v2013_v22  ;;  %v2036_v13 = vmul.f32 %v5036_v60, %v6775_v37 }
 0x260   : > { %v1806_v27 = vadd.f32 1.0, %v1782_v31  ;;  %v1780_v52 = vmul.f32 %v1772_v45, %v1772_v45  ;;  %v1777_v21 = vadd.f32 1.0, %v5789_v41  ;;  %5804 = vpow2.f32 %v2004_v0  ;;  %v5791_v54 = vpop.eup %5790 }
 0x261   : > { %v2019_v8 = vmul.f32 %v2011_v48, %v2011_v48  ;;  %v2045_v28 = vadd.f32 1.0, %v2021_v33  ;;  %v2016_v50 = vadd.f32 1.0, %v5791_v54  ;;  %v5018_v41 = vadd.f32 -1.0, %v1781_v56 }
 0x262   : > { %5806 = vrcp.f32 %v1806_v27  ;;  %v1804_v42 = vadd.f32 1.0, %v1780_v52  ;;  %v1785_v16 = vmul.f32 %v1777_v21, %v1777_v21  ;;  %v5019_v0 = vadd.f32 -1.0, %v1782_v31 }
 0x263   : > { %v5793_v20 = vpop.eup %5792  ;;  %5808 = vrcp.f32 %v2042_v6  ;;  %v2043_v40 = vadd.f32 1.0, %v2019_v8  ;;  %v2024_v35 = vmul.f32 %v2016_v50, %v2016_v50  ;;  %v5037_v21 = vadd.f32 -1.0, %v2021_v33 }
 0x264   : > { %v5795_v3 = vpop.eup %5794  ;;  %5810 = vrcp.f32 %v2045_v28  ;;  %v2014_v12 = vadd.f32 1.0, %v5793_v20  ;;  %v1809_v45 = vadd.f32 1.0, %v1785_v16  ;;  %v1797_v54 = vmul.f32 %v5018_v41, %v6772_v30 }
 0x265   : > { %v5797_v19 = vpop.eup %5796  ;;  %5812 = vrcp.f32 %v1804_v42  ;;  %v1778_v9 = vadd.f32 1.0, %v5795_v3  ;;  %v5034_v42 = vadd.f32 -1.0, %v2018_v23  ;;  %v1798_v56 = vmul.f32 %v5019_v0, %v6790_v5 }
 0x266   : > { %5814 = vrcp.f32 %v2043_v40  ;;  %v2017_v22 = vadd.f32 1.0, %v5797_v19  ;;  %v2022_v6 = vmul.f32 %v2014_v12, %v2014_v12  ;;  %v5017_v40 = vadd.f32 -1.0, %v1780_v52 }
 0x267   : > { %v1786_v48 = vmul.f32 %v1778_v9, %v1778_v9  ;;  %5816 = vrcp.f32 %v1809_v45  ;;  %v5035_v31 = vadd.f32 -1.0, %v2019_v8  ;;  %v1795_v23 = vmul.f32 %v5016_v39, %v6781_v49 }
 0x268   : > { %v2025_v27 = vmul.f32 %v2017_v22, %v2017_v22  ;;  %v2046_v12 = vadd.f32 1.0, %v2022_v6  ;;  %v2048_v52 = vadd.f32 1.0, %v2024_v35  ;;  %v2034_v30 = vmul.f32 %v5034_v42, %v6784_v63 }
 0x269   : > { %v1810_v28 = vadd.f32 1.0, %v1786_v48  ;;  %v2037_v5 = vmul.f32 %v5037_v21, %v6793_v53  ;;  %v1796_v8 = vmul.f32 %v5017_v40, %v6799_v10  ;;  %v2035_v41 = vmul.f32 %v5035_v31, %v6804_v61 }
 0x26a   : > { %v5799_v11 = vpop.eup %5798  ;;  %v2049_v3 = vadd.f32 1.0, %v2025_v27  ;;  %v5022_v21 = vadd.f32 -1.0, %v1785_v16  ;;  %v5023_v40 = vadd.f32 -1.0, %v1786_v48  ;;  %v5041_v31 = vadd.f32 -1.0, %v2025_v27 }
 0x26b   : > { %v5801_v59 = vpop.eup %5800  ;;  %5818 = vrcp.f32 %v1810_v28  ;;  %v6839_v50 = vmul.f32 %v5799_v11, %v1797_v54 }
 0x26c   : > { %v5803_v7 = vpop.eup %5802  ;;  %5820 = vrcp.f32 %v2049_v3  ;;  %v1802_v54 = vmul.f32 %v5023_v40, %v6822_v47  ;;  %v5683_v40 = vld [vmem:[%s8325_s13 + $0x28] ss:$20 sps:$4 sm:$0xff]  }
 0x26d   : > { %v5805_v20 = vpop.eup %5804  ;;  %8455 = vst [vmem:[#allocation13_spill] sm:$0xff] %v6839_v50  ;;  %v6847_v37 = vmul.f32 %v5803_v7, %v1795_v23  ;;  %5822 = vrcp.f32 %v2046_v12  ;;  %v6860_v7 = vmul.f32 %v5801_v59, %v2036_v13  ;;  %v1801_v59 = vmul.f32 %v5022_v21, %v6807_v24  ;;  %v5680_v21 = vld [vmem:[%s8325_s13 + $0x30] ss:$20 sps:$4 sm:$0xff]  }
 0x26e   : > { %v2015_v62 = vadd.f32 1.0, %v5805_v20  ;;  %5824 = vrcp.f32 %v2048_v52  ;;  %v2041_v23 = vmul.f32 %v5041_v31, %v6828_v4  ;;  %v8358_v31 = vmov 0  }
 0x26f   : > { %v5807_v19 = vpop.eup %5806  ;;  %8457 = vst [vmem:[#allocation15_spill] sm:$0xff] %v6847_v37  ;;  %8460 = vst [vmem:[#allocation18_spill] sm:$0xff] %v6860_v7  ;;  %2466 = vmatprep.mubr.bf16.mxu1 %v8358_v31 }
 0x270   : > { %v5809_v9 = vpop.eup %5808  ;;  %v6842_v33 = vmul.f32 %v5807_v19, %v1798_v56  ;;  %v2023_v45 = vmul.f32 %v2015_v62, %v2015_v62  ;;  %v5038_v19 = vadd.f32 -1.0, %v2022_v6  ;;  %v5040_v62 = vadd.f32 -1.0, %v2024_v35 }
 0x271   : > { %v5811_v22 = vpop.eup %5810  ;;  %v6856_v53 = vmul.f32 %v5809_v9, %v2034_v30 }
 0x272   : > { %8456 = vst [vmem:[#allocation14_spill] sm:$0xff] %v6842_v33  ;;  %v5813_v60 = vpop.eup %5812  ;;  %v6852_v49 = vmul.f32 %v5811_v22, %v2037_v5  ;;  %v2047_v63 = vadd.f32 1.0, %v2023_v45  ;;  %v5039_v12 = vadd.f32 -1.0, %v2023_v45  ;;  %v2038_v24 = vmul.f32 %v5038_v19, %v6819_v38  ;;  %v5673_v38 = vld [vmem:[%s8325_s13 + $0x7c] ss:$20 sps:$4 sm:$0xff]  }
 0x273   : > { %v5815_v39 = vpop.eup %5814  ;;  %v6854_v0 = vmul.f32 %v5813_v60, %v1796_v8  ;;  %v2040_v22 = vmul.f32 %v5040_v62, %v6814_v15  ;;  %v5670_v15 = vld [vmem:[%s8325_s13 + $0x84] ss:$20 sps:$4 sm:$0xff]   ;;  %2442 = vmatprep.subr.bf16.mxu1 %v5673_v38  ;;  %v5676_v60 = vld [vmem:[%s8325_s13 + $0x5c] ss:$20 sps:$4 sm:$0xff]   ;;  %v5050_v62 = vld [vmem:[%s8323_s11] ss:$0 sm:$0xff] }
 0x274   : > { %v6858_v10 = vmul.f32 %v5815_v39, %v2035_v41  ;;  %5826 = vrcp.f32 %v2047_v63  ;;  %v2067_v42 = vpack.c.bf16 %v6852_v49, %v6860_v7  ;;  %v5817_v20 = vpop.eup %5816  ;;  %v2039_v47 = vmul.f32 %v5039_v12, %v6833_v34  ;;  %v5668_v34 = vld [vmem:[%s8325_s13 + $0x80] ss:$20 sps:$4 sm:$0xff]   ;;  %v5671_v45 = vld [vmem:[%s8325_s13 + $0x78] ss:$20 sps:$4 sm:$0xff]   ;;  %2515 = vmatprep.subr.bf16.mxu0 %v5670_v15  ;;  %v5677_v63 = vld [vmem:[%s8325_s13 + $0x50] ss:$20 sps:$4 sm:$0xff]   ;;  %v6952_v12 = vpop.f32.mrf.mxu0 }
 0x275   : > { %8458 = vst [vmem:[#allocation16_spill] sm:$0xff] %v6854_v0  ;;  %v6872_v3 = vmul.f32 %v5817_v20, %v1801_v59  ;;  %2443 = vmatpush1.bf16.msra.mxu1 %v5671_v45  ;;  %v5679_v41 = vld [vmem:[%s8325_s13 + $0x54] ss:$20 sps:$4 sm:$0xff]   ;;  %v5674_v39 = vld [vmem:[%s8325_s13 + $0x58] ss:$20 sps:$4 sm:$0xff]   ;;  %8467 = vst [vmem:[#allocation25_spill] sm:$0xff] %v6952_v12 }
 0x276   : > { %8459 = vst [vmem:[#allocation17_spill] sm:$0xff] %v6858_v10  ;;  %v2066_v28 = vpack.c.bf16 %v6858_v10, %v6856_v53  ;;  %2444 = vmatprep.subr.bf16.mxu1 %v5679_v41  ;;  %v5688_v20 = vld [vmem:[%s8325_s13 + $0xc] ss:$20 sps:$4 sm:$0xff]   ;;  %v5691_v59 = vld [vmem:[%s8325_s13 + $0x4] ss:$20 sps:$4 sm:$0xff]  }
 0x277   : > { %8461 = vst [vmem:[#allocation19_spill] sm:$0xff] %v6872_v3  ;;  %v6949_v19 = vld [vmem:[%s8325_s13 + $0x88] ss:$20 sps:$4 sm:$0xff]  }
 0x278   : > { %5385 = vmatprep.mubr.msk.bf16.mxu0 %vm8380_vm9, %v2066_v28  ;;  %v5819_v56 = vpop.eup %5818  ;;  %v5682_v28 = vld [vmem:[%s8325_s13 + $0x34] ss:$20 sps:$4 sm:$0xff]  }
 0x279   : > { %5386 = vmatmul.mubr.msk.bf16.vlgmr.msra.gmra.mxu0 %vm8380_vm9, %v2067_v42  ;;  %v6874_v13 = vmul.f32 %v5819_v56, %v1802_v54  ;;  %v5821_v16 = vpop.eup %5820  ;;  %2445 = vmatpush1.bf16.msra.mxu1 %v5677_v63  ;;  %v5685_v42 = vld [vmem:[%s8325_s13 + $0x2c] ss:$20 sps:$4 sm:$0xff]   ;;  %v5686_v54 = vld [vmem:[%s8325_s13 + $0x8] ss:$20 sps:$4 sm:$0xff]  }
 0x27a   : > { %v5823_v9 = vpop.eup %5822  ;;  %v6882_v6 = vmul.f32 %v5821_v16, %v2041_v23  ;;  %2516 = vmatpush1.bf16.msra.mxu0 %v5668_v34  ;;  %2446 = vmatprep.subr.bf16.mxu1 %v5685_v42  ;;  %v5689_v56 = vld [vmem:[%s8325_s13] ss:$20 sps:$4 sm:$0xff]  }
 0x27b   : > { %8462 = vst [vmem:[#allocation20_spill] sm:$0xff] %v6874_v13  ;;  %v5825_v52 = vpop.eup %5824  ;;  %v6884_v30 = vmul.f32 %v5823_v9, %v2038_v24  ;;  %2517 = vmatprep.subr.bf16.mxu0 %v5676_v60  ;;  %v5051_v16 = vld [vmem:[%s8324_s12] ss:$0 sm:$0xff] }
 0x27c   : > { %8463 = vst [vmem:[#allocation21_spill] sm:$0xff] %v6882_v6  ;;  %v6888_v5 = vmul.f32 %v5825_v52, %v2040_v22 }
 0x27d   : > { %8464 = vst [vmem:[#allocation22_spill] sm:$0xff] %v6884_v30  ;;  %2447 = vmatpush1.bf16.msra.mxu1 %v5683_v40 }
 0x27e   : > { %8466 = vst [vmem:[#allocation24_spill] sm:$0xff] %v6888_v5  ;;  %v2069_v4 = vpack.c.bf16 %v6882_v6, %v6888_v5  ;;  %2518 = vmatpush1.bf16.msra.mxu0 %v5674_v39  ;;  %2448 = vmatprep.subr.bf16.mxu1 %v5691_v59 }
 0x27f   : > { %2519 = vmatprep.subr.bf16.mxu0 %v5682_v28 }
 0x281   : > { %v5827_v27 = vpop.eup %5826  ;;  %2449 = vmatpush1.bf16.msra.mxu1 %v5689_v56 }
 0x282   : > { %v6886_v35 = vmul.f32 %v5827_v27, %v2039_v47  ;;  %2520 = vmatpush1.bf16.msra.mxu0 %v5680_v21  ;;  %5393 = vmatprep.subr.bf16.mxu1 %v6949_v19 }
 0x283   : > { %2521 = vmatprep.subr.bf16.mxu0 %v5688_v20 }
 0x284   : > { %8465 = vst [vmem:[#allocation23_spill] sm:$0xff] %v6886_v35  ;;  %v2068_v8 = vpack.c.bf16 %v6886_v35, %v6884_v30 }
 0x286   : > { %5389 = vmatprep.mubr.msk.bf16.mxu0 %vm8380_vm9, %v2068_v8  ;;  %2522 = vmatpush1.bf16.msra.mxu0 %v5686_v54 }
 0x287   : > { %5390 = vmatmul.mubr.msk.bf16.gmra.mxu0 %vm8380_vm9, %v2069_v4 }
 0x288   : > { %2539 = vmatprep.mubr.bf16.mxu0 %v8358_v31 }
 0x339   : > { %v5387_v9 = vpop.f32.mrf.mxu0 }
 0x33a   : > { %v2190_v23 = vmul.f32 %v5387_v9, %v5050_v62 }
 0x33b   : > { %v2151_v52 = vpop.f32.mrf.mxu0 }
 0x33c   : > { %v6960_v24 = vadd.f32 %v5051_v16, %v2190_v23  ;;  %v2188_v47 = vmul.f32 %v5050_v62, %v2151_v52 }
 0x33d   : > { %v5388_v27 = vpop.f32.mrf.mxu0 }
 0x33e   : > { %v6962_v22 = vadd.f32 %v5051_v16, %v2188_v47  ;;  %v2191_v8 = vmul.f32 %v5388_v27, %v5050_v62  ;;  %v2212_v4 = vmin.f32 %v6960_v24, 20.0 }
 0x33f   : > { %v2154_v15 = vpop.f32.mrf.mxu0 }
 0x340   : > { %v2210_v38 = vmin.f32 %v6962_v22, 20.0  ;;  %v6966_v34 = vadd.f32 %v5051_v16, %v2191_v8  ;;  %v2189_v45 = vmul.f32 %v5050_v62, %v2154_v15  ;;  %v2222_v63 = vmul.f32 1.442695, %v2212_v4 }
 0x342   : > { %v2218_v60 = vmul.f32 1.442695, %v2210_v38  ;;  %v2213_v41 = vmin.f32 %v6966_v34, 20.0  ;;  %v6969_v39 = vadd.f32 %v5051_v16, %v2189_v45 }
 0x344   : > { %5828 = vpow2.f32 %v2218_v60  ;;  %v2224_v28 = vmul.f32 1.442695, %v2213_v41  ;;  %v2211_v42 = vmin.f32 %v6969_v39, 20.0 }
 0x346   : > { %5830 = vpow2.f32 %v2224_v28  ;;  %v2220_v21 = vmul.f32 1.442695, %v2211_v42 }
 0x347   : > { %5832 = vpow2.f32 %v2222_v63  ;;  %v5391_v40 = vpop.f32.mrf.mxu0 }
 0x348   : > { %5834 = vpow2.f32 %v2220_v21  ;;  %v2194_v20 = vmul.f32 %v5391_v40, %v5050_v62 }
 0x349   : > { %v2167_v59 = vpop.f32.mrf.mxu0 }
 0x34a   : > { %v6972_v54 = vadd.f32 %v5051_v16, %v2194_v20  ;;  %v2192_v56 = vmul.f32 %v5050_v62, %v2167_v59 }
 0x34b   : > { %v5392_v9 = vpop.f32.mrf.mxu0 }
 0x34c   : > { %v6974_v23 = vadd.f32 %v5051_v16, %v2192_v56  ;;  %v2195_v52 = vmul.f32 %v5392_v9, %v5050_v62  ;;  %v2216_v47 = vmin.f32 %v6972_v54, 20.0 }
 0x34d   : > { %v2170_v27 = vpop.f32.mrf.mxu0 }
 0x34e   : > { %v2214_v8 = vmin.f32 %v6974_v23, 20.0  ;;  %v6978_v4 = vadd.f32 %v5051_v16, %v2195_v52  ;;  %v2193_v15 = vmul.f32 %v5050_v62, %v2170_v27  ;;  %v2230_v28 = vmul.f32 1.442695, %v2216_v47 }
 0x350   : > { %v2226_v45 = vmul.f32 1.442695, %v2214_v8  ;;  %v2217_v60 = vmin.f32 %v6978_v4, 20.0  ;;  %v6981_v41 = vadd.f32 %v5051_v16, %v2193_v15 }
 0x351   : > { %v5829_v38 = vpop.eup %5828 }
 0x352   : > { %v2234_v63 = vadd.f32 1.0, %v5829_v38  ;;  %5836 = vpow2.f32 %v2226_v45  ;;  %v2232_v21 = vmul.f32 1.442695, %v2217_v60  ;;  %v2215_v40 = vmin.f32 %v6981_v41, 20.0 }
 0x353   : > { %v5831_v42 = vpop.eup %5830 }
 0x354   : > { %v5833_v20 = vpop.eup %5832  ;;  %v2242_v59 = vmul.f32 %v2234_v63, %v2234_v63  ;;  %v2237_v9 = vadd.f32 1.0, %v5831_v42  ;;  %5838 = vpow2.f32 %v2232_v21  ;;  %v2228_v52 = vmul.f32 1.442695, %v2215_v40 }
 0x355   : > { %v5835_v56 = vpop.eup %5834  ;;  %5840 = vpow2.f32 %v2230_v28  ;;  %v2236_v62 = vadd.f32 1.0, %v5833_v20 }
 0x356   : > { %v2266_v27 = vadd.f32 1.0, %v2242_v59  ;;  %v2235_v8 = vadd.f32 1.0, %v5835_v56  ;;  %5842 = vpow2.f32 %v2228_v52  ;;  %v2245_v16 = vmul.f32 %v2237_v9, %v2237_v9 }
 0x357   : > { %v2244_v38 = vmul.f32 %v2236_v62, %v2236_v62  ;;  %v5052_v40 = vadd.f32 -1.0, %v2242_v59 }
 0x358   : > { %v2243_v15 = vmul.f32 %v2235_v8, %v2235_v8  ;;  %5844 = vrcp.f32 %v2266_v27  ;;  %v2269_v45 = vadd.f32 1.0, %v2245_v16 }
 0x359   : > { %v2268_v60 = vadd.f32 1.0, %v2244_v38  ;;  %v2258_v61 = vmul.f32 %v5052_v40, %v6962_v22  ;;  %v5054_v59 = vadd.f32 -1.0, %v2244_v38 }
 0x35a   : > { %v2267_v47 = vadd.f32 1.0, %v2243_v15  ;;  %v5053_v20 = vadd.f32 -1.0, %v2243_v15 }
 0x35c   : > { %5846 = vrcp.f32 %v2267_v47  ;;  %v2259_v47 = vmul.f32 %v5053_v20, %v6969_v39 }
 0x35d   : > { %5848 = vrcp.f32 %v2269_v45 }
 0x35e   : > { %5850 = vrcp.f32 %v2268_v60 }
 0x35f   : > { %v5837_v48 = vpop.eup %5836 }
 0x360   : > { %v2238_v63 = vadd.f32 1.0, %v5837_v48  ;;  %v5055_v48 = vadd.f32 -1.0, %v2245_v16  ;;  %v8468_v16 = vmov 0  }
 0x361   : > { %v5839_v11 = vpop.eup %5838 }
 0x362   : > { %v5841_v42 = vpop.eup %5840  ;;  %v2246_v21 = vmul.f32 %v2238_v63, %v2238_v63  ;;  %v2241_v56 = vadd.f32 1.0, %v5839_v11  ;;  %v2261_v22 = vmul.f32 %v5055_v48, %v6966_v34  ;;  %v5694_v34 = vld [vmem:[%s8325_s13 + $0x38] ss:$20 sps:$4 sm:$0xff]  }
 0x363   : > { %v5843_v28 = vpop.eup %5842  ;;  %v2240_v9 = vadd.f32 1.0, %v5841_v42 }
 0x364   : > { %v2239_v52 = vadd.f32 1.0, %v5843_v28  ;;  %v2270_v8 = vadd.f32 1.0, %v2246_v21  ;;  %v2249_v31 = vmul.f32 %v2241_v56, %v2241_v56  ;;  %v5693_v28 = vld [vmem:[%s8325_s13 + $0x60] ss:$20 sps:$4 sm:$0xff]   ;;  %v5056_v20 = vadd.f32 -1.0, %v2246_v21 }
 0x365   : > { %v5845_v62 = vpop.eup %5844  ;;  %v2248_v63 = vmul.f32 %v2240_v9, %v2240_v9 }
 0x366   : > { %v2247_v27 = vmul.f32 %v2239_v52, %v2239_v52  ;;  %v2282_v13 = vmul.f32 %v5845_v62, %v2258_v61  ;;  %5852 = vrcp.f32 %v2270_v8  ;;  %v2273_v15 = vadd.f32 1.0, %v2249_v31 }
 0x367   : > { %v2272_v39 = vadd.f32 1.0, %v2248_v63  ;;  %v2262_v21 = vmul.f32 %v5056_v20, %v6974_v23 }
 0x368   : > { %v2271_v3 = vadd.f32 1.0, %v2247_v27  ;;  %v5057_v40 = vadd.f32 -1.0, %v2247_v27  ;;  %v5059_v27 = vadd.f32 -1.0, %v2249_v31 }
 0x369   : > { %v5847_v45 = vpop.eup %5846 }
 0x36a   : > { %v2283_v60 = vmul.f32 %v5847_v45, %v2259_v47  ;;  %5854 = vrcp.f32 %v2271_v3  ;;  %v5849_v42 = vpop.eup %5848  ;;  %v2260_v3 = vmul.f32 %v5054_v59, %v6960_v24  ;;  %v5695_v24 = vld [vmem:[%s8325_s13 + $0x10] ss:$20 sps:$4 sm:$0xff]   ;;  %v2263_v52 = vmul.f32 %v5057_v40, %v6981_v41 }
 0x36b   : > { %v5851_v61 = vpop.eup %5850  ;;  %5856 = vrcp.f32 %v2273_v15  ;;  %v5058_v47 = vadd.f32 -1.0, %v2248_v63 }
 0x36c   : > { %v2290_v11 = vpack.c.bf16 %v2283_v60, %v2282_v13  ;;  %v2285_v13 = vmul.f32 %v5849_v42, %v2261_v22  ;;  %v2284_v38 = vmul.f32 %v5851_v61, %v2260_v3  ;;  %5858 = vrcp.f32 %v2272_v39 }
 0x36d   : > { %v2265_v60 = vmul.f32 %v5059_v27, %v6978_v4  ;;  %v2264_v23 = vmul.f32 %v5058_v47, %v6972_v54 }
 0x36e   : > { %5080 = vmatmul.mubr.msk.bf16.vlgmr.msra.gmra.mxu1 %vm8380_vm9, %v2290_v11  ;;  %5084 = vmatmul.mubr.msk.bf16.vlgmr.msra.gmra.mxu0 %vm8380_vm9, %v2290_v11  ;;  %v2291_v56 = vpack.c.bf16 %v2285_v13, %v2284_v38 }
 0x36f   : > { %2476 = vmatprep.mubr.bf16.mxu1 %v8468_v16  ;;  %2549 = vmatprep.mubr.bf16.mxu0 %v8468_v16 }
 0x370   : > { %5394 = vmatpush3.bf16.msra.mxu1 %v6949_v19 }
 0x371   : > { %5395 = vmatprep.subr.bf16.mxu1 %v5693_v28 }
 0x373   : > { %v5853_v19 = vpop.eup %5852 }
 0x374   : > { %5396 = vmatpush3.bf16.msra.mxu1 %v5693_v28  ;;  %v2286_v62 = vmul.f32 %v5853_v19, %v2262_v21 }
 0x375   : > { %5397 = vmatprep.subr.bf16.mxu1 %v5694_v34 }
 0x376   : > { %5081 = vmatmul.mubr.msk.bf16.gmra.mxu1 %vm8380_vm9, %v2291_v56  ;;  %5085 = vmatmul.mubr.msk.bf16.gmra.mxu0 %vm8380_vm9, %v2291_v56 }
 0x377   : > { %2486 = vmatprep.mubr.bf16.mxu1 %v8468_v16  ;;  %2559 = vmatprep.mubr.bf16.mxu0 %v8468_v16  ;;  %v5855_v9 = vpop.eup %5854 }
 0x378   : > { %5398 = vmatpush3.bf16.msra.mxu1 %v5694_v34  ;;  %v2287_v8 = vmul.f32 %v5855_v9, %v2263_v52  ;;  %v5857_v48 = vpop.eup %5856 }
 0x379   : > { %5399 = vmatprep.subr.bf16.mxu1 %v5695_v24  ;;  %v5859_v41 = vpop.eup %5858  ;;  %v2289_v59 = vmul.f32 %v5857_v48, %v2265_v60 }
 0x37a   : > { %v2292_v45 = vpack.c.bf16 %v2287_v8, %v2286_v62  ;;  %v2288_v15 = vmul.f32 %v5859_v41, %v2264_v23 }
 0x37c   : > { %5400 = vmatpush3.bf16.msra.mxu1 %v5695_v24  ;;  %v2293_v31 = vpack.c.bf16 %v2289_v59, %v2288_v15 }
 0x37e   : > { %5082 = vmatmul.mubr.msk.bf16.gmra.mxu1 %vm8380_vm9, %v2292_v45  ;;  %5086 = vmatmul.mubr.msk.bf16.gmra.mxu0 %vm8380_vm9, %v2292_v45 }
 0x37f   : > { %2496 = vmatprep.mubr.bf16.mxu1 %v8468_v16  ;;  %2569 = vmatprep.mubr.bf16.mxu0 %v8468_v16 }
 0x386   : > { %5083 = vmatmul.mubr.msk.bf16.gmra.mxu1 %vm8380_vm9, %v2293_v31  ;;  %5087 = vmatmul.mubr.msk.bf16.gmra.mxu0 %vm8380_vm9, %v2293_v31 }
 0x387   : > { %5401 = vmatprep.mubr.msk.bf16.mxu1 %vm8380_vm9, %v2290_v11 }
 0x38e   : > { %5402 = vmatmul.mubr.msk.bf16.vlgmr.msra.gmra.mxu1 %vm8380_vm9, %v2291_v56 }
 0x38f   : > { %5405 = vmatprep.mubr.msk.bf16.mxu1 %vm8380_vm9, %v2292_v45 }
 0x396   : > { %5406 = vmatmul.mubr.msk.bf16.gmra.mxu1 %vm8380_vm9, %v2293_v31 }
 0x397   : > { %3623 = vmatprep.mubr.bf16.mxu1 %v8468_v16 }
 0x42e   : > { %v7021_v4 = vpop.f32.mrf.mxu1  ;;  %v7023_v54 = vpop.f32.mrf.mxu0 }
 0x42f   : > { %2685 = vrot.lane.b32.xlu0 %v7021_v4, %s8394_s1  ;;  %v8362_v22 = vrot.slane %v7021_v4, 7 }
 0x430   : > { %v2470_v63 = vpop.f32.mrf.mxu1  ;;  %v2543_v42 = vpop.f32.mrf.mxu0 }
 0x431   : > { %v2733_v61 = vrot.slane %v2470_v63, 1  ;;  %v2934_v34 = vrot.slane %v2543_v42, 7 }
 0x432   : > { %v2472_v28 = vpop.f32.mrf.mxu1  ;;  %v7027_v11 = vpop.f32.mrf.mxu0 }
 0x433   : > { %v2646_v39 = vrot.slane %v2472_v28, 7  ;;  %2854 = vrot.lane.b32.xlu0 %v7023_v54, %s8394_s1  ;;  %2856 = vrot.lane.b32.xlu1 %v7027_v11, %s8394_s1 }
 0x434   : > { %v2474_v3 = vpop.f32.mrf.mxu1  ;;  %v2547_v13 = vpop.f32.mrf.mxu0 }
 0x435   : > { %v2734_v38 = vrot.slane %v2474_v3, 1  ;;  %v2935_v40 = vrot.slane %v2547_v13, 7  ;;  %v2659_v20 = vsel %vm8384_vm0, %v8362_v22, %v2646_v39 }
 0x436   : > { %v2478_v56 = vpop.f32.mrf.mxu1  ;;  %v2551_v24 = vpop.f32.mrf.mxu0  ;;  %v2663_v19 = vsel %vm6550_vm1, %v2659_v20, 0.0 }
 0x437   : > { %v7043_v52 = vsel %vm8384_vm0, %v2934_v34, %v2935_v40  ;;  %v2647_v9 = vrot.slane %v2478_v56, 7  ;;  %v7045_v21 = vadd.f32 %v2663_v19, %v2551_v24  ;;  %2790 = vrot.lane.b32.xlu0 %v2470_v63, %s8394_s1  ;;  %2792 = vrot.lane.b32.xlu1 %v2474_v3, %s8394_s1  ;;  %v7051_v8 = vsel %vm8385_vm10, %v2733_v61, %v2734_v38 }
 0x438   : > { %v2480_v62 = vpop.f32.mrf.mxu1  ;;  %v2553_v27 = vpop.f32.mrf.mxu0 }
 0x439   : > { %v2735_v47 = vrot.slane %v2480_v62, 1  ;;  %v2936_v45 = vrot.slane %v2553_v27, 7  ;;  %v2658_v48 = vsel %vm8384_vm0, %v2646_v39, %v2647_v9 }
 0x43a   : > { %v7055_v60 = vpop.f32.mrf.mxu1  ;;  %v2555_v41 = vpop.f32.mrf.mxu0  ;;  %v2664_v23 = vsel %vm6572_vm2, %v2658_v48, 0.0 }
 0x43b   : > { %v2648_v59 = vrot.slane %v7055_v60, 7  ;;  %v7060_v15 = vadd.f32 %v2664_v23, %v2555_v41  ;;  %2687 = vrot.lane.b32.xlu0 %v2472_v28, %s8394_s1  ;;  %2992 = vrot.lane.b32.xlu1 %v2547_v13, %s8394_s1  ;;  %v7066_v31 = vsel %vm8385_vm10, %v2734_v38, %v2735_v47  ;;  %v7070_v63 = vsel %vm8384_vm0, %v2935_v40, %v2936_v45 }
 0x43c   : > { %v2484_v42 = vpop.f32.mrf.mxu1  ;;  %v2557_v39 = vpop.f32.mrf.mxu0 }
 0x43d   : > { %v2736_v61 = vrot.slane %v2484_v42, 1  ;;  %v2937_v3 = vrot.slane %v2557_v39, 7  ;;  %v2657_v34 = vsel %vm8384_vm0, %v2647_v9, %v2648_v59 }
 0x43e   : > { %v2488_v20 = vpop.f32.mrf.mxu1  ;;  %v2561_v19 = vpop.f32.mrf.mxu0  ;;  %v2665_v28 = vsel %vm6608_vm3, %v2657_v34, 0.0 }
 0x43f   : > { %v2649_v13 = vrot.slane %v2488_v20, 7  ;;  %v7076_v48 = vadd.f32 %v2665_v28, %v2561_v19  ;;  %2689 = vrot.lane.b32.xlu1 %v2478_v56, %s8394_s1  ;;  %2858 = vrot.lane.b32.xlu0 %v2551_v24, %s8394_s1  ;;  %v7082_v38 = vsel %vm8385_vm10, %v2735_v47, %v2736_v61  ;;  %v7086_v40 = vsel %vm8384_vm0, %v2936_v45, %v2937_v3 }
 0x440   : > { %v2490_v9 = vpop.f32.mrf.mxu1  ;;  %v2563_v23 = vpop.f32.mrf.mxu0 }
 0x441   : > { %v2737_v22 = vrot.slane %v2490_v9, 1  ;;  %v2938_v50 = vrot.slane %v2563_v23, 7  ;;  %v2656_v34 = vsel %vm8384_vm0, %v2648_v59, %v2649_v13 }
 0x442   : > { %v2492_v28 = vpop.f32.mrf.mxu1  ;;  %v2565_v33 = vpop.f32.mrf.mxu0  ;;  %v2666_v56 = vsel %vm6628_vm5, %v2656_v34, 0.0 }
 0x443   : > { %v2650_v24 = vrot.slane %v2492_v28, 7  ;;  %v7092_v37 = vadd.f32 %v2666_v56, %v2565_v33  ;;  %2794 = vrot.lane.b32.xlu0 %v2480_v62, %s8394_s1  ;;  %2860 = vrot.lane.b32.xlu1 %v2555_v41, %s8394_s1  ;;  %v7098_v47 = vsel %vm8384_vm0, %v2937_v3, %v2938_v50  ;;  %v7102_v45 = vsel %vm8385_vm10, %v2736_v61, %v2737_v22 }
 0x444   : > { %v2494_v59 = vpop.f32.mrf.mxu1  ;;  %v2567_v0 = vpop.f32.mrf.mxu0 }
 0x445   : > { %v2738_v18 = vrot.slane %v2494_v59, 1  ;;  %v2939_v12 = vrot.slane %v2567_v0, 7  ;;  %v2655_v34 = vsel %vm8384_vm0, %v2649_v13, %v2650_v24 }
 0x446   : > { %v2498_v56 = vpop.f32.mrf.mxu1  ;;  %v2571_v16 = vpop.f32.mrf.mxu0  ;;  %v2667_v62 = vsel %vm6641_vm6, %v2655_v34, 0.0 }
 0x447   : > { %v2651_v41 = vrot.slane %v2498_v56, 7  ;;  %v7108_v6 = vadd.f32 %v2667_v62, %v2571_v16  ;;  %2994 = vrot.lane.b32.xlu0 %v2553_v27, %s8394_s1  ;;  %2796 = vrot.lane.b32.xlu1 %v2484_v42, %s8394_s1  ;;  %v7114_v61 = vsel %vm8385_vm10, %v2737_v22, %v2738_v18  ;;  %v7118_v3 = vsel %vm8384_vm0, %v2938_v50, %v2939_v12 }
 0x448   : > { %v2500_v13 = vpop.f32.mrf.mxu1  ;;  %v7120_v5 = vpop.f32.mrf.mxu0 }
 0x449   : > { %v2739_v30 = vrot.slane %v2500_v13, 1  ;;  %v8374_v34 = vrot.slane %v7120_v5, 7  ;;  %v2654_v62 = vsel %vm8384_vm0, %v2650_v24, %v2651_v41 }
 0x44a   : > { %v2502_v27 = vpop.f32.mrf.mxu1  ;;  %v2575_v35 = vpop.f32.mrf.mxu0  ;;  %v2668_v42 = vsel %vm6651_vm7, %v2654_v62, 0.0  ;;  %v8469_v62 = vrot.slane %v7021_v4, 7  ;;  %v8470_v4 = vand.u32 7, %v6563_v51 }
 0x44b   : > { %v2652_v22 = vrot.slane %v2502_v27, 7  ;;  %v7127_v7 = vadd.f32 %v2668_v42, %v2575_v35  ;;  %2996 = vrot.lane.b32.xlu1 %v2557_v39, %s8394_s1  ;;  %2862 = vrot.lane.b32.xlu0 %v2561_v19, %s8394_s1  ;;  %v7133_v50 = vsel %vm8385_vm10, %v2738_v18, %v2739_v30  ;;  %v7139_v24 = vsel %vm8384_vm0, %v2939_v12, %v8374_v34 }
 0x44c   : > { %v2504_v41 = vpop.f32.mrf.mxu1  ;;  %vm7188_vm11 = vcmp.le.s32.totalorder %v8470_v4, 6  ;;  %v8477_v4 = vmov 0 }
 0x44d   : > { %v2740_v10 = vrot.slane %v2504_v41, 1  ;;  %v2660_v27 = vsel %vm8384_vm0, %v2652_v22, %v8469_v62  ;;  %v2767_v19 = vsel %vm7188_vm11, %v7051_v8, 0.0  ;;  %v8473_v62 = vand.u32 7, %v6529_v29 }
 0x44e   : > { %v2662_v39 = vsel %vm6620_vm4, %v2660_v27, 0.0  ;;  %v8474_v8 = vmov 0 }
 0x44f   : > { %2998 = vrot.lane.b32.xlu0 %v2563_v23, %s8394_s1  ;;  %2804 = vrot.lane.b32.xlu1 %v2504_v41, %s8394_s1  ;;  %v2670_v18 = vadd.f32 %v2662_v39, %v7027_v11  ;;  %v7152_v12 = vsel %vm8385_vm10, %v2739_v30, %v2740_v10  ;;  %v7168_v10 = vpop.f32.mrf.mxu0  ;;  %v5696_v30 = vld [vmem:[%s8322_s10 + $0x38] sm:$0xff]   ;;  %vm7208_vm12 = vcmp.le.s32.totalorder %v8473_v62, 6 }
 0x450   : > { %5409 = vmatprep.subr.bf16.mxu0 %v5696_v30  ;;  %v8475_v8 = vsel %vm7208_vm12, 4294967295, %v8474_v8 }
 0x451   : > { %5410 = vmatpush3.bf16.msra.mxu0 %v5696_v30 }
 0x453   : > { %2693 = vrot.lane.b32.xlu0 %v2488_v20, %s8394_s1  ;;  %2691 = vrot.lane.b32.xlu1 %v7055_v60, %s8394_s1 }
 0x457   : > { %2800 = vrot.lane.b32.xlu0 %v2494_v59, %s8394_s1  ;;  %2798 = vrot.lane.b32.xlu1 %v2490_v9, %s8394_s1 }
 0x45b   : > { %2802 = vrot.lane.b32.xlu0 %v2500_v13, %s8394_s1  ;;  %2695 = vrot.lane.b32.xlu1 %v2492_v28, %s8394_s1 }
 0x45f   : > { %2866 = vrot.lane.b32.xlu0 %v2571_v16, %s8394_s1  ;;  %2864 = vrot.lane.b32.xlu1 %v2565_v33, %s8394_s1  ;;  %v5697_v33 = vld [vmem:[%s8322_s10 + $0x30] sm:$0xff]   ;;  %v7184_v16 = vpop.f32.mrf.mxu1 }
 0x460   : > { %5411 = vmatprep.subr.bf16.mxu0 %v5697_v33 }
 0x461   : > { %5412 = vmatpush3.bf16.msra.mxu0 %v5697_v33  ;;  %v7195_v9 = vpop.f32.mrf.mxu1  ;;  %v2768_v33 = vsel %vm7208_vm12, %v7066_v31, 0.0 }
 0x463   : > { %2697 = vrot.lane.b32.xlu0 %v2498_v56, %s8394_s1  ;;  %2868 = vrot.lane.b32.xlu1 %v2575_v35, %s8394_s1  ;;  %v5699_v35 = vld [vmem:[%s8322_s10 + $0x20] sm:$0xff]   ;;  %v5404_v56 = vpop.f32.mrf.mxu1 }
 0x465   : > { %v7204_v41 = vpop.f32.mrf.mxu1 }
 0x467   : > { %3002 = vrot.lane.b32.xlu0 %v7120_v5, %s8394_s1  ;;  %3000 = vrot.lane.b32.xlu1 %v2567_v0, %s8394_s1  ;;  %v5698_v0 = vld [vmem:[%s8322_s10 + $0x28] sm:$0xff]  }
 0x468   : > { %5413 = vmatprep.subr.bf16.mxu0 %v5698_v0 }
 0x469   : > { %5414 = vmatpush3.bf16.msra.mxu0 %v5698_v0  ;;  %v7222_v0 = vpop.f32.mrf.mxu1 }
 0x46a   : > { %5415 = vmatprep.subr.bf16.mxu0 %v5699_v35 }
 0x46b   : > { %3004 = vrot.lane.b32.xlu1 %v7168_v10, %s8394_s1  ;;  %s5248_s1 = sshll.u32 %s6238_s5, 10  ;;  %s8272_s5 = scalar_lea.sflag [#allocation3], %s701_s4 }
 0x46c   : > { %s8264_s26 = scalar_lea.hbm %s8611_s2, %s5248_s1 }
 0x46d   : > { %5416 = vmatpush3.bf16.msra.mxu0 %v5699_v35  ;;  %v8476_v35 = vand.u32 7, %v6536_v32  ;;  %v2630_v32 = vpop.f32.mrf.mxu1 }
 0x46f   : > { %vm7226_vm13 = vcmp.le.s32.totalorder %v8476_v35, 6 }
 0x470   : > { %v8478_v4 = vsel %vm7226_vm13, 4294967295, %v8477_v4  ;;  %v2769_v31 = vsel %vm7226_vm13, %v7082_v38, 0.0  ;;  %v2967_v38 = vsel %vm6620_vm4, %v7070_v63, 0.0  ;;  %v3058_v63 = vrot.slane %v2630_v32, 1  ;;  %v7273_v32 = vld [vmem:[%s8326_s14] ss:$0 sm:$0xff] }
 0x4a1   : > { %v2686_v60 = vpop.permute.xlu0 %2685 }
 0x4a2   : > { %v2718_v20 = vadd.f32 %v2686_v60, %v2670_v18 }
 0x4a4   : > { %v2775_v23 = vadd.f32 %v2767_v19, %v2718_v20 }
 0x4a5   : > { %v7197_v28 = vpop.permute.xlu0 %2854  ;;  %v7199_v59 = vpop.permute.xlu1 %2856 }
 0x4a9   : > { %v7201_v13 = vpop.permute.xlu0 %2790  ;;  %v2793_v51 = vpop.permute.xlu1 %2792 }
 0x4aa   : > { %v8375_v42 = vrot.slane %v7201_v13, 7  ;;  %v2815_v22 = vrot.slane %v2793_v51, 7 }
 0x4ac   : > { %v2828_v18 = vsel %vm8384_vm0, %v8375_v42, %v2815_v22 }
 0x4ad   : > { %v2688_v27 = vpop.permute.xlu0 %2687  ;;  %v7212_v39 = vpop.permute.xlu1 %2992  ;;  %v2831_v60 = vsel %vm6620_vm4, %v2828_v18, 0.0 }
 0x4ae   : > { %v2719_v30 = vadd.f32 %v2688_v27, %v7045_v21  ;;  %v2879_v21 = vrot.slane %v7199_v59, 1  ;;  %v3057_v27 = vrot.slane %v5404_v56, 1  ;;  %v2839_v35 = vadd.f32 %v2831_v60, %v2775_v23  ;;  %v7245_v56 = vpop.f32.mrf.mxu1 }
 0x4af   : > { %v8376_v59 = vrot.slane %v7184_v16, 1 }
 0x4b0   : > { %v2776_v29 = vadd.f32 %v2768_v33, %v2719_v30 }
 0x4b1   : > { %v2690_v20 = vpop.permute.xlu1 %2689  ;;  %v2859_v19 = vpop.permute.xlu0 %2858 }
 0x4b2   : > { %v2720_v51 = vadd.f32 %v2690_v20, %v7060_v15  ;;  %v2880_v62 = vrot.slane %v2859_v19, 1 }
 0x4b4   : > { %v2777_v30 = vadd.f32 %v2769_v31, %v2720_v51  ;;  %v2891_v33 = vsel %vm8385_vm10, %v2879_v21, %v2880_v62 }
 0x4b5   : > { %v2795_v34 = vpop.permute.xlu0 %2794  ;;  %v2861_v18 = vpop.permute.xlu1 %2860  ;;  %v2911_v42 = vsel %vm7188_vm11, %v2891_v33, 0.0 }
 0x4b6   : > { %v2816_v15 = vrot.slane %v2795_v34, 7  ;;  %v2881_v20 = vrot.slane %v2861_v18, 1  ;;  %v2919_v19 = vadd.f32 %v2911_v42, %v2839_v35  ;;  %v3066_v34 = vsel %vm8385_vm10, %v8376_v59, %v3057_v27 }
 0x4b8   : > { %v2827_v51 = vsel %vm8384_vm0, %v2815_v22, %v2816_v15  ;;  %v2890_v23 = vsel %vm8385_vm10, %v2880_v62, %v2881_v20  ;;  %v2975_v60 = vadd.f32 %v2967_v38, %v2919_v19  ;;  %v3087_v62 = vsel %vm7188_vm11, %v3066_v34, 0.0  ;;  %v7264_v38 = vpop.f32.mrf.mxu1 }
 0x4b9   : > { %v2832_v42 = vsel %vm6550_vm1, %v2827_v51, 0.0  ;;  %v2995_v31 = vpop.permute.xlu0 %2994  ;;  %v7257_v33 = vpop.permute.xlu1 %2796  ;;  %v2912_v19 = vsel %vm7208_vm12, %v2890_v23, 0.0  ;;  %v2968_v23 = vsel %vm6550_vm1, %v7086_v40, 0.0 }
 0x4ba   : > { %v3039_v35 = vadd.f32 %v2995_v31, %v2975_v60  ;;  %v8379_v18 = vrot.slane %v7257_v33, 7  ;;  %v2840_v22 = vadd.f32 %v2832_v42, %v2776_v29 }
 0x4bc   : > { %v3095_v59 = vadd.f32 %v3087_v62, %v3039_v35  ;;  %v2826_v51 = vsel %vm8384_vm0, %v2816_v15, %v8379_v18  ;;  %v2920_v36 = vadd.f32 %v2912_v19, %v2840_v22  ;;  %v3065_v15 = vsel %vm8385_vm10, %v3057_v27, %v3058_v63 }
 0x4bd   : > { %v2833_v29 = vsel %vm6572_vm2, %v2826_v51, 0.0  ;;  %v2997_v60 = vpop.permute.xlu1 %2996  ;;  %v7280_v34 = vpop.permute.xlu0 %2862  ;;  %v8381_v22 = vrot.slane %v7197_v28, 1  ;;  %v3088_v27 = vsel %vm7208_vm12, %v3065_v15, 0.0  ;;  %v2969_v15 = vsel %vm6572_vm2, %v7098_v47, 0.0 }
 0x4be   : > { %v2976_v42 = vadd.f32 %v2968_v23, %v2920_v36  ;;  %v8383_v31 = vrot.slane %v7280_v34, 1  ;;  %v3110_v62 = vmul.f32 %v7273_v32, %v3095_v59  ;;  %v2841_v51 = vadd.f32 %v2833_v29, %v2777_v30  ;;  %v7295_v36 = vld [vmem:[%s8327_s15] ss:$0 sm:$0xff] }
 0x4bf   : > { %v8479_v30 = vand.u32 7, %v6545_v43  ;;  %v2892_v29 = vsel %vm8385_vm10, %v8381_v22, %v2879_v21  ;;  %v8484_v47 = vand.u32 7, %v6522_v26 }
 0x4c0   : > { %v3040_v19 = vadd.f32 %v2997_v60, %v2976_v42  ;;  %v2889_v40 = vsel %vm8385_vm10, %v2881_v20, %v8383_v31  ;;  %v7322_v43 = vadd.f32 %v7295_v36, %v3110_v62  ;;  %v8487_v62 = vand.u32 7, %v6568_v55 }
 0x4c1   : > { %v2913_v23 = vsel %vm7226_vm13, %v2889_v40, 0.0  ;;  %v2999_v18 = vpop.permute.xlu0 %2998  ;;  %v7301_v59 = vpop.permute.xlu1 %2804  ;;  %vm7306_vm14 = vcmp.le.s32.totalorder %v8479_v30, 6  ;;  %vm7333_vm15 = vcmp.le.s32.totalorder %v8484_v47, 6  ;;  %v8485_v30 = vmov 0 }
 0x4c2   : > { %v3096_v60 = vadd.f32 %v3088_v27, %v3040_v19  ;;  %v2921_v42 = vadd.f32 %v2913_v23, %v2841_v51  ;;  %v8382_v35 = vrot.slane %v7301_v59, 7  ;;  %v8482_v19 = vrot.slane %v7264_v38, 1 }
 0x4c3   : > { %v8483_v23 = vrot.slane %v7201_v13, 7  ;;  %v8486_v30 = vsel %vm7333_vm15, 4294967295, %v8485_v30  ;;  %vm7341_vm9 = vcmp.le.s32.totalorder %v8487_v62, 6  ;;  %v2910_v55 = vsel %vm7333_vm15, %v2892_v29, 0.0 }
 0x4c4   : > { %v3064_v40 = vsel %vm8385_vm10, %v3058_v63, %v8482_v19  ;;  %v3111_v51 = vmul.f32 %v7273_v32, %v3096_v60  ;;  %v2977_v27 = vadd.f32 %v2969_v15, %v2921_v42  ;;  %v2770_v42 = vsel %vm7306_vm14, %v7102_v45, 0.0 }
 0x4c5   : > { %v2829_v21 = vsel %vm8384_vm0, %v8382_v35, %v8483_v23  ;;  %v2694_v13 = vpop.permute.xlu0 %2693  ;;  %v2692_v15 = vpop.permute.xlu1 %2691  ;;  %v3055_v19 = vrot.slane %v7204_v41, 1  ;;  %v3089_v62 = vsel %vm7226_vm13, %v3064_v40, 0.0  ;;  %v3133_v45 = vmin.f32 %v7322_v43, 20.0 }
 0x4c6   : > { %v2830_v63 = vsel %vm6672_vm8, %v2829_v21, 0.0  ;;  %v7350_v23 = vadd.f32 %v7295_v36, %v3111_v51  ;;  %v3041_v47 = vadd.f32 %v2999_v18, %v2977_v27  ;;  %v2722_v22 = vadd.f32 %v2694_v13, %v7092_v37 }
 0x4c7   : > { %v2838_v21 = vadd.f32 %v2830_v63, %v7023_v54  ;;  %v2721_v35 = vadd.f32 %v2692_v15, %v7076_v48  ;;  %v2771_v18 = vsel %vm7341_vm9, %v7114_v61, 0.0  ;;  %v2966_v54 = vsel %vm6672_vm8, %v7043_v52, 0.0 }
 0x4c8   : > { %v3097_v31 = vadd.f32 %v3089_v62, %v3041_v47  ;;  %v3134_v29 = vmin.f32 %v7350_v23, 20.0  ;;  %v2779_v51 = vadd.f32 %v2771_v18, %v2722_v22  ;;  %v8490_v48 = vrot.slane %v7184_v16, 1 }
 0x4c9   : > { %v2918_v41 = vadd.f32 %v2910_v55, %v2838_v21  ;;  %v2778_v40 = vadd.f32 %v2770_v42, %v2721_v35  ;;  %v2801_v27 = vpop.permute.xlu0 %2800  ;;  %v2799_v37 = vpop.permute.xlu1 %2798  ;;  %v8491_v21 = vand.u32 7, %v6587_v1  ;;  %v3142_v22 = vmul.f32 1.442695, %v3133_v45 }
 0x4ca   : > { %v3067_v63 = vsel %vm8385_vm10, %v3055_v19, %v8490_v48  ;;  %v3112_v13 = vmul.f32 %v7273_v32, %v3097_v31  ;;  %v2819_v47 = vrot.slane %v2801_v27, 7  ;;  %v2818_v61 = vrot.slane %v2799_v37, 7 }
 0x4cb   : > { %v2974_v15 = vadd.f32 %v2966_v54, %v2918_v41  ;;  %vm7374_vm0 = vcmp.le.s32.totalorder %v8491_v21, 6  ;;  %v8494_v42 = vand.u32 7, %v6590_v2  ;;  %v8495_v19 = vmov 0 }
 0x4cc   : > { %v7379_v35 = vadd.f32 %v7295_v36, %v3112_v13  ;;  %v3086_v31 = vsel %vm7333_vm15, %v3067_v63, 0.0  ;;  %v3144_v1 = vmul.f32 1.442695, %v3134_v29  ;;  %vm8497_vm8 = vcmp.lt.s32.totalorder %v6522_v26, 1 }
 0x4cd   : > { %v3038_v16 = vadd.f32 %v7212_v39, %v2974_v15  ;;  %vm7384_vm10 = vcmp.le.s32.totalorder %v8494_v42, 6  ;;  %v2824_v55 = vsel %vm8497_vm8, %v2818_v61, %v2819_v47  ;;  %v2803_v62 = vpop.permute.xlu0 %2802  ;;  %v2696_v45 = vpop.permute.xlu1 %2695  ;;  %v2970_v41 = vsel %vm6608_vm3, %v7118_v3, 0.0  ;;  %vm8499_vm13 = vmmov %vm8497_vm8 }
 0x4ce   : > { %v8496_v19 = vsel %vm7384_vm10, 4294967295, %v8495_v19  ;;  %v2941_v39 = vrot.slane %v7168_v10, 7  ;;  %v3135_v2 = vmin.f32 %v7379_v35, 20.0  ;;  %v8498_v54 = vrot.slane %v7257_v33, 7 }
 0x4cf   : > { %v3094_v18 = vadd.f32 %v3086_v31, %v3038_v16  ;;  %v2820_v29 = vrot.slane %v2803_v62, 7  ;;  %v2772_v37 = vsel %vm7374_vm0, %v7133_v50, 0.0  ;;  %v2723_v48 = vadd.f32 %v2696_v45, %v7108_v6 }
 0x4d0   : > { %v2825_v27 = vsel %vm8499_vm13, %v8498_v54, %v2818_v61  ;;  %v2971_v3 = vsel %vm6628_vm5, %v7139_v24, 0.0  ;;  %5860 = vpow2.f32 %v3142_v22  ;;  %v3146_v10 = vmul.f32 1.442695, %v3135_v2  ;;  %vm8501_vm13 = vmmov %vm8497_vm8 }
 0x4d1   : > { %v3109_v63 = vmul.f32 %v7273_v32, %v3094_v18  ;;  %v2835_v33 = vsel %vm6628_vm5, %v2824_v55, 0.0  ;;  %5862 = vpow2.f32 %v3144_v1  ;;  %v2834_v13 = vsel %vm6608_vm3, %v2825_v27, 0.0  ;;  %v2867_v6 = vpop.permute.xlu0 %2866  ;;  %v2865_v61 = vpop.permute.xlu1 %2864 }
 0x4d2   : > { %v2823_v50 = vsel %vm8497_vm8, %v2819_v47, %v2820_v29  ;;  %v2780_v15 = vadd.f32 %v2772_v37, %v2723_v48  ;;  %5864 = vpow2.f32 %v3146_v10  ;;  %v2884_v21 = vrot.slane %v2867_v6, 1 }
 0x4d3   : > { %v2883_v24 = vrot.slane %v2865_v61, 1  ;;  %v8500_v22 = vrot.slane %v7120_v5, 7  ;;  %v3060_v42 = vrot.slane %v7222_v0, 1  ;;  %v3061_v31 = vrot.slane %v7245_v56, 1 }
 0x4d4   : > { %v2843_v1 = vadd.f32 %v2835_v33, %v2779_v51  ;;  %v7422_v55 = vadd.f32 %v7295_v36, %v3109_v63  ;;  %v2836_v47 = vsel %vm6641_vm6, %v2823_v50, 0.0  ;;  %vm8502_vm8 = vcmp.lt.s32.totalorder %v6522_v26, 7 }
 0x4d5   : > { %v2942_v16 = vsel %vm8501_vm13, %v8500_v22, %v2941_v39  ;;  %v2887_v62 = vsel %vm8502_vm8, %v2883_v24, %v2884_v21  ;;  %v8503_v45 = vrot.slane %v7280_v34, 1  ;;  %vm8504_vm15 = vmmov %vm8502_vm8  ;;  %v2842_v39 = vadd.f32 %v2834_v13, %v2778_v40  ;;  %v2698_v51 = vpop.permute.xlu0 %2697  ;;  %v2869_v2 = vpop.permute.xlu1 %2868 }
 0x4d6   : > { %v8505_v0 = vrot.slane %v7301_v59, 7  ;;  %v2915_v18 = vsel %vm7341_vm9, %v2887_v62, 0.0  ;;  %v3132_v27 = vmin.f32 %v7422_v55, 20.0  ;;  %v2724_v34 = vadd.f32 %v2698_v51, %v7127_v7  ;;  %vm8510_vm12 = vmmov %vm8502_vm8 }
 0x4d7   : > { %v2888_v5 = vsel %vm8504_vm15, %v8503_v45, %v2883_v24  ;;  %v2773_v40 = vsel %vm7384_vm10, %v7152_v12, 0.0  ;;  %v2885_v59 = vrot.slane %v2869_v2, 1  ;;  %v2923_v37 = vadd.f32 %v2915_v18, %v2843_v1  ;;  %vm8506_vm15 = vmmov %vm8502_vm8 }
 0x4d8   : > { %v2822_v56 = vsel %vm8501_vm13, %v2820_v29, %v8505_v0  ;;  %v2914_v54 = vsel %vm7306_vm14, %v2888_v5, 0.0  ;;  %v2844_v48 = vadd.f32 %v2836_v47, %v2780_v15  ;;  %v3062_v29 = vsel %vm8506_vm15, %v3060_v42, %v3061_v31  ;;  %vm8508_vm13 = vmmov %vm8502_vm8 }
 0x4d9   : > { %v2922_v10 = vadd.f32 %v2914_v54, %v2842_v39  ;;  %v8507_v63 = vrot.slane %v7264_v38, 1  ;;  %v2781_v13 = vadd.f32 %v2773_v40, %v2724_v34  ;;  %v2837_v7 = vsel %vm6651_vm7, %v2822_v56, 0.0  ;;  %v3003_v61 = vpop.permute.xlu0 %3002  ;;  %v3001_v38 = vpop.permute.xlu1 %3000 }
 0x4da   : > { %v2886_v50 = vsel %vm8508_vm13, %v2884_v21, %v2885_v59  ;;  %v3140_v12 = vmul.f32 1.442695, %v3132_v27  ;;  %v8509_v6 = vrot.slane %v7197_v28, 1  ;;  %v2979_v24 = vadd.f32 %v2971_v3, %v2923_v37 }
 0x4db   : > { %v3063_v33 = vsel %vm8502_vm8, %v8507_v63, %v3060_v42  ;;  %v2978_v22 = vadd.f32 %v2970_v41, %v2922_v10  ;;  %v2916_v42 = vsel %vm7374_vm0, %v2886_v50, 0.0  ;;  %v3054_v1 = vrot.slane %v7195_v9, 1 }
 0x4dc   : > { %v2893_v15 = vsel %vm8510_vm12, %v2885_v59, %v8509_v6  ;;  %v2845_v47 = vadd.f32 %v2837_v7, %v2781_v13  ;;  %v2972_v62 = vsel %vm6641_vm6, %v2942_v16, 0.0  ;;  %v3043_v28 = vadd.f32 %v3003_v61, %v2979_v24  ;;  %vm8511_vm12 = vmmov %vm8502_vm8 }
 0x4dd   : > { %v2917_v21 = vsel %vm7384_vm10, %v2893_v15, 0.0  ;;  %v3042_v45 = vadd.f32 %v3001_v38, %v2978_v22  ;;  %v2924_v5 = vadd.f32 %v2916_v42, %v2844_v48  ;;  %v3091_v41 = vsel %vm7341_vm9, %v3062_v29, 0.0  ;;  %v5861_v0 = vpop.eup %5860  ;;  %v3005_v2 = vpop.permute.xlu1 %3004 }
 0x4de   : > { %v2925_v39 = vadd.f32 %v2917_v21, %v2845_v47  ;;  %v3090_v3 = vsel %vm7306_vm14, %v3063_v33, 0.0  ;;  %5866 = vpow2.f32 %v3140_v12  ;;  %v3099_v9 = vadd.f32 %v3091_v41, %v3043_v28  ;;  %v5863_v18 = vpop.eup %5862 }
 0x4df   : > { %v3098_v56 = vadd.f32 %v3090_v3, %v3042_v45  ;;  %v2980_v51 = vadd.f32 %v2972_v62, %v2924_v5  ;;  %v3069_v16 = vsel %vm8511_vm12, %v3061_v31, %v3054_v1  ;;  %v5865_v27 = vpop.eup %5864  ;;  %v3157_v37 = vadd.f32 1.0, %v5861_v0 }
 0x4e0   : > { %v3116_v54 = vmul.f32 %v7273_v32, %v2925_v39  ;;  %v3114_v34 = vmul.f32 %v7273_v32, %v3099_v9  ;;  %v3159_v48 = vadd.f32 1.0, %v5865_v27  ;;  %v3092_v10 = vsel %vm7374_vm0, %v3069_v16, 0.0 }
 0x4e1   : > { %v3113_v40 = vmul.f32 %v7273_v32, %v3098_v56  ;;  %v3044_v59 = vadd.f32 %v3005_v2, %v2980_v51  ;;  %v3158_v63 = vadd.f32 1.0, %v5863_v18  ;;  %v3165_v61 = vmul.f32 %v3157_v37, %v3157_v37 }
 0x4e2   : > { %v7476_v29 = vadd.f32 %v7295_v36, %v3116_v54  ;;  %v7481_v31 = vadd.f32 %v7295_v36, %v3114_v34  ;;  %v3167_v7 = vmul.f32 %v3159_v48, %v3159_v48  ;;  %vm8515_vm15 = vcmask 523264  }
 0x4e3   : > { %v7484_v33 = vadd.f32 %v7295_v36, %v3113_v40  ;;  %v3100_v13 = vadd.f32 %v3092_v10, %v3044_v59  ;;  %v3166_v22 = vmul.f32 %v3158_v63, %v3158_v63  ;;  %v3189_v21 = vadd.f32 1.0, %v3165_v61  ;;  %vm8516_vm8 = vmmov %vm8515_vm15 }
 0x4e4   : > { %v3139_v50 = vmin.f32 %v7476_v29, 20.0  ;;  %v3137_v12 = vmin.f32 %v7481_v31, 20.0  ;;  %v3191_v47 = vadd.f32 1.0, %v3167_v7  ;;  %v5097_v0 = vadd.f32 -1.0, %v3167_v7  ;;  %vm8525_vm13 = vmmov %vm8516_vm8 }
 0x4e5   : > { %v3136_v6 = vmin.f32 %v7484_v33, 20.0  ;;  %v3115_v15 = vmul.f32 %v7273_v32, %v3100_v13  ;;  %v3190_v45 = vadd.f32 1.0, %v3166_v22  ;;  %v5095_v51 = vadd.f32 -1.0, %v3165_v61  ;;  %vm8526_vm12 = vmmov %vm8516_vm8 }
 0x4e6   : > { %v3154_v24 = vmul.f32 1.442695, %v3139_v50  ;;  %v3150_v38 = vmul.f32 1.442695, %v3137_v12  ;;  %v5096_v18 = vadd.f32 -1.0, %v3166_v22  ;;  %v3183_v48 = vmul.f32 %v5097_v0, %v7379_v35  ;;  %vm8537_vm10 = vmmov %vm8516_vm8 }
 0x4e7   : > { %v3148_v42 = vmul.f32 1.442695, %v3136_v6  ;;  %v7491_v1 = vadd.f32 %v7295_v36, %v3115_v15  ;;  %v3181_v7 = vmul.f32 %v5095_v51, %v7322_v43 }
 0x4e8   : > { %5868 = vpow2.f32 %v3154_v24  ;;  %v3182_v6 = vmul.f32 %v5096_v18, %v7350_v23  ;;  %v8513_v23 = vld [vmem:[#allocation17_spill] sm:$0xff] }
 0x4e9   : > { %v3138_v62 = vmin.f32 %v7491_v1, 20.0  ;;  %5870 = vpow2.f32 %v3150_v38 }
 0x4ea   : > { %5872 = vpow2.f32 %v3148_v42 }
 0x4eb   : > { %v5867_v28 = vpop.eup %5866  ;;  %v3152_v5 = vmul.f32 1.442695, %v3138_v62  ;;  %5874 = vrcp.f32 %v3191_v47 }
 0x4ec   : > { %v3156_v32 = vadd.f32 1.0, %v5867_v28 }
 0x4ed   : > { %5876 = vpow2.f32 %v3152_v5 }
 0x4ee   : > { %5878 = vrcp.f32 %v3189_v21  ;;  %v3164_v39 = vmul.f32 %v3156_v32, %v3156_v32 }
 0x4ef   : > { %5880 = vrcp.f32 %v3190_v45  ;;  %v8514_v45 = vld [vmem:[#allocation18_spill] sm:$0xff] }
 0x4f0   : > { %v3188_v41 = vadd.f32 1.0, %v3164_v39  ;;  %v5094_v59 = vadd.f32 -1.0, %v3164_v39 }
 0x4f2   : > { %5882 = vrcp.f32 %v3188_v41  ;;  %v3180_v38 = vmul.f32 %v5094_v59, %v7422_v55 }
 0x4f5   : > { %v5869_v36 = vpop.eup %5868 }
 0x4f6   : > { %v5871_v3 = vpop.eup %5870  ;;  %v3163_v9 = vadd.f32 1.0, %v5869_v36 }
 0x4f7   : > { %v5873_v56 = vpop.eup %5872  ;;  %v3161_v2 = vadd.f32 1.0, %v5871_v3 }
 0x4f8   : > { %v5875_v16 = vpop.eup %5874  ;;  %v3171_v54 = vmul.f32 %v3163_v9, %v3163_v9  ;;  %v3160_v27 = vadd.f32 1.0, %v5873_v56 }
 0x4f9   : > { %v3169_v40 = vmul.f32 %v3161_v2, %v3161_v2  ;;  %v3207_v15 = vmul.f32 %v5875_v16, %v3183_v48 }
 0x4fa   : > { %v5877_v34 = vpop.eup %5876  ;;  %v3195_v10 = vadd.f32 1.0, %v3171_v54  ;;  %v3168_v63 = vmul.f32 %v3160_v27, %v3160_v27  ;;  %v8517_v27 = vld [vmem:[#allocation23_spill] sm:$0xff] }
 0x4fb   : > { %v5879_v37 = vpop.eup %5878  ;;  %v3162_v13 = vadd.f32 1.0, %v5877_v34  ;;  %v3193_v12 = vadd.f32 1.0, %v3169_v40  ;;  %v7499_v21 = vadd.f32 %v3207_v15, %v6852_v49  ;;  %v5099_v39 = vadd.f32 -1.0, %v3169_v40  ;;  %v5708_v15 = vld [vmem:[%s8325_s13 + $0xf4] ss:$20 sps:$4 sm:$0xff]  }
 0x4fc   : > { %v5881_v50 = vpop.eup %5880  ;;  %5884 = vrcp.f32 %v3195_v10  ;;  %v3192_v61 = vadd.f32 1.0, %v3168_v63  ;;  %v3205_v24 = vmul.f32 %v5879_v37, %v3181_v7  ;;  %v5098_v49 = vadd.f32 -1.0, %v3168_v63  ;;  %v5705_v7 = vld [vmem:[%s8325_s13 + $0x124] ss:$20 sps:$4 sm:$0xff]  }
 0x4fd   : > { %5886 = vrcp.f32 %v3193_v12  ;;  %v3170_v22 = vmul.f32 %v3162_v13, %v3162_v13  ;;  %v3206_v47 = vmul.f32 %v5881_v50, %v3182_v6  ;;  %8512 = vst [vmem:[#allocation26_spill] sm:$0xff] %v7499_v21  ;;  %v3185_v36 = vmul.f32 %v5099_v39, %v7481_v31  ;;  %v5702_v50 = vld [vmem:[%s8325_s13 + $0x11c] ss:$20 sps:$4 sm:$0xff]   ;;  %v5700_v12 = vld [vmem:[%s8325_s13 + $0x118] ss:$20 sps:$4 sm:$0xff]   ;;  %3672 = vmatprep.subr.bf16.mxu0 %v5705_v7 }
 0x4fe   : > { %5888 = vrcp.f32 %v3192_v61  ;;  %v7505_v28 = vadd.f32 %v3205_v24, %v8513_v23  ;;  %v3184_v9 = vmul.f32 %v5098_v49, %v7484_v33  ;;  %v8521_v33 = vld [vmem:[#allocation24_spill] sm:$0xff]  ;;  %v8527_v13 = vmov 0   ;;  %v5703_v6 = vld [vmem:[%s8325_s13 + $0x120] ss:$20 sps:$4 sm:$0xff]   ;;  %3599 = vmatprep.subr.bf16.mxu1 %v5702_v50  ;;  %v5711_v61 = vld [vmem:[%s8325_s13 + $0xfc] ss:$20 sps:$4 sm:$0xff]  }
 0x4ff   : > { %v5883_v42 = vpop.eup %5882  ;;  %v3194_v35 = vadd.f32 1.0, %v3170_v22  ;;  %v7508_v5 = vadd.f32 %v3206_v47, %v8514_v45  ;;  %v5100_v3 = vadd.f32 -1.0, %v3170_v22  ;;  %3600 = vmatpush1.bf16.msra.mxu1 %v5700_v12  ;;  %v5706_v24 = vld [vmem:[%s8325_s13 + $0xf0] ss:$20 sps:$4 sm:$0xff]   ;;  %v5709_v22 = vld [vmem:[%s8325_s13 + $0xf8] ss:$20 sps:$4 sm:$0xff]  }
 0x500   : > { %v3204_v62 = vmul.f32 %v5883_v42, %v3180_v38  ;;  %3601 = vmatprep.subr.bf16.mxu1 %v5708_v15  ;;  %v5714_v38 = vld [vmem:[%s8325_s13 + $0xcc] ss:$20 sps:$4 sm:$0xff]   ;;  %v5717_v42 = vld [vmem:[%s8325_s13 + $0xd4] ss:$20 sps:$4 sm:$0xff]  }
 0x501   : > { %5890 = vrcp.f32 %v3194_v35  ;;  %v3221_v32 = vpack.c.bf16 %v7499_v21, %v7508_v5  ;;  %v3186_v18 = vmul.f32 %v5100_v3, %v7491_v1  ;;  %v5712_v47 = vld [vmem:[%s8325_s13 + $0xc8] ss:$20 sps:$4 sm:$0xff]   ;;  %v5715_v35 = vld [vmem:[%s8325_s13 + $0xd0] ss:$20 sps:$4 sm:$0xff]   ;;  %v5723_v23 = vld [vmem:[%s8325_s13 + $0xac] ss:$20 sps:$4 sm:$0xff]  }
 0x502   : > { %v7502_v43 = vadd.f32 %v3204_v62, %v6856_v53  ;;  %v5101_v53 = vadd.f32 -1.0, %v3171_v54  ;;  %v8519_v54 = vld [vmem:[#allocation22_spill] sm:$0xff]  ;;  %v5718_v45 = vld [vmem:[%s8325_s13 + $0xa0] ss:$20 sps:$4 sm:$0xff]  }
 0x503   : > { %3602 = vmatpush1.bf16.msra.mxu1 %v5706_v24  ;;  %v5720_v62 = vld [vmem:[%s8325_s13 + $0xa4] ss:$20 sps:$4 sm:$0xff]   ;;  %v5120_v39 = vld [vmem:[%s8323_s11 + $0x1] ss:$0 sm:$0xff] }
 0x504   : > { %v3220_v55 = vpack.c.bf16 %v7505_v28, %v7502_v43  ;;  %v3187_v51 = vmul.f32 %v5101_v53, %v7476_v29  ;;  %v8523_v29 = vld [vmem:[#allocation21_spill] sm:$0xff]  ;;  %3603 = vmatprep.subr.bf16.mxu1 %v5714_v38  ;;  %v5121_v49 = vld [vmem:[%s8324_s12 + $0x1] ss:$0 sm:$0xff] }
 0x506   : > { %5417 = vmatprep.mubr.msk.bf16.mxu0 %vm8515_vm15, %v3220_v55  ;;  %v5721_v55 = vld [vmem:[%s8325_s13 + $0xa8] ss:$20 sps:$4 sm:$0xff]   ;;  %vm8530_vm15 = vmmov %vm8516_vm8 }
 0x507   : > { %5418 = vmatmul.mubr.msk.bf16.vlgmr.msra.gmra.mxu0 %vm8516_vm8, %v3221_v32  ;;  %3604 = vmatpush1.bf16.msra.mxu1 %v5712_v47  ;;  %v7590_v32 = vld [vmem:[%s8325_s13 + $0x128] ss:$20 sps:$4 sm:$0xff]  }
 0x508   : > { %3673 = vmatpush1.bf16.msra.mxu0 %v5703_v6  ;;  %3605 = vmatprep.subr.bf16.mxu1 %v5720_v62 }
 0x509   : > { %v5885_v41 = vpop.eup %5884  ;;  %3674 = vmatprep.subr.bf16.mxu0 %v5711_v61 }
 0x50a   : > { %v5887_v0 = vpop.eup %5886  ;;  %v3211_v40 = vmul.f32 %v5885_v41, %v3187_v51 }
 0x50b   : > { %v5889_v56 = vpop.eup %5888  ;;  %v3209_v2 = vmul.f32 %v5887_v0, %v3185_v36  ;;  %3606 = vmatpush1.bf16.msra.mxu1 %v5718_v45 }
 0x50c   : > { %v3208_v16 = vmul.f32 %v5889_v56, %v3184_v9  ;;  %v7532_v63 = vadd.f32 %v3211_v40, %v8523_v29  ;;  %3675 = vmatpush1.bf16.msra.mxu0 %v5709_v22  ;;  %5425 = vmatprep.subr.bf16.mxu1 %v7590_v32 }
 0x50d   : > { %v7521_v34 = vadd.f32 %v3209_v2, %v8517_v27  ;;  %3676 = vmatprep.subr.bf16.mxu0 %v5717_v42 }
 0x50e   : > { %v5891_v59 = vpop.eup %5890  ;;  %v7524_v37 = vadd.f32 %v3208_v16, %v8519_v54  ;;  %8524 = vst [vmem:[#allocation22_spill] sm:$0xff] %v7532_v63 }
 0x50f   : > { %8518 = vst [vmem:[#allocation17_spill] sm:$0xff] %v7521_v34  ;;  %v3210_v31 = vmul.f32 %v5891_v59, %v3186_v18 }
 0x510   : > { %8520 = vst [vmem:[#allocation18_spill] sm:$0xff] %v7524_v37  ;;  %v3222_v48 = vpack.c.bf16 %v7521_v34, %v7524_v37  ;;  %3677 = vmatpush1.bf16.msra.mxu0 %v5715_v35 }
 0x511   : > { %v7529_v10 = vadd.f32 %v3210_v31, %v8521_v33  ;;  %3678 = vmatprep.subr.bf16.mxu0 %v5723_v23 }
 0x512   : > { %5421 = vmatprep.mubr.msk.bf16.mxu0 %vm8525_vm13, %v3222_v48  ;;  %vm8531_vm13 = vmmov %vm8516_vm8 }
 0x513   : > { %8522 = vst [vmem:[#allocation23_spill] sm:$0xff] %v7529_v10  ;;  %v3223_v1 = vpack.c.bf16 %v7532_v63, %v7529_v10 }
 0x514   : > { %3679 = vmatpush1.bf16.msra.mxu0 %v5721_v55 }
 0x515   : > { %5422 = vmatmul.mubr.msk.bf16.gmra.mxu0 %vm8526_vm12, %v3223_v1  ;;  %vm8532_vm12 = vmmov %vm8516_vm8 }
 0x516   : > { %3696 = vmatprep.mubr.bf16.mxu0 %v8527_v13 }
 0x5c7   : > { %v5419_v53 = vpop.f32.mrf.mxu0 }
 0x5c8   : > { %v3346_v41 = vmul.f32 %v5419_v53, %v5120_v39 }
 0x5c9   : > { %v3307_v36 = vpop.f32.mrf.mxu0 }
 0x5ca   : > { %v7599_v3 = vadd.f32 %v5121_v49, %v3346_v41  ;;  %v3344_v0 = vmul.f32 %v5120_v39, %v3307_v36 }
 0x5cb   : > { %v5420_v9 = vpop.f32.mrf.mxu0 }
 0x5cc   : > { %v7601_v56 = vadd.f32 %v5121_v49, %v3344_v0  ;;  %v3347_v51 = vmul.f32 %v5420_v9, %v5120_v39  ;;  %v3368_v2 = vmin.f32 %v7599_v3, 20.0 }
 0x5cd   : > { %v3310_v16 = vpop.f32.mrf.mxu0 }
 0x5ce   : > { %v3366_v18 = vmin.f32 %v7601_v56, 20.0  ;;  %v7605_v27 = vadd.f32 %v5121_v49, %v3347_v51  ;;  %v3345_v40 = vmul.f32 %v5120_v39, %v3310_v16  ;;  %v3378_v48 = vmul.f32 1.442695, %v3368_v2 }
 0x5d0   : > { %v3374_v59 = vmul.f32 1.442695, %v3366_v18  ;;  %v3369_v54 = vmin.f32 %v7605_v27, 20.0  ;;  %v7608_v31 = vadd.f32 %v5121_v49, %v3345_v40 }
 0x5d2   : > { %5892 = vpow2.f32 %v3374_v59  ;;  %v3380_v33 = vmul.f32 1.442695, %v3369_v54  ;;  %v3367_v29 = vmin.f32 %v7608_v31, 20.0 }
 0x5d4   : > { %5894 = vpow2.f32 %v3380_v33  ;;  %v3376_v1 = vmul.f32 1.442695, %v3367_v29 }
 0x5d5   : > { %5896 = vpow2.f32 %v3378_v48  ;;  %v5423_v50 = vpop.f32.mrf.mxu0 }
 0x5d6   : > { %5898 = vpow2.f32 %v3376_v1  ;;  %v3350_v7 = vmul.f32 %v5423_v50, %v5120_v39 }
 0x5d7   : > { %v3323_v12 = vpop.f32.mrf.mxu0 }
 0x5d8   : > { %v7611_v6 = vadd.f32 %v5121_v49, %v3350_v7  ;;  %v3348_v15 = vmul.f32 %v5120_v39, %v3323_v12  ;;  %v6028_v7 = vld [vmem:[%s8449_s23] ss:$0 sm:$0xff]  ;;  %v8528_v12 = vld [vmem:[#allocation25_spill] sm:$0xff] }
 0x5d9   : > { %v5424_v61 = vpop.f32.mrf.mxu0 }
 0x5da   : > { %v7613_v24 = vadd.f32 %v5121_v49, %v3348_v15  ;;  %v3351_v22 = vmul.f32 %v5424_v61, %v5120_v39  ;;  %v3372_v38 = vmin.f32 %v7611_v6, 20.0  ;;  %v1730_v15 = vmul.f32 %v6028_v7, %v8528_v12 }
 0x5db   : > { %v3326_v42 = vpop.f32.mrf.mxu0 }
 0x5dc   : > { %v3370_v47 = vmin.f32 %v7613_v24, 20.0  ;;  %v7617_v35 = vadd.f32 %v5121_v49, %v3351_v22  ;;  %v3349_v62 = vmul.f32 %v5120_v39, %v3326_v42  ;;  %v3386_v36 = vmul.f32 1.442695, %v3372_v38  ;;  %v8529_v38 = vld [vmem:[#allocation12_spill] sm:$0xff] }
 0x5dd   : > { %v1729_v42 = vmul.f32 %v6028_v7, %v8529_v38 }
 0x5de   : > { %v3382_v45 = vmul.f32 1.442695, %v3370_v47  ;;  %v3373_v55 = vmin.f32 %v7617_v35, 20.0  ;;  %v7620_v53 = vadd.f32 %v5121_v49, %v3349_v62 }
 0x5df   : > { %v5893_v23 = vpop.eup %5892 }
 0x5e0   : > { %v3390_v41 = vadd.f32 1.0, %v5893_v23  ;;  %5900 = vpow2.f32 %v3382_v45  ;;  %v3388_v9 = vmul.f32 1.442695, %v3373_v55  ;;  %v3371_v51 = vmin.f32 %v7620_v53, 20.0  ;;  %v6029_v23 = vld [vmem:[%s8452_s0] ss:$0 sm:$0xff] }
 0x5e1   : > { %v5895_v0 = vpop.eup %5894  ;;  %v7631_v45 = vadd.f32 %v6029_v23, %v1730_v15 }
 0x5e2   : > { %v5897_v2 = vpop.eup %5896  ;;  %v3398_v16 = vmul.f32 %v3390_v41, %v3390_v41  ;;  %v3393_v40 = vadd.f32 1.0, %v5895_v0  ;;  %5902 = vpow2.f32 %v3388_v9  ;;  %v3384_v59 = vmul.f32 1.442695, %v3371_v51 }
 0x5e3   : > { %v5899_v18 = vpop.eup %5898  ;;  %5904 = vpow2.f32 %v3386_v36  ;;  %v3392_v39 = vadd.f32 1.0, %v5897_v2  ;;  %v7633_v0 = vadd.f32 %v6029_v23, %v1729_v42 }
 0x5e4   : > { %v3422_v54 = vadd.f32 1.0, %v3398_v16  ;;  %v3391_v48 = vadd.f32 1.0, %v5899_v18  ;;  %5906 = vpow2.f32 %v3384_v59  ;;  %v3401_v49 = vmul.f32 %v3393_v40, %v3393_v40 }
 0x5e5   : > { %v3400_v29 = vmul.f32 %v3392_v39, %v3392_v39  ;;  %v5122_v9 = vadd.f32 -1.0, %v3398_v16  ;;  %v1752_v18 = vmin.f32 %v7631_v45, 20.0 }
 0x5e6   : > { %v3399_v33 = vmul.f32 %v3391_v48, %v3391_v48  ;;  %5908 = vrcp.f32 %v3422_v54  ;;  %v3425_v50 = vadd.f32 1.0, %v3401_v49  ;;  %v1751_v48 = vmin.f32 %v7633_v0, 20.0 }
 0x5e7   : > { %v3424_v61 = vadd.f32 1.0, %v3400_v29 }
 0x5e8   : > { %v3423_v1 = vadd.f32 1.0, %v3399_v33  ;;  %v5123_v51 = vadd.f32 -1.0, %v3399_v33 }
 0x5ea   : > { %5910 = vrcp.f32 %v3423_v1  ;;  %v3415_v7 = vmul.f32 %v5123_v51, %v7608_v31 }
 0x5eb   : > { %5912 = vrcp.f32 %v3425_v50  ;;  %v3414_v50 = vmul.f32 %v5122_v9, %v7601_v56  ;;  %v5725_v56 = vld [vmem:[%s8325_s13 + $0x100] ss:$20 sps:$4 sm:$0xff]  }
 0x5ec   : > { %5914 = vrcp.f32 %v3424_v61  ;;  %v1765_v61 = vmul.f32 1.442695, %v1752_v18 }
 0x5ed   : > { %v5901_v22 = vpop.eup %5900 }
 0x5ee   : > { %v3394_v47 = vadd.f32 1.0, %v5901_v22  ;;  %v5125_v22 = vadd.f32 -1.0, %v3401_v49 }
 0x5ef   : > { %v5903_v62 = vpop.eup %5902 }
 0x5f0   : > { %v5905_v55 = vpop.eup %5904  ;;  %v3402_v41 = vmul.f32 %v3394_v47, %v3394_v47  ;;  %v3397_v2 = vadd.f32 1.0, %v5903_v62  ;;  %v1763_v47 = vmul.f32 1.442695, %v1751_v48  ;;  %v5124_v62 = vadd.f32 -1.0, %v3400_v29 }
 0x5f1   : > { %v5907_v36 = vpop.eup %5906  ;;  %v3396_v39 = vadd.f32 1.0, %v5905_v55  ;;  %v3417_v31 = vmul.f32 %v5125_v22, %v7605_v27  ;;  %v5726_v27 = vld [vmem:[%s8325_s13 + $0xd8] ss:$20 sps:$4 sm:$0xff]  }
 0x5f2   : > { %v3426_v40 = vadd.f32 1.0, %v3402_v41  ;;  %v3395_v59 = vadd.f32 1.0, %v5907_v36  ;;  %v3405_v12 = vmul.f32 %v3397_v2, %v3397_v2  ;;  %v3416_v29 = vmul.f32 %v5124_v62, %v7599_v3  ;;  %v5727_v3 = vld [vmem:[%s8325_s13 + $0xb0] ss:$20 sps:$4 sm:$0xff]  }
 0x5f3   : > { %v5909_v54 = vpop.eup %5908  ;;  %v3404_v42 = vmul.f32 %v3396_v39, %v3396_v39  ;;  %v5126_v18 = vadd.f32 -1.0, %v3402_v41 }
 0x5f4   : > { %v3403_v1 = vmul.f32 %v3395_v59, %v3395_v59  ;;  %5916 = vrcp.f32 %v3426_v40  ;;  %v3438_v33 = vmul.f32 %v5909_v54, %v3414_v50  ;;  %v3429_v55 = vadd.f32 1.0, %v3405_v12  ;;  %v5728_v50 = vld [vmem:[%s8332_s20 + $0x18] sm:$0xff]  }
 0x5f5   : > { %v3428_v9 = vadd.f32 1.0, %v3404_v42 }
 0x5f6   : > { %v3427_v16 = vadd.f32 1.0, %v3403_v1  ;;  %v5127_v40 = vadd.f32 -1.0, %v3403_v1 }
 0x5f7   : > { %v5911_v15 = vpop.eup %5910 }
 0x5f8   : > { %v3439_v38 = vmul.f32 %v5911_v15, %v3415_v7  ;;  %5918 = vrcp.f32 %v3427_v16  ;;  %v5913_v36 = vpop.eup %5912  ;;  %v3419_v54 = vmul.f32 %v5127_v40, %v7620_v53  ;;  %v5129_v15 = vadd.f32 -1.0, %v3405_v12 }
 0x5f9   : > { %5920 = vpow2.f32 %v1765_v61  ;;  %v5915_v49 = vpop.eup %5914  ;;  %v3441_v51 = vmul.f32 %v5913_v36, %v3417_v31 }
 0x5fa   : > { %v7639_v23 = vpack.c.bf16 %v3439_v38, %v3438_v33  ;;  %5922 = vpow2.f32 %v1763_v47  ;;  %v3440_v2 = vmul.f32 %v5915_v49, %v3416_v29  ;;  %v3421_v22 = vmul.f32 %v5129_v15, %v7617_v35 }
 0x5fb   : > { %5924 = vrcp.f32 %v3429_v55 }
 0x5fc   : > { %5174 = vmatmul.mubr.msk.bf16.vlgmr.msra.gmra.mxu1 %vm8530_vm15, %v7639_v23  ;;  %5178 = vmatmul.mubr.msk.bf16.vlgmr.msra.gmra.mxu0 %vm8516_vm8, %v7639_v23  ;;  %5926 = vrcp.f32 %v3428_v9  ;;  %v3447_v59 = vpack.c.bf16 %v3441_v51, %v3440_v2  ;;  %vm8533_vm15 = vmmov %vm8516_vm8  ;;  %v8540_v2 = vld [vmem:[#allocation15_spill] sm:$0xff] }
 0x5fd   : > { %3633 = vmatprep.mubr.bf16.mxu1 %v8527_v13  ;;  %3706 = vmatprep.mubr.bf16.mxu0 %v8527_v13 }
 0x5fe   : > { %5426 = vmatpush3.bf16.msra.mxu1 %v7590_v32  ;;  %v3418_v32 = vmul.f32 %v5126_v18, %v7613_v24  ;;  %v5128_v24 = vadd.f32 -1.0, %v3404_v42 }
 0x5ff   : > { %5427 = vmatprep.subr.bf16.mxu1 %v5725_v56 }
 0x600   : > { %v3420_v12 = vmul.f32 %v5128_v24, %v7611_v6  ;;  %v5730_v6 = vld [vmem:[%s8332_s20 + $0x8] sm:$0xff]  }
 0x601   : > { %v5917_v39 = vpop.eup %5916 }
 0x602   : > { %5428 = vmatpush3.bf16.msra.mxu1 %v5725_v56  ;;  %v3442_v48 = vmul.f32 %v5917_v39, %v3418_v32 }
 0x603   : > { %5429 = vmatprep.subr.bf16.mxu1 %v5726_v27 }
 0x604   : > { %5175 = vmatmul.mubr.msk.bf16.gmra.mxu1 %vm8531_vm13, %v3447_v59  ;;  %5179 = vmatmul.mubr.msk.bf16.gmra.mxu0 %vm8532_vm12, %v3447_v59  ;;  %vm8534_vm13 = vmmov %vm8516_vm8 }
 0x605   : > { %3643 = vmatprep.mubr.bf16.mxu1 %v8527_v13  ;;  %3716 = vmatprep.mubr.bf16.mxu0 %v8527_v13  ;;  %v5919_v41 = vpop.eup %5918  ;;  %vm8535_vm12 = vmmov %vm8516_vm8 }
 0x606   : > { %5430 = vmatpush3.bf16.msra.mxu1 %v5726_v27  ;;  %v3443_v1 = vmul.f32 %v5919_v41, %v3419_v54  ;;  %v5921_v7 = vpop.eup %5920  ;;  %v8539_v27 = vld [vmem:[#allocation16_spill] sm:$0xff]  ;;  %v8543_v54 = vld [vmem:[#allocation14_spill] sm:$0xff]  ;;  %v8544_v41 = vld [vmem:[#allocation13_spill] sm:$0xff] }
 0x607   : > { %5431 = vmatprep.subr.bf16.mxu1 %v5727_v3  ;;  %v5923_v16 = vpop.eup %5922  ;;  %v1776_v33 = vadd.f32 1.0, %v5921_v7  ;;  %v8541_v18 = vpack.c.bf16 %v8539_v27, %v8540_v2 }
 0x608   : > { %v3448_v61 = vpack.c.bf16 %v3443_v1, %v3442_v48  ;;  %v5925_v53 = vpop.eup %5924  ;;  %v1775_v47 = vadd.f32 1.0, %v5923_v16  ;;  %v8545_v48 = vpack.c.bf16 %v8543_v54, %v8544_v41  ;;  %v8549_v1 = vld [vmem:[#allocation19_spill] sm:$0xff] }
 0x609   : > { %v5927_v38 = vpop.eup %5926  ;;  %v3445_v62 = vmul.f32 %v5925_v53, %v3421_v22  ;;  %v1784_v42 = vmul.f32 %v1776_v33, %v1776_v33 }
 0x60a   : > { %5432 = vmatpush3.bf16.msra.mxu1 %v5727_v3  ;;  %v3444_v55 = vmul.f32 %v5927_v38, %v3420_v12  ;;  %v1783_v36 = vmul.f32 %v1775_v47, %v1775_v47 }
 0x60b   : > { %5457 = vmatprep.subr.bf16.mxu1 %v5728_v50  ;;  %v1808_v31 = vadd.f32 1.0, %v1784_v42  ;;  %v5021_v9 = vadd.f32 -1.0, %v1784_v42 }
 0x60c   : > { %5176 = vmatmul.mubr.msk.bf16.gmra.mxu1 %vm8533_vm15, %v3448_v61  ;;  %5180 = vmatmul.mubr.msk.bf16.gmra.mxu0 %vm8516_vm8, %v3448_v61  ;;  %v3449_v56 = vpack.c.bf16 %v3445_v62, %v3444_v55  ;;  %v1807_v35 = vadd.f32 1.0, %v1783_v36  ;;  %vm8536_vm15 = vmmov %vm8516_vm8  ;;  %v5020_v49 = vadd.f32 -1.0, %v1783_v36 }
 0x60d   : > { %3653 = vmatprep.mubr.bf16.mxu1 %v8527_v13  ;;  %3726 = vmatprep.mubr.bf16.mxu0 %v8527_v13  ;;  %5928 = vrcp.f32 %v1808_v31  ;;  %v5729_v13 = vld [vmem:[%s8332_s20 + $0x10] sm:$0xff]   ;;  %v1800_v51 = vmul.f32 %v5021_v9, %v7631_v45  ;;  %v8548_v45 = vld [vmem:[#allocation20_spill] sm:$0xff] }
 0x60e   : > { %5930 = vrcp.f32 %v1807_v35 }
 0x614   : > { %5177 = vmatmul.mubr.msk.bf16.gmra.mxu1 %vm8534_vm13, %v3449_v56  ;;  %5181 = vmatmul.mubr.msk.bf16.gmra.mxu0 %vm8535_vm12, %v3449_v56  ;;  %vm8538_vm13 = vmmov %vm8516_vm8 }
 0x615   : > { %5433 = vmatprep.mubr.msk.bf16.mxu1 %vm8536_vm15, %v7639_v23  ;;  %v5731_v23 = vld [vmem:[%s8332_s20] sm:$0xff]   ;;  %vm8546_vm12 = vmmov %vm8516_vm8 }
 0x616   : > { %vm8547_vm15 = vmmov %vm8516_vm8 }
 0x61a   : > { %v5929_v29 = vpop.eup %5928 }
 0x61b   : > { %v5931_v40 = vpop.eup %5930  ;;  %v1824_v3 = vmul.f32 %v5929_v29, %v1800_v51 }
 0x61c   : > { %5434 = vmatmul.mubr.msk.bf16.vlgmr.msra.gmra.mxu1 %vm8516_vm8, %v3447_v59  ;;  %v1799_v59 = vmul.f32 %v5020_v49, %v7633_v0 }
 0x61d   : > { %5437 = vmatprep.mubr.msk.bf16.mxu1 %vm8537_vm10, %v3448_v61  ;;  %5458 = vmatpush3.bf16.msra.mxu1 %v5728_v50  ;;  %vm8542_vm10 = vmmov %vm8516_vm8  ;;  %v8550_v50 = vpack.c.bf16 %v8548_v45, %v8549_v1 }
 0x61e   : > { %5459 = vmatprep.subr.bf16.mxu1 %v5729_v13  ;;  %v1823_v39 = vmul.f32 %v5931_v40, %v1799_v59 }
 0x620   : > { %v4511_v32 = vpack.c.bf16 %v1824_v3, %v1823_v39 }
 0x621   : > { %5460 = vmatpush3.bf16.msra.mxu1 %v5729_v13 }
 0x622   : > { %5461 = vmatprep.subr.bf16.mxu1 %v5730_v6 }
 0x624   : > { %5438 = vmatmul.mubr.msk.bf16.gmra.mxu1 %vm8538_vm13, %v3449_v56  ;;  %vm8552_vm13 = vcmp.lt.s32.totalorder %v6522_v26, 1 }
 0x625   : > { %5462 = vmatpush3.bf16.msra.mxu1 %v5730_v6  ;;  %5465 = vmatprep.mubr.msk.bf16.mxu1 %vm8542_vm10, %v8541_v18  ;;  %vm8553_vm10 = vcmp.lt.s32.totalorder %v6522_v26, 7 }
 0x626   : > { %5463 = vmatprep.subr.bf16.mxu1 %v5731_v23 }
 0x629   : > { %5464 = vmatpush3.bf16.msra.mxu1 %v5731_v23 }
 0x62c   : > { %5466 = vmatmul.mubr.msk.bf16.vlgmr.msra.gmra.mxu1 %vm8546_vm12, %v8545_v48  ;;  %vm8554_vm12 = vmmov %vm8552_vm13 }
 0x62d   : > { %5469 = vmatprep.mubr.msk.bf16.mxu1 %vm8547_vm15, %v4511_v32  ;;  %vm8555_vm15 = vmmov %vm8554_vm12 }
 0x634   : > { %5470 = vmatmul.mubr.msk.bf16.gmra.mxu1 %vm8516_vm8, %v8550_v50  ;;  %vm8556_vm8 = vmmov %vm8553_vm10 }
 0x6bc   : > { %v7705_v7 = vpop.f32.mrf.mxu1  ;;  %v7707_v15 = vpop.f32.mrf.mxu0 }
 0x6bd   : > { %3842 = vrot.lane.b32.xlu0 %v7705_v7, %s8551_s28  ;;  %v8398_v53 = vrot.slane %v7705_v7, 7 }
 0x6be   : > { %v3627_v0 = vpop.f32.mrf.mxu1  ;;  %v3700_v61 = vpop.f32.mrf.mxu0 }
 0x6bf   : > { %3922 = vrot.lane.b32.xlu1 %v3627_v0, %s8551_s28  ;;  %v3882_v22 = vrot.slane %v3627_v0, 1  ;;  %v4042_v12 = vrot.slane %v3700_v61, 7 }
 0x6c0   : > { %v3629_v16 = vpop.f32.mrf.mxu1  ;;  %v7712_v24 = vpop.f32.mrf.mxu0 }
 0x6c1   : > { %v3803_v33 = vrot.slane %v3629_v16, 7  ;;  %3986 = vrot.lane.b32.xlu0 %v7707_v15, %s8551_s28 }
 0x6c2   : > { %v3631_v38 = vpop.f32.mrf.mxu1  ;;  %v7717_v47 = vpop.f32.mrf.mxu0 }
 0x6c3   : > { %v3883_v62 = vrot.slane %v3631_v38, 1  ;;  %v4043_v42 = vrot.slane %v7717_v47, 7  ;;  %3988 = vrot.lane.b32.xlu1 %v7712_v24, %s8551_s28  ;;  %v3816_v55 = vsel %vm8552_vm13, %v8398_v53, %v3803_v33  ;;  %vm8557_vm13 = vmmov %vm8554_vm12 }
 0x6c4   : > { %v3635_v36 = vpop.f32.mrf.mxu1  ;;  %v3708_v56 = vpop.f32.mrf.mxu0  ;;  %v3820_v31 = vsel %vm6550_vm1, %v3816_v55, 0.0 }
 0x6c5   : > { %v3804_v35 = vrot.slane %v3635_v36, 7  ;;  %v7728_v13 = vadd.f32 %v3820_v31, %v3708_v56  ;;  %3844 = vrot.lane.b32.xlu0 %v3629_v16, %s8551_s28  ;;  %v7733_v6 = vsel %vm8553_vm10, %v3882_v22, %v3883_v62  ;;  %v7737_v9 = vsel %vm8554_vm12, %v4042_v12, %v4043_v42  ;;  %vm8558_vm10 = vmmov %vm8554_vm12 }
 0x6c6   : > { %v3637_v23 = vpop.f32.mrf.mxu1  ;;  %v7739_v49 = vpop.f32.mrf.mxu0  ;;  %vm8559_vm12 = vmmov %vm8556_vm8 }
 0x6c7   : > { %v3884_v29 = vrot.slane %v3637_v23, 1  ;;  %v4044_v51 = vrot.slane %v7739_v49, 7  ;;  %3846 = vrot.lane.b32.xlu1 %v3635_v36, %s8551_s28  ;;  %v3815_v27 = vsel %vm8555_vm15, %v3803_v33, %v3804_v35  ;;  %vm8560_vm15 = vmmov %vm8558_vm10 }
 0x6c8   : > { %v3639_v2 = vpop.f32.mrf.mxu1  ;;  %v3712_v18 = vpop.f32.mrf.mxu0  ;;  %v3821_v40 = vsel %vm6572_vm2, %v3815_v27, 0.0 }
 0x6c9   : > { %v3805_v59 = vrot.slane %v3639_v2, 7  ;;  %v7747_v3 = vadd.f32 %v3821_v40, %v3712_v18  ;;  %3924 = vrot.lane.b32.xlu0 %v3631_v38, %s8551_s28  ;;  %v7752_v39 = vsel %vm8556_vm8, %v3883_v62, %v3884_v29  ;;  %v7756_v32 = vsel %vm8557_vm13, %v4043_v42, %v4044_v51  ;;  %vm8561_vm8 = vmmov %vm8558_vm10 }
 0x6ca   : > { %v3641_v54 = vpop.f32.mrf.mxu1  ;;  %v7758_v41 = vpop.f32.mrf.mxu0  ;;  %vm8562_vm13 = vmmov %vm8559_vm12 }
 0x6cb   : > { %v3885_v48 = vrot.slane %v3641_v54, 1  ;;  %v4045_v45 = vrot.slane %v7758_v41, 7  ;;  %3992 = vrot.lane.b32.xlu1 %v3712_v18, %s8551_s28  ;;  %v3814_v1 = vsel %vm8558_vm10, %v3804_v35, %v3805_v59  ;;  %vm8563_vm10 = vmmov %vm8561_vm8 }
 0x6cc   : > { %v3645_v50 = vpop.f32.mrf.mxu1  ;;  %v3718_v0 = vpop.f32.mrf.mxu0  ;;  %v3822_v61 = vsel %vm6608_vm3, %v3814_v1, 0.0 }
 0x6cd   : > { %3990 = vrot.lane.b32.xlu0 %v3708_v56, %s8551_s28  ;;  %v3806_v16 = vrot.slane %v3645_v50, 7  ;;  %v7767_v33 = vadd.f32 %v3822_v61, %v3718_v0  ;;  %v7771_v22 = vsel %vm8559_vm12, %v3884_v29, %v3885_v48  ;;  %v7775_v38 = vsel %vm8560_vm15, %v4044_v51, %v4045_v45  ;;  %vm8564_vm12 = vmmov %vm8561_vm8 }
 0x6ce   : > { %v3647_v12 = vpop.f32.mrf.mxu1  ;;  %v3720_v62 = vpop.f32.mrf.mxu0  ;;  %vm8565_vm15 = vmmov %vm8562_vm13 }
 0x6cf   : > { %3848 = vrot.lane.b32.xlu1 %v3639_v2, %s8551_s28  ;;  %v3886_v42 = vrot.slane %v3647_v12, 1  ;;  %v4046_v55 = vrot.slane %v3720_v62, 7  ;;  %v3813_v36 = vsel %vm8561_vm8, %v3805_v59, %v3806_v16 }
 0x6d0   : > { %v3649_v56 = vpop.f32.mrf.mxu1  ;;  %v3722_v31 = vpop.f32.mrf.mxu0  ;;  %v3823_v35 = vsel %vm6628_vm5, %v3813_v36, 0.0 }
 0x6d1   : > { %3926 = vrot.lane.b32.xlu0 %v3637_v23, %s8551_s28  ;;  %v3807_v29 = vrot.slane %v3649_v56, 7  ;;  %v7783_v27 = vadd.f32 %v3823_v35, %v3722_v31  ;;  %v7787_v51 = vsel %vm8562_vm13, %v3885_v48, %v3886_v42  ;;  %v7791_v2 = vsel %vm8563_vm10, %v4045_v45, %v4046_v55  ;;  %vm8566_vm13 = vmmov %vm8561_vm8 }
 0x6d2   : > { %v3651_v18 = vpop.f32.mrf.mxu1  ;;  %v3724_v40 = vpop.f32.mrf.mxu0  ;;  %vm8567_vm10 = vmmov %vm8565_vm15  ;;  %v4061_v44 = vsel %vm6572_vm2, %v7791_v2, 0.0 }
 0x6d3   : > { %3928 = vrot.lane.b32.xlu1 %v3641_v54, %s8551_s28  ;;  %v3887_v59 = vrot.slane %v3651_v18, 1  ;;  %v4047_v1 = vrot.slane %v3724_v40, 7  ;;  %v3812_v23 = vsel %vm8564_vm12, %v3806_v16, %v3807_v29  ;;  %vm8568_vm12 = vmmov %vm8561_vm8 }
 0x6d4   : > { %v3655_v61 = vpop.f32.mrf.mxu1  ;;  %v3728_v36 = vpop.f32.mrf.mxu0  ;;  %v3824_v35 = vsel %vm6641_vm6, %v3812_v23, 0.0 }
 0x6d5   : > { %3994 = vrot.lane.b32.xlu0 %v3718_v0, %s8551_s28  ;;  %v3808_v48 = vrot.slane %v3655_v61, 7  ;;  %v7799_v53 = vadd.f32 %v3824_v35, %v3728_v36  ;;  %v7803_v45 = vsel %vm8565_vm15, %v3886_v42, %v3887_v59  ;;  %v7807_v54 = vsel %vm8561_vm8, %v4046_v55, %v4047_v1  ;;  %vm8570_vm15 = vmmov %vm8561_vm8 }
 0x6d6   : > { %v7809_v63 = vpop.f32.mrf.mxu0  ;;  %v3657_v16 = vpop.f32.mrf.mxu1  ;;  %vm8572_vm8 = vmmov %vm8567_vm10 }
 0x6d7   : > { %v8404_v10 = vrot.slane %v7809_v63, 7  ;;  %3930 = vrot.lane.b32.xlu1 %v3647_v12, %s8551_s28  ;;  %v3888_v23 = vrot.slane %v3657_v16, 1  ;;  %v3811_v0 = vsel %vm8566_vm13, %v3807_v29, %v3808_v48  ;;  %vm8573_vm13 = vnez %v8475_v8 }
 0x6d8   : > { %v3732_v35 = vpop.f32.mrf.mxu0  ;;  %v3825_v42 = vsel %vm6651_vm7, %v3811_v0, 0.0  ;;  %v3659_v34 = vpop.f32.mrf.mxu1  ;;  %v8569_v0 = vrot.slane %v7705_v7, 7 }
 0x6d9   : > { %v7817_v37 = vadd.f32 %v3825_v42, %v3732_v35  ;;  %3850 = vrot.lane.b32.xlu0 %v3645_v50, %s8551_s28  ;;  %v3809_v55 = vrot.slane %v3659_v34, 7  ;;  %v7822_v21 = vsel %vm8567_vm10, %v3887_v59, %v3888_v23  ;;  %v7828_v12 = vsel %vm8568_vm12, %v4047_v1, %v8404_v10 }
 0x6da   : > { %v3661_v29 = vpop.f32.mrf.mxu1  ;;  %v7859_v7 = vpop.f32.mrf.mxu0  ;;  %vm8574_vm10 = vnez %v8478_v4 }
 0x6db   : > { %3852 = vrot.lane.b32.xlu1 %v3649_v56, %s8551_s28  ;;  %v3889_v48 = vrot.slane %v3661_v29, 1  ;;  %v3817_v50 = vsel %vm8570_vm15, %v3809_v55, %v8569_v0  ;;  %vm8575_vm15 = vmmov %vm8572_vm8 }
 0x6dc   : > { %v3819_v42 = vsel %vm6620_vm4, %v3817_v50, 0.0  ;;  %v7892_v50 = vpop.f32.mrf.mxu1 }
 0x6dd   : > { %3932 = vrot.lane.b32.xlu0 %v3651_v18, %s8551_s28  ;;  %v3827_v59 = vadd.f32 %v3819_v42, %v7712_v24  ;;  %v7841_v1 = vsel %vm8572_vm8, %v3888_v23, %v3889_v48  ;;  %v5732_v24 = vld [vmem:[%s8328_s16 + $0x18] sm:$0xff]  }
 0x6de   : > { %5441 = vmatprep.subr.bf16.mxu0 %v5732_v24 }
 0x6df   : > { %3996 = vrot.lane.b32.xlu1 %v3722_v31, %s8551_s28  ;;  %5442 = vmatpush3.bf16.msra.mxu0 %v5732_v24  ;;  %v3899_v31 = vsel %vm7188_vm11, %v7733_v6, 0.0  ;;  %v3901_v6 = vsel %vm8574_vm10, %v7771_v22, 0.0 }
 0x6e1   : > { %3998 = vrot.lane.b32.xlu0 %v3728_v36, %s8551_s28 }
 0x6e3   : > { %3936 = vrot.lane.b32.xlu1 %v3661_v29, %s8551_s28 }
 0x6e5   : > { %3934 = vrot.lane.b32.xlu0 %v3657_v16, %s8551_s28 }
 0x6e7   : > { %4084 = vrot.lane.b32.xlu1 %v7717_v47, %s8551_s28  ;;  %v5733_v47 = vld [vmem:[%s8328_s16 + $0x10] sm:$0xff]  }
 0x6e8   : > { %5443 = vmatprep.subr.bf16.mxu0 %v5733_v47 }
 0x6e9   : > { %4086 = vrot.lane.b32.xlu0 %v7739_v49, %s8551_s28  ;;  %5444 = vmatpush3.bf16.msra.mxu0 %v5733_v47  ;;  %v5734_v49 = vld [vmem:[%s8328_s16 + $0x8] sm:$0xff]  }
 0x6ea   : > { %5445 = vmatprep.subr.bf16.mxu0 %v5734_v49 }
 0x6eb   : > { %4000 = vrot.lane.b32.xlu1 %v3732_v35, %s8551_s28  ;;  %v3900_v35 = vsel %vm8573_vm13, %v7752_v39, 0.0 }
 0x6ed   : > { %4088 = vrot.lane.b32.xlu0 %v7758_v41, %s8551_s28  ;;  %5446 = vmatpush3.bf16.msra.mxu0 %v5734_v49  ;;  %v5735_v41 = vld [vmem:[%s8328_s16] sm:$0xff]   ;;  %v7901_v49 = vpop.f32.mrf.mxu1 }
 0x6ee   : > { %5447 = vmatprep.subr.bf16.mxu0 %v5735_v41 }
 0x6ef   : > { %4090 = vrot.lane.b32.xlu1 %v3720_v62, %s8551_s28 }
 0x6f1   : > { %3854 = vrot.lane.b32.xlu0 %v3655_v61, %s8551_s28  ;;  %5448 = vmatpush3.bf16.msra.mxu0 %v5735_v41 }
 0x6f3   : > { %4092 = vrot.lane.b32.xlu1 %v3724_v40, %s8551_s28 }
 0x6f5   : > { %4094 = vrot.lane.b32.xlu0 %v7809_v63, %s8551_s28 }
 0x6f7   : > { %4096 = vrot.lane.b32.xlu1 %v7859_v7, %s8551_s28  ;;  %s4921_s28 = sshll.u32 %s701_s4, 6 }
 0x6f8   : > { %s8245_s3 = scalar_lea.vmem [#allocation2], %s4921_s28  ;;  %s6094_s28 = smov [#allocation2]  }
 0x6f9   : > { %s4855_s27 = sshll.u32 %s8245_s3, 4  ;;  %s6034_s25 = sshll.u32 %s6094_s28, 4  ;;  %s8266_s27 = int_to_ptr.vmem [resolvable:$true] %s4855_s27  ;;  %s6035_s25 = int_to_ptr.vmem [resolvable:$false] %s6034_s25 }
 0x6fa   : > { %s6030_s6 = scalar_lea.vmem %s8266_s27, 1024  ;;  %s6036_s1 = scalar_lea.vmem %s6035_s25, 2048 }
 0x6fb   : > { %p6031_p11 = scmp.ne.s32.totalorder %s8266_s27, %s6030_s6  ;;  %p6037_p0 = scmp.lt.s32.totalorder %s8266_s27, %s6035_s25 }
 0x6fc   : > { %p6038_p1 = scmp.lt.s32.totalorder %s6036_s1, %s6030_s6 }
 0x6fd   : > { %p6032_p12 = pnand %p6031_p11, %p6255_p5 }
 0x6fe   : > { %p6039_p2 = por %p6038_p1, %p6037_p0 }
 0x6ff   : > { %p6033_p13 = pneg %p6032_p12 }
 0x701   : > { %p6040_p3 = pnand %p6039_p2, %p6033_p13 }
 0x72f   : > { %v3843_v62 = vpop.permute.xlu0 %3842 }
 0x730   : > { %v3875_v56 = vadd.f32 %v3843_v62, %v3827_v59 }
 0x731   : > { %v7878_v18 = vpop.permute.xlu1 %3922 }
 0x732   : > { %v3907_v40 = vadd.f32 %v3899_v31, %v3875_v56  ;;  %v3946_v42 = vrot.slane %v7878_v18, 7 }
 0x733   : > { %v7880_v61 = vpop.permute.xlu0 %3986 }
 0x735   : > { %v7882_v36 = vpop.permute.xlu1 %3988 }
 0x736   : > { %v4011_v22 = vrot.slane %v7882_v36, 1 }
 0x737   : > { %v3845_v16 = vpop.permute.xlu0 %3844 }
 0x738   : > { %v3876_v23 = vadd.f32 %v3845_v16, %v7728_v13 }
 0x739   : > { %v3847_v55 = vpop.permute.xlu1 %3846 }
 0x73a   : > { %v3908_v29 = vadd.f32 %v3900_v35, %v3876_v23  ;;  %v3877_v48 = vadd.f32 %v3847_v55, %v7747_v3  ;;  %v3902_v23 = vsel %vm7306_vm14, %v7787_v51, 0.0 }
 0x73b   : > { %v3925_v0 = vpop.permute.xlu0 %3924 }
 0x73c   : > { %v3909_v59 = vadd.f32 %v3901_v6, %v3877_v48  ;;  %v3947_v24 = vrot.slane %v3925_v0, 7  ;;  %v7914_v48 = vpop.f32.mrf.mxu1 }
 0x73d   : > { %v3993_v13 = vpop.permute.xlu1 %3992 }
 0x73e   : > { %v3960_v39 = vsel %vm8568_vm12, %v3946_v42, %v3947_v24  ;;  %v4013_v6 = vrot.slane %v3993_v13, 1 }
 0x73f   : > { %v3963_v3 = vsel %vm6620_vm4, %v3960_v39, 0.0  ;;  %v3991_v47 = vpop.permute.xlu0 %3990 }
 0x740   : > { %v4012_v41 = vrot.slane %v3991_v47, 1  ;;  %v3971_v16 = vadd.f32 %v3963_v3, %v3907_v40 }
 0x741   : > { %v3849_v62 = vpop.permute.xlu1 %3848 }
 0x742   : > { %v4023_v56 = vsel %vm8575_vm15, %v4011_v22, %v4012_v41  ;;  %v3878_v31 = vadd.f32 %v3849_v62, %v7767_v33  ;;  %v4059_v33 = vsel %vm6620_vm4, %v7756_v32, 0.0  ;;  %v4022_v40 = vsel %vm8572_vm8, %v4012_v41, %v4013_v6  ;;  %vm8576_vm15 = vmmov %vm8568_vm12 }
 0x743   : > { %v3927_v35 = vpop.permute.xlu0 %3926  ;;  %v4027_v55 = vsel %vm7188_vm11, %v4023_v56, 0.0  ;;  %vm8577_vm4 = vmmov %vm8572_vm8 }
 0x744   : > { %v3910_v0 = vadd.f32 %v3902_v23, %v3878_v31  ;;  %v3948_v39 = vrot.slane %v3927_v35, 7  ;;  %v4035_v47 = vadd.f32 %v4027_v55, %v3971_v16  ;;  %v7927_v31 = vpop.f32.mrf.mxu1  ;;  %vm8580_vm8 = vmmov %vm8577_vm4 }
 0x745   : > { %v3929_v10 = vpop.permute.xlu1 %3928 }
 0x746   : > { %v3959_v51 = vsel %vm8568_vm12, %v3947_v24, %v3948_v39  ;;  %v3949_v3 = vrot.slane %v3929_v10, 7  ;;  %v7923_v62 = vadd.f32 %v4059_v33, %v4035_v47  ;;  %v4028_v10 = vsel %vm8573_vm13, %v4022_v40, 0.0 }
 0x747   : > { %v3964_v13 = vsel %vm6550_vm1, %v3959_v51, 0.0  ;;  %v3995_v56 = vpop.permute.xlu0 %3994  ;;  %v7942_v51 = vpop.f32.mrf.mxu1 }
 0x748   : > { %v3958_v16 = vsel %vm8576_vm15, %v3948_v39, %v3949_v3  ;;  %v4014_v34 = vrot.slane %v3995_v56, 1  ;;  %v3972_v32 = vadd.f32 %v3964_v13, %v3908_v29  ;;  %v4060_v39 = vsel %vm6550_vm1, %v7775_v38, 0.0  ;;  %vm8578_vm1 = vmmov %vm8568_vm12 }
 0x749   : > { %v3965_v41 = vsel %vm6572_vm2, %v3958_v16, 0.0  ;;  %v3931_v23 = vpop.permute.xlu1 %3930  ;;  %vm8579_vm2 = vmmov %vm8578_vm1 }
 0x74a   : > { %v4021_v24 = vsel %vm8577_vm4, %v4013_v6, %v4014_v34  ;;  %v3950_v35 = vrot.slane %v3931_v23, 7  ;;  %v4036_v55 = vadd.f32 %v4028_v10, %v3972_v32  ;;  %v3973_v47 = vadd.f32 %v3965_v41, %v3909_v59  ;;  %v7961_v10 = vpop.f32.mrf.mxu1  ;;  %vm8583_vm15 = vmmov %vm8578_vm1 }
 0x74b   : > { %v3851_v33 = vpop.permute.xlu0 %3850  ;;  %v4029_v29 = vsel %vm8574_vm10, %v4021_v24, 0.0  ;;  %v3903_v6 = vsel %vm7341_vm9, %v7803_v45, 0.0 }
 0x74c   : > { %v3879_v13 = vadd.f32 %v3851_v33, %v7783_v27  ;;  %v7945_v56 = vadd.f32 %v4060_v39, %v4036_v55  ;;  %v4037_v40 = vadd.f32 %v4029_v29, %v3973_v47  ;;  %v3957_v38 = vsel %vm8578_vm1, %v3949_v3, %v3950_v35  ;;  %v7977_v39 = vpop.f32.mrf.mxu1 }
 0x74d   : > { %v3853_v59 = vpop.permute.xlu1 %3852  ;;  %v3904_v27 = vsel %vm7374_vm0, %v7822_v21, 0.0  ;;  %v3966_v58 = vsel %vm6608_vm3, %v3957_v38, 0.0  ;;  %v4062_v21 = vsel %vm6608_vm3, %v7807_v54, 0.0  ;;  %v4049_v33 = vrot.slane %v7859_v7, 7  ;;  %vm8581_vm3 = vmmov %vm8577_vm4 }
 0x74e   : > { %v3911_v16 = vadd.f32 %v3903_v6, %v3879_v13  ;;  %v3880_v32 = vadd.f32 %v3853_v59, %v7799_v53  ;;  %v7956_v41 = vadd.f32 %v4061_v44, %v4037_v40  ;;  %v4124_v40 = vrot.slane %v7892_v50, 1  ;;  %vm8582_vm12 = vmmov %vm8581_vm3 }
 0x74f   : > { %v3933_v23 = vpop.permute.xlu0 %3932  ;;  %v4125_v6 = vrot.slane %v7914_v48, 1  ;;  %v4010_v59 = vrot.slane %v7880_v61, 1  ;;  %v4126_v50 = vrot.slane %v7961_v10, 1  ;;  %vm8584_vm4 = vnez %v8448_v14 }
 0x750   : > { %v7963_v45 = vadd.f32 %v3904_v27, %v3880_v32  ;;  %v3951_v24 = vrot.slane %v3933_v23, 7  ;;  %v3790_v23 = vpop.f32.mrf.mxu1 }
 0x751   : > { %v3997_v2 = vpop.permute.xlu1 %3996  ;;  %v4024_v48 = vsel %vm8582_vm12, %v4010_v59, %v4011_v22  ;;  %v4063_v22 = vsel %vm6628_vm5, %v7828_v12, 0.0 }
 0x752   : > { %v3956_v3 = vsel %vm8579_vm2, %v3950_v35, %v3951_v24  ;;  %v4015_v53 = vrot.slane %v3997_v2, 1  ;;  %v3974_v35 = vadd.f32 %v3966_v58, %v3910_v0  ;;  %v4123_v0 = vrot.slane %v7927_v31, 1  ;;  %vm8586_vm2 = vmmov %vm8578_vm1 }
 0x753   : > { %v3967_v55 = vsel %vm6628_vm5, %v3956_v3, 0.0  ;;  %v7971_v47 = vpop.permute.xlu0 %3998  ;;  %v8585_v3 = vrot.slane %v7809_v63, 7  ;;  %v4058_v63 = vsel %vm8584_vm4, %v7737_v9, 0.0  ;;  %vm8589_vm5 = vnez %v8496_v19  ;;  %v8043_v9 = vld [vmem:[%s8326_s14 + $0x1] ss:$0 sm:$0xff] }
 0x754   : > { %v4020_v29 = vsel %vm8580_vm8, %v4014_v34, %v4015_v53  ;;  %v4016_v13 = vrot.slane %v7971_v47, 1  ;;  %v3975_v38 = vadd.f32 %v3967_v55, %v3911_v16  ;;  %vm8587_vm8 = vmmov %vm8581_vm3 }
 0x755   : > { %v7985_v44 = vpop.permute.xlu1 %3936  ;;  %v4030_v17 = vsel %vm7306_vm14, %v4020_v29, 0.0  ;;  %v4050_v18 = vsel %vm8578_vm1, %v8585_v3, %v4049_v33  ;;  %v4134_v55 = vsel %vm8587_vm8, %v4124_v40, %v4125_v6  ;;  %vm8590_vm12 = vmmov %vm8587_vm8 }
 0x756   : > { %v4019_v54 = vsel %vm8581_vm3, %v4015_v53, %v4016_v13  ;;  %v3953_v7 = vrot.slane %v7985_v44, 7  ;;  %v4038_v34 = vadd.f32 %v4030_v17, %v3974_v35  ;;  %vm8588_vm3 = vnez %v8486_v30 }
 0x757   : > { %v3935_v32 = vpop.permute.xlu0 %3934  ;;  %v4031_v27 = vsel %vm7341_vm9, %v4019_v54, 0.0  ;;  %v4026_v46 = vsel %vm8588_vm3, %v4024_v48, 0.0  ;;  %v4129_v44 = vrot.slane %v7977_v39, 1 }
 0x758   : > { %v3961_v16 = vsel %vm8583_vm15, %v3953_v7, %v3946_v42  ;;  %v3952_v31 = vrot.slane %v3935_v32, 7  ;;  %v8006_v58 = vadd.f32 %v4062_v21, %v4038_v34  ;;  %v4039_v10 = vadd.f32 %v4031_v27, %v3975_v38  ;;  %vm8591_vm15 = vmmov %vm8587_vm8  ;;  %v8054_v38 = vld [vmem:[%s8327_s15 + $0x1] ss:$0 sm:$0xff] }
 0x759   : > { %v3962_v36 = vsel %vm8584_vm4, %v3961_v16, 0.0  ;;  %v4085_v2 = vpop.permute.xlu1 %4084  ;;  %v4127_v21 = vrot.slane %v3790_v23, 1  ;;  %v4133_v35 = vsel %vm8591_vm15, %v4125_v6, %v4126_v50  ;;  %v4128_v34 = vrot.slane %v7942_v51, 1 }
 0x75a   : > { %v3955_v42 = vsel %vm8586_vm2, %v3951_v24, %v3952_v31  ;;  %v3970_v53 = vadd.f32 %v3962_v36, %v7707_v15  ;;  %v8022_v47 = vadd.f32 %v4063_v22, %v4039_v10  ;;  %v3905_v24 = vsel %vm8589_vm5, %v7841_v1, 0.0 }
 0x75b   : > { %v4087_v12 = vpop.permute.xlu0 %4086  ;;  %v4135_v15 = vsel %vm8590_vm12, %v4123_v0, %v4124_v40  ;;  %v3968_v14 = vsel %vm6641_vm6, %v3955_v42, 0.0  ;;  %v4139_v1 = vsel %vm7188_vm11, %v4134_v55, 0.0  ;;  %v4122_v40 = vrot.slane %v7901_v49, 1 }
 0x75c   : > { %v4034_v33 = vadd.f32 %v4026_v46, %v3970_v53  ;;  %v4115_v29 = vadd.f32 %v4087_v12, %v7923_v62  ;;  %v4064_v62 = vsel %vm6641_vm6, %v4050_v18, 0.0  ;;  %v4138_v11 = vsel %vm8588_vm3, %v4135_v15, 0.0  ;;  %vm8592_vm6 = vmmov %vm8587_vm8 }
 0x75d   : > { %v4001_v17 = vpop.permute.xlu1 %4000  ;;  %v4140_v57 = vsel %vm8573_vm13, %v4133_v35, 0.0  ;;  %v4132_v49 = vsel %vm8592_vm6, %v4126_v50, %v4127_v21  ;;  %vm8593_vm11 = vmmov %vm8592_vm6  ;;  %v3976_v27 = vadd.f32 %v3968_v14, %v7963_v45 }
 0x75e   : > { %v4066_v6 = vadd.f32 %v4058_v63, %v4034_v33  ;;  %v4147_v54 = vadd.f32 %v4139_v1, %v4115_v29  ;;  %v4017_v39 = vrot.slane %v4001_v17, 1  ;;  %vm8594_vm4 = vmmov %vm8592_vm6  ;;  %v4141_v22 = vsel %vm8574_vm10, %v4132_v49, 0.0 }
 0x75f   : > { %v4089_v0 = vpop.permute.xlu0 %4088  ;;  %v4130_v30 = vsel %vm8594_vm4, %v4128_v34, %v4129_v44  ;;  %vm8595_vm13 = vmmov %vm8594_vm4 }
 0x760   : > { %v4114_v48 = vadd.f32 %v4085_v2, %v4066_v6  ;;  %v4163_v32 = vmul.f32 %v8043_v9, %v4147_v54  ;;  %v4018_v51 = vsel %vm8593_vm11, %v4016_v13, %v4017_v39  ;;  %v4116_v23 = vadd.f32 %v4089_v0, %v7945_v56  ;;  %vm8596_vm2 = vmmov %vm8594_vm4 }
 0x761   : > { %v4091_v16 = vpop.permute.xlu1 %4090  ;;  %v4032_v8 = vsel %vm7374_vm0, %v4018_v51, 0.0  ;;  %v4137_v50 = vsel %vm8595_vm13, %v4129_v44, %v4122_v40  ;;  %v3954_v56 = vsel %vm8578_vm1, %v3952_v31, %v3953_v7  ;;  %v4131_v18 = vsel %vm8596_vm2, %v4127_v21, %v4128_v34  ;;  %vm8597_vm8 = vmmov %vm8596_vm2 }
 0x762   : > { %v4146_v10 = vadd.f32 %v4138_v11, %v4114_v48  ;;  %v8074_v36 = vadd.f32 %v8054_v38, %v4163_v32  ;;  %v4117_v13 = vadd.f32 %v4091_v16, %v7956_v41  ;;  %v4040_v2 = vadd.f32 %v4032_v8, %v3976_v27 }
 0x763   : > { %v4148_v45 = vadd.f32 %v4140_v57, %v4116_v23  ;;  %v3855_v3 = vpop.permute.xlu0 %3854  ;;  %v4025_v41 = vsel %vm8597_vm8, %v4017_v39, %v4010_v59  ;;  %v4143_v31 = vsel %vm7341_vm9, %v4130_v30, 0.0  ;;  %v3969_v26 = vsel %vm6651_vm7, %v3954_v56, 0.0 }
 0x764   : > { %v4162_v42 = vmul.f32 %v8043_v9, %v4146_v10  ;;  %v4187_v53 = vmin.f32 %v8074_v36, 20.0  ;;  %v4149_v55 = vadd.f32 %v4141_v22, %v4117_v13  ;;  %v3881_v46 = vadd.f32 %v3855_v3, %v7817_v37 }
 0x765   : > { %v4164_v7 = vmul.f32 %v8043_v9, %v4148_v45  ;;  %v4093_v4 = vpop.permute.xlu1 %4092  ;;  %v4072_v63 = vadd.f32 %v4064_v62, %v4040_v2  ;;  %v4142_v60 = vsel %vm7306_vm14, %v4131_v18, 0.0  ;;  %v4144_v34 = vsel %vm7374_vm0, %v4137_v50, 0.0 }
 0x766   : > { %v8094_v21 = vadd.f32 %v8054_v38, %v4162_v42  ;;  %v4196_v12 = vmul.f32 1.442695, %v4187_v53  ;;  %v4165_v33 = vmul.f32 %v8043_v9, %v4149_v55  ;;  %v3913_v15 = vadd.f32 %v3905_v24, %v3881_v46 }
 0x767   : > { %v8098_v37 = vadd.f32 %v8054_v38, %v4164_v7  ;;  %v4118_v61 = vadd.f32 %v4093_v4, %v8006_v58  ;;  %v4095_v59 = vpop.permute.xlu0 %4094  ;;  %v4033_v24 = vsel %vm8589_vm5, %v4025_v41, 0.0  ;;  %vm8599_vm0 = vcmask 523264  }
 0x768   : > { %v4186_v29 = vmin.f32 %v8094_v21, 20.0  ;;  %5932 = vpow2.f32 %v4196_v12  ;;  %v8107_v35 = vadd.f32 %v8054_v38, %v4165_v33  ;;  %v3977_v44 = vadd.f32 %v3969_v26, %v3913_v15  ;;  %vm8600_vm7 = vmmov %vm8599_vm0 }
 0x769   : > { %v4188_v14 = vmin.f32 %v8098_v37, 20.0  ;;  %v4150_v25 = vadd.f32 %v4142_v60, %v4118_v61  ;;  %v4119_v1 = vadd.f32 %v4095_v59, %v8022_v47  ;;  %v4097_v58 = vpop.permute.xlu1 %4096  ;;  %vm8605_vm9 = vmmov %vm8599_vm0 }
 0x76a   : > { %v4194_v17 = vmul.f32 1.442695, %v4186_v29  ;;  %v4189_v20 = vmin.f32 %v8107_v35, 20.0  ;;  %v4041_v62 = vadd.f32 %v4033_v24, %v3977_v44  ;;  %v4120_v40 = vadd.f32 %v4097_v58, %v4072_v63  ;;  %vm8606_vm14 = vmmov %vm8599_vm0 }
 0x76b   : > { %v4198_v6 = vmul.f32 1.442695, %v4188_v14  ;;  %v4166_v54 = vmul.f32 %v8043_v9, %v4150_v25  ;;  %v4151_v39 = vadd.f32 %v4143_v31, %v4119_v1  ;;  %vm8607_vm10 = vmmov %vm8599_vm0 }
 0x76c   : > { %5934 = vpow2.f32 %v4194_v17  ;;  %v4200_v19 = vmul.f32 1.442695, %v4189_v20  ;;  %v4169_v11 = vmul.f32 %v8043_v9, %v4041_v62  ;;  %v4152_v0 = vadd.f32 %v4144_v34, %v4120_v40  ;;  %vm8608_vm3 = vmmov %vm8599_vm0 }
 0x76d   : > { %5936 = vpow2.f32 %v4198_v6  ;;  %v8119_v47 = vadd.f32 %v8054_v38, %v4166_v54  ;;  %v4167_v57 = vmul.f32 %v8043_v9, %v4151_v39  ;;  %vm8609_vm5 = vmmov %vm8599_vm0 }
 0x76e   : > { %5938 = vpow2.f32 %v4200_v19  ;;  %v8123_v49 = vadd.f32 %v8054_v38, %v4169_v11  ;;  %v4168_v48 = vmul.f32 %v8043_v9, %v4152_v0  ;;  %vm8610_vm12 = vmmov %vm8599_vm0 }
 0x76f   : > { %v4190_v52 = vmin.f32 %v8119_v47, 20.0  ;;  %v8128_v32 = vadd.f32 %v8054_v38, %v4167_v57 }
 0x770   : > { %v4193_v51 = vmin.f32 %v8123_v49, 20.0  ;;  %v8132_v27 = vadd.f32 %v8054_v38, %v4168_v48 }
 0x771   : > { %v4202_v23 = vmul.f32 1.442695, %v4190_v52  ;;  %v4191_v16 = vmin.f32 %v8128_v32, 20.0 }
 0x772   : > { %v4208_v30 = vmul.f32 1.442695, %v4193_v51  ;;  %v4192_v8 = vmin.f32 %v8132_v27, 20.0 }
 0x773   : > { %5940 = vpow2.f32 %v4202_v23  ;;  %v4204_v50 = vmul.f32 1.442695, %v4191_v16 }
 0x774   : > { %5942 = vpow2.f32 %v4208_v30  ;;  %v4206_v9 = vmul.f32 1.442695, %v4192_v8 }
 0x775   : > { %v5933_v10 = vpop.eup %5932  ;;  %5944 = vpow2.f32 %v4204_v50 }
 0x776   : > { %v4211_v13 = vadd.f32 1.0, %v5933_v10  ;;  %5946 = vpow2.f32 %v4206_v9  ;;  %v8598_v9 = vld [vmem:[#allocation26_spill] sm:$0xff] }
 0x778   : > { %v4219_v2 = vmul.f32 %v4211_v13, %v4211_v13 }
 0x779   : > { %v5935_v56 = vpop.eup %5934 }
 0x77a   : > { %v5937_v45 = vpop.eup %5936  ;;  %v4210_v22 = vadd.f32 1.0, %v5935_v56  ;;  %v4243_v38 = vadd.f32 1.0, %v4219_v2  ;;  %v5191_v14 = vadd.f32 -1.0, %v4219_v2 }
 0x77b   : > { %v5939_v3 = vpop.eup %5938  ;;  %v4212_v18 = vadd.f32 1.0, %v5937_v45 }
 0x77c   : > { %v4218_v42 = vmul.f32 %v4210_v22, %v4210_v22  ;;  %5948 = vrcp.f32 %v4243_v38  ;;  %v4213_v53 = vadd.f32 1.0, %v5939_v3  ;;  %v4235_v6 = vmul.f32 %v5191_v14, %v8074_v36 }
 0x77d   : > { %v4220_v55 = vmul.f32 %v4212_v18, %v4212_v18 }
 0x77e   : > { %v4242_v46 = vadd.f32 1.0, %v4218_v42  ;;  %v4221_v41 = vmul.f32 %v4213_v53, %v4213_v53  ;;  %v5190_v17 = vadd.f32 -1.0, %v4218_v42 }
 0x77f   : > { %v4244_v7 = vadd.f32 1.0, %v4220_v55  ;;  %v5192_v40 = vadd.f32 -1.0, %v4220_v55 }
 0x780   : > { %v5941_v4 = vpop.eup %5940  ;;  %5950 = vrcp.f32 %v4242_v46  ;;  %v4245_v31 = vadd.f32 1.0, %v4221_v41  ;;  %v5193_v54 = vadd.f32 -1.0, %v4221_v41  ;;  %v4234_v39 = vmul.f32 %v5190_v17, %v8094_v21  ;;  %v8602_v46 = vld [vmem:[#allocation17_spill] sm:$0xff] }
 0x781   : > { %v5943_v63 = vpop.eup %5942  ;;  %5952 = vrcp.f32 %v4244_v7  ;;  %v4214_v12 = vadd.f32 1.0, %v5941_v4  ;;  %v4236_v11 = vmul.f32 %v5192_v40, %v8098_v37  ;;  %v8604_v4 = vld [vmem:[#allocation22_spill] sm:$0xff] }
 0x782   : > { %v5945_v33 = vpop.eup %5944  ;;  %5954 = vrcp.f32 %v4245_v31  ;;  %v4217_v15 = vadd.f32 1.0, %v5943_v63  ;;  %v4237_v48 = vmul.f32 %v5193_v54, %v8107_v35 }
 0x783   : > { %v5947_v26 = vpop.eup %5946  ;;  %v4222_v61 = vmul.f32 %v4214_v12, %v4214_v12  ;;  %v4215_v60 = vadd.f32 1.0, %v5945_v33  ;;  %v5738_v33 = vld [vmem:[%s8331_s19 + $0x8] sm:$0xff]  }
 0x784   : > { %v4225_v59 = vmul.f32 %v4217_v15, %v4217_v15  ;;  %v4216_v29 = vadd.f32 1.0, %v5947_v26  ;;  %v5739_v15 = vld [vmem:[%s8331_s19] sm:$0xff]  }
 0x785   : > { %v4246_v44 = vadd.f32 1.0, %v4222_v61  ;;  %v4223_v24 = vmul.f32 %v4215_v60, %v4215_v60  ;;  %v5194_v23 = vadd.f32 -1.0, %v4222_v61  ;;  %v5206_v26 = vld [vmem:[%s8329_s17] ss:$0 sm:$0xff] }
 0x786   : > { %v4249_v25 = vadd.f32 1.0, %v4225_v59  ;;  %v4224_v1 = vmul.f32 %v4216_v29, %v4216_v29  ;;  %v5197_v30 = vadd.f32 -1.0, %v4225_v59  ;;  %v5207_v61 = vld [vmem:[%s8330_s18] ss:$0 sm:$0xff] }
 0x787   : > { %5956 = vrcp.f32 %v4246_v44  ;;  %v4247_v58 = vadd.f32 1.0, %v4223_v24  ;;  %v5195_v50 = vadd.f32 -1.0, %v4223_v24  ;;  %v4238_v2 = vmul.f32 %v5194_v23, %v8119_v47  ;;  %v8601_v47 = vld [vmem:[#allocation18_spill] sm:$0xff] }
 0x788   : > { %5958 = vrcp.f32 %v4249_v25  ;;  %v4248_v20 = vadd.f32 1.0, %v4224_v1  ;;  %v5196_v13 = vadd.f32 -1.0, %v4224_v1  ;;  %v4241_v45 = vmul.f32 %v5197_v30, %v8123_v49  ;;  %v8603_v49 = vld [vmem:[#allocation23_spill] sm:$0xff] }
 0x789   : > { %v5949_v62 = vpop.eup %5948  ;;  %5960 = vrcp.f32 %v4247_v58 }
 0x78a   : > { %5962 = vrcp.f32 %v4248_v20  ;;  %v4259_v34 = vmul.f32 %v5949_v62, %v4235_v6  ;;  %v4240_v3 = vmul.f32 %v5196_v13, %v8132_v27  ;;  %v5737_v27 = vld [vmem:[%s8331_s19 + $0x10] sm:$0xff]  }
 0x78c   : > { %v4267_v36 = vadd.f32 %v4259_v34, %v7505_v28 }
 0x78d   : > { %v5951_v19 = vpop.eup %5950 }
 0x78e   : > { %v5953_v0 = vpop.eup %5952  ;;  %v4258_v57 = vmul.f32 %v5951_v19, %v4234_v39 }
 0x78f   : > { %v5955_v52 = vpop.eup %5954  ;;  %v4260_v51 = vmul.f32 %v5953_v0, %v4236_v11 }
 0x790   : > { %v4261_v16 = vmul.f32 %v5955_v52, %v4237_v48  ;;  %v4266_v8 = vadd.f32 %v4258_v57, %v7502_v43  ;;  %v4239_v43 = vmul.f32 %v5195_v50, %v8128_v32  ;;  %v5736_v32 = vld [vmem:[%s8331_s19 + $0x18] sm:$0xff]  }
 0x791   : > { %v4268_v21 = vadd.f32 %v4260_v51, %v7508_v5  ;;  %5473 = vmatprep.subr.bf16.mxu0 %v5736_v32  ;;  %5489 = vmatprep.subr.bf16.mxu1 %v5736_v32 }
 0x792   : > { %v4269_v10 = vadd.f32 %v4261_v16, %v8598_v9  ;;  %v4274_v37 = vpack.c.bf16 %v4267_v36, %v4266_v8  ;;  %5493 = vmatpush3.bf16.msra.mxu1 %v5736_v32 }
 0x793   : > { %5490 = vmatprep.subr.bf16.mxu1 %v5737_v27 }
 0x794   : > { %v5957_v56 = vpop.eup %5956  ;;  %v4275_v35 = vpack.c.bf16 %v4269_v10, %v4268_v21  ;;  %5449 = vmatprep.mubr.msk.bf16.mxu0 %vm8599_vm0, %v4274_v37 }
 0x795   : > { %v5959_v22 = vpop.eup %5958  ;;  %v4262_v38 = vmul.f32 %v5957_v56, %v4238_v2 }
 0x796   : > { %v5961_v28 = vpop.eup %5960  ;;  %5450 = vmatmul.mubr.msk.bf16.vlgmr.msra.gmra.mxu0 %vm8600_vm7, %v4275_v35  ;;  %v4265_v5 = vmul.f32 %v5959_v22, %v4241_v45  ;;  %5494 = vmatpush3.bf16.msra.mxu1 %v5737_v27 }
 0x797   : > { %v5963_v18 = vpop.eup %5962  ;;  %v4263_v42 = vmul.f32 %v5961_v28, %v4239_v43  ;;  %v4270_v55 = vadd.f32 %v4262_v38, %v8601_v47  ;;  %5474 = vmatpush3.bf16.msra.mxu0 %v5736_v32  ;;  %5491 = vmatprep.subr.bf16.mxu1 %v5738_v33 }
 0x798   : > { %v4264_v53 = vmul.f32 %v5963_v18, %v4240_v3  ;;  %v4273_v31 = vadd.f32 %v4265_v5, %v8604_v4  ;;  %5475 = vmatprep.subr.bf16.mxu0 %v5737_v27 }
 0x799   : > { %v4271_v41 = vadd.f32 %v4263_v42, %v8602_v46 }
 0x79a   : > { %v4272_v7 = vadd.f32 %v4264_v53, %v8603_v49  ;;  %5495 = vmatpush3.bf16.msra.mxu1 %v5738_v33 }
 0x79b   : > { %v4276_v63 = vpack.c.bf16 %v4271_v41, %v4270_v55  ;;  %5476 = vmatpush3.bf16.msra.mxu0 %v5737_v27  ;;  %5492 = vmatprep.subr.bf16.mxu1 %v5739_v15 }
 0x79c   : > { %v4277_v12 = vpack.c.bf16 %v4273_v31, %v4272_v7  ;;  %5477 = vmatprep.subr.bf16.mxu0 %v5738_v33 }
 0x79d   : > { %5453 = vmatprep.mubr.msk.bf16.mxu0 %vm8605_vm9, %v4276_v63 }
 0x79e   : > { %5454 = vmatmul.mubr.msk.bf16.gmra.mxu0 %vm8606_vm14, %v4277_v12  ;;  %5496 = vmatpush3.bf16.msra.mxu1 %v5739_v15 }
 0x79f   : > { %5478 = vmatpush3.bf16.msra.mxu0 %v5738_v33 }
 0x7a0   : > { %5479 = vmatprep.subr.bf16.mxu0 %v5739_v15 }
 0x7a3   : > { %5480 = vmatpush3.bf16.msra.mxu0 %v5739_v15 }
 0x856   : > { %v5451_v60 = vpop.f32.mrf.mxu0 }
 0x857   : > { %v4397_v59 = vmul.f32 %v5451_v60, %v5206_v26 }
 0x858   : > { %v4358_v29 = vpop.f32.mrf.mxu0 }
 0x859   : > { %v8174_v44 = vadd.f32 %v5207_v61, %v4397_v59  ;;  %v4395_v24 = vmul.f32 %v5206_v26, %v4358_v29 }
 0x85a   : > { %v5452_v14 = vpop.f32.mrf.mxu0 }
 0x85b   : > { %v4419_v25 = vmin.f32 %v8174_v44, 20.0  ;;  %v8177_v1 = vadd.f32 %v5207_v61, %v4395_v24  ;;  %v4398_v58 = vmul.f32 %v5452_v14, %v5206_v26 }
 0x85c   : > { %v4361_v17 = vpop.f32.mrf.mxu0 }
 0x85d   : > { %v4429_v20 = vmul.f32 1.442695, %v4419_v25  ;;  %v4417_v62 = vmin.f32 %v8177_v1, 20.0  ;;  %v8180_v40 = vadd.f32 %v5207_v61, %v4398_v58  ;;  %v4396_v6 = vmul.f32 %v5206_v26, %v4361_v17 }
 0x85e   : > { %v5455_v54 = vpop.f32.mrf.mxu0 }
 0x85f   : > { %5964 = vpow2.f32 %v4429_v20  ;;  %v4425_v39 = vmul.f32 1.442695, %v4417_v62  ;;  %v4420_v34 = vmin.f32 %v8180_v40, 20.0  ;;  %v8183_v19 = vadd.f32 %v5207_v61, %v4396_v6 }
 0x860   : > { %v4401_v11 = vmul.f32 %v5455_v54, %v5206_v26  ;;  %v4374_v0 = vpop.f32.mrf.mxu0 }
 0x861   : > { %5966 = vpow2.f32 %v4425_v39  ;;  %v4431_v57 = vmul.f32 1.442695, %v4420_v34  ;;  %v4418_v48 = vmin.f32 %v8183_v19, 20.0  ;;  %v4399_v52 = vmul.f32 %v5206_v26, %v4374_v0 }
 0x862   : > { %v8186_v51 = vadd.f32 %v5207_v61, %v4401_v11  ;;  %v5456_v23 = vpop.f32.mrf.mxu0 }
 0x863   : > { %5968 = vpow2.f32 %v4431_v57  ;;  %v4427_v16 = vmul.f32 1.442695, %v4418_v48  ;;  %v8188_v30 = vadd.f32 %v5207_v61, %v4399_v52  ;;  %v4402_v8 = vmul.f32 %v5456_v23, %v5206_v26 }
 0x864   : > { %v4423_v36 = vmin.f32 %v8186_v51, 20.0  ;;  %v4377_v50 = vpop.f32.mrf.mxu0 }
 0x865   : > { %5970 = vpow2.f32 %v4427_v16  ;;  %v4421_v21 = vmin.f32 %v8188_v30, 20.0  ;;  %v8192_v9 = vadd.f32 %v5207_v61, %v4402_v8  ;;  %v4400_v10 = vmul.f32 %v5206_v26, %v4377_v50 }
 0x866   : > { %v4437_v13 = vmul.f32 1.442695, %v4423_v36 }
 0x867   : > { %v4433_v37 = vmul.f32 1.442695, %v4421_v21  ;;  %v4424_v2 = vmin.f32 %v8192_v9, 20.0  ;;  %v8195_v56 = vadd.f32 %v5207_v61, %v4400_v10 }
 0x868   : > { %5972 = vpow2.f32 %v4437_v13 }
 0x869   : > { %5974 = vpow2.f32 %v4433_v37  ;;  %v4439_v35 = vmul.f32 1.442695, %v4424_v2  ;;  %v4422_v45 = vmin.f32 %v8195_v56, 20.0 }
 0x86b   : > { %5976 = vpow2.f32 %v4439_v35  ;;  %v4435_v22 = vmul.f32 1.442695, %v4422_v45 }
 0x86c   : > { %v5965_v38 = vpop.eup %5964 }
 0x86d   : > { %v4443_v43 = vadd.f32 1.0, %v5965_v38  ;;  %5978 = vpow2.f32 %v4435_v22 }
 0x86e   : > { %v5967_v28 = vpop.eup %5966 }
 0x86f   : > { %v4441_v3 = vadd.f32 1.0, %v5967_v28  ;;  %v4451_v18 = vmul.f32 %v4443_v43, %v4443_v43 }
 0x870   : > { %v5969_v5 = vpop.eup %5968 }
 0x871   : > { %v4449_v42 = vmul.f32 %v4441_v3, %v4441_v3  ;;  %v4444_v53 = vadd.f32 1.0, %v5969_v5  ;;  %v4475_v7 = vadd.f32 1.0, %v4451_v18  ;;  %v5210_v54 = vadd.f32 -1.0, %v4451_v18 }
 0x872   : > { %v5971_v47 = vpop.eup %5970 }
 0x873   : > { %v4473_v55 = vadd.f32 1.0, %v4449_v42  ;;  %v4452_v46 = vmul.f32 %v4444_v53, %v4444_v53  ;;  %v4442_v41 = vadd.f32 1.0, %v5971_v47  ;;  %v5208_v62 = vadd.f32 -1.0, %v4449_v42 }
 0x874   : > { %v4467_v23 = vmul.f32 %v5210_v54, %v8174_v44 }
 0x875   : > { %v5973_v49 = vpop.eup %5972  ;;  %v4476_v31 = vadd.f32 1.0, %v4452_v46  ;;  %v4450_v63 = vmul.f32 %v4442_v41, %v4442_v41  ;;  %5980 = vrcp.f32 %v4473_v55  ;;  %v5211_v20 = vadd.f32 -1.0, %v4452_v46 }
 0x876   : > { %v5975_v4 = vpop.eup %5974  ;;  %v4447_v12 = vadd.f32 1.0, %v5973_v49  ;;  %v4465_v57 = vmul.f32 %v5208_v62, %v8177_v1 }
 0x877   : > { %v4445_v32 = vadd.f32 1.0, %v5975_v4  ;;  %5982 = vrcp.f32 %v4476_v31  ;;  %v4474_v33 = vadd.f32 1.0, %v4450_v63  ;;  %v5209_v6 = vadd.f32 -1.0, %v4450_v63  ;;  %v5233_v4 = vld [vmem:[%s8334_s22] ss:$0 sm:$0xff] }
 0x878   : > { %v5977_v27 = vpop.eup %5976  ;;  %5984 = vrcp.f32 %v4475_v7  ;;  %v4455_v15 = vmul.f32 %v4447_v12, %v4447_v12  ;;  %v4468_v11 = vmul.f32 %v5211_v20, %v8180_v40 }
 0x879   : > { %v4453_v26 = vmul.f32 %v4445_v32, %v4445_v32  ;;  %v4448_v61 = vadd.f32 1.0, %v5977_v27  ;;  %5986 = vrcp.f32 %v4474_v33  ;;  %v4466_v48 = vmul.f32 %v5209_v6, %v8183_v19 }
 0x87a   : > { %v5979_v60 = vpop.eup %5978  ;;  %v4479_v14 = vadd.f32 1.0, %v4455_v15  ;;  %v5214_v35 = vadd.f32 -1.0, %v4455_v15 }
 0x87b   : > { %v4477_v59 = vadd.f32 1.0, %v4453_v26  ;;  %v4456_v29 = vmul.f32 %v4448_v61, %v4448_v61  ;;  %v4446_v24 = vadd.f32 1.0, %v5979_v60  ;;  %v5212_v10 = vadd.f32 -1.0, %v4453_v26 }
 0x87c   : > { %v4471_v43 = vmul.f32 %v5214_v35, %v8186_v51  ;;  %v5232_v51 = vld [vmem:[%s8333_s21] ss:$0 sm:$0xff] }
 0x87d   : > { %v4480_v25 = vadd.f32 1.0, %v4456_v29  ;;  %v4454_v58 = vmul.f32 %v4446_v24, %v4446_v24  ;;  %5988 = vrcp.f32 %v4477_v59  ;;  %v5215_v21 = vadd.f32 -1.0, %v4456_v29 }
 0x87e   : > { %v4469_v44 = vmul.f32 %v5212_v10, %v8188_v30 }
 0x87f   : > { %5990 = vrcp.f32 %v4480_v25  ;;  %v4478_v17 = vadd.f32 1.0, %v4454_v58  ;;  %v5213_v13 = vadd.f32 -1.0, %v4454_v58  ;;  %v4472_v1 = vmul.f32 %v5215_v21, %v8192_v9  ;;  %v5467_v9 = vpop.f32.mrf.mxu1 }
 0x880   : > { %5992 = vrcp.f32 %v4479_v14 }
 0x881   : > { %5994 = vrcp.f32 %v4478_v17  ;;  %v4470_v22 = vmul.f32 %v5213_v13, %v8195_v56  ;;  %v4591_v47 = vpop.f32.mrf.mxu1 }
 0x882   : > { %v5981_v39 = vpop.eup %5980 }
 0x883   : > { %v4489_v8 = vmul.f32 %v5981_v39, %v4465_v57  ;;  %v5468_v55 = vpop.f32.mrf.mxu1 }
 0x884   : > { %v5983_v34 = vpop.eup %5982 }
 0x885   : > { %v5985_v0 = vpop.eup %5984  ;;  %v4492_v16 = vmul.f32 %v5983_v34, %v4468_v11  ;;  %v4594_v46 = vpop.f32.mrf.mxu1 }
 0x886   : > { %v5987_v52 = vpop.eup %5986  ;;  %v4491_v50 = vmul.f32 %v5985_v0, %v4467_v23 }
 0x887   : > { %v4490_v36 = vmul.f32 %v5987_v52, %v4466_v48  ;;  %v5471_v30 = vpop.f32.mrf.mxu1 }
 0x888   : > { %v4498_v2 = vpack.c.bf16 %v4492_v16, %v4491_v50 }
 0x889   : > { %v4497_v37 = vpack.c.bf16 %v4490_v36, %v4489_v8  ;;  %v4607_v41 = vpop.f32.mrf.mxu1 }
 0x88a   : > { %v5989_v45 = vpop.eup %5988 }
 0x88b   : > { %5481 = vmatprep.mubr.msk.bf16.mxu0 %vm8607_vm10, %v4497_v37  ;;  %v4493_v3 = vmul.f32 %v5989_v45, %v4469_v44  ;;  %v5472_v7 = vpop.f32.mrf.mxu1 }
 0x88c   : > { %v5991_v40 = vpop.eup %5990  ;;  %5482 = vmatmul.mubr.msk.bf16.vlgmr.msra.gmra.mxu0 %vm8608_vm3, %v4498_v2 }
 0x88d   : > { %v5993_v19 = vpop.eup %5992  ;;  %v4496_v28 = vmul.f32 %v5991_v40, %v4472_v1  ;;  %v4610_v26 = vpop.f32.mrf.mxu1 }
 0x88e   : > { %v5995_v38 = vpop.eup %5994  ;;  %v4495_v18 = vmul.f32 %v5993_v19, %v4471_v43 }
 0x88f   : > { %v4494_v5 = vmul.f32 %v5995_v38, %v4470_v22 }
 0x890   : > { %v4500_v53 = vpack.c.bf16 %v4496_v28, %v4495_v18 }
 0x891   : > { %v4499_v42 = vpack.c.bf16 %v4494_v5, %v4493_v3 }
 0x893   : > { %5485 = vmatprep.mubr.msk.bf16.mxu1 %vm8609_vm5, %v4499_v42 }
 0x894   : > { %5486 = vmatmul.mubr.msk.bf16.vlgmr.msra.gmra.mxu1 %vm8610_vm12, %v4500_v53 }
 0x94c   : > { %v5483_v56 = vpop.f32.mrf.mxu0 }
 0x94d   : > { %v4701_v49 = vadd.f32 %v5483_v56, %v5467_v9 }
 0x94e   : > { %v4692_v31 = vpop.f32.mrf.mxu0 }
 0x94f   : > { %v4732_v63 = vmul.f32 %v5232_v51, %v4701_v49  ;;  %v4693_v12 = vadd.f32 %v4692_v31, %v4591_v47 }
 0x950   : > { %v5484_v32 = vpop.f32.mrf.mxu0 }
 0x951   : > { %v8216_v27 = vadd.f32 %v5233_v4, %v4732_v63  ;;  %v4730_v33 = vmul.f32 %v5232_v51, %v4693_v12  ;;  %v4704_v15 = vadd.f32 %v5484_v32, %v5468_v55 }
 0x952   : > { %v4695_v61 = vpop.f32.mrf.mxu0 }
 0x953   : > { %v4755_v60 = vmin.f32 %v8216_v27, 20.0  ;;  %v8219_v59 = vadd.f32 %v5233_v4, %v4730_v33  ;;  %v4733_v29 = vmul.f32 %v5232_v51, %v4704_v15  ;;  %v4696_v24 = vadd.f32 %v4695_v61, %v4594_v46 }
 0x954   : > { %v5487_v14 = vpop.f32.mrf.mxu1 }
 0x955   : > { %v4765_v25 = vmul.f32 1.442695, %v4755_v60  ;;  %v4753_v58 = vmin.f32 %v8219_v59, 20.0  ;;  %v8222_v17 = vadd.f32 %v5233_v4, %v4733_v29  ;;  %v4731_v20 = vmul.f32 %v5232_v51, %v4696_v24 }
 0x956   : > { %v4717_v62 = vadd.f32 %v5487_v14, %v5471_v30  ;;  %v4708_v6 = vpop.f32.mrf.mxu1 }
 0x957   : > { %5996 = vpow2.f32 %v4765_v25  ;;  %v4761_v54 = vmul.f32 1.442695, %v4753_v58  ;;  %v4756_v39 = vmin.f32 %v8222_v17, 20.0  ;;  %v8225_v34 = vadd.f32 %v5233_v4, %v4731_v20 }
 0x958   : > { %v4736_v11 = vmul.f32 %v5232_v51, %v4717_v62  ;;  %v4709_v0 = vadd.f32 %v4708_v6, %v4607_v41  ;;  %v5488_v57 = vpop.f32.mrf.mxu1 }
 0x959   : > { %5998 = vpow2.f32 %v4761_v54  ;;  %v4767_v48 = vmul.f32 1.442695, %v4756_v39  ;;  %v4754_v52 = vmin.f32 %v8225_v34, 20.0  ;;  %v4720_v23 = vadd.f32 %v5488_v57, %v5472_v7 }
 0x95a   : > { %v8228_v16 = vadd.f32 %v5233_v4, %v4736_v11  ;;  %v4734_v8 = vmul.f32 %v5232_v51, %v4709_v0  ;;  %v4711_v36 = vpop.f32.mrf.mxu1 }
 0x95b   : > { %6000 = vpow2.f32 %v4767_v48  ;;  %v4763_v50 = vmul.f32 1.442695, %v4754_v52  ;;  %v4737_v21 = vmul.f32 %v5232_v51, %v4720_v23  ;;  %v4712_v10 = vadd.f32 %v4711_v36, %v4610_v26 }
 0x95c   : > { %v4759_v13 = vmin.f32 %v8228_v16, 20.0  ;;  %v8231_v37 = vadd.f32 %v5233_v4, %v4734_v8 }
 0x95d   : > { %6002 = vpow2.f32 %v4763_v50  ;;  %v8233_v2 = vadd.f32 %v5233_v4, %v4737_v21  ;;  %v4735_v35 = vmul.f32 %v5232_v51, %v4712_v10 }
 0x95e   : > { %v4773_v45 = vmul.f32 1.442695, %v4759_v13  ;;  %v4757_v40 = vmin.f32 %v8231_v37, 20.0 }
 0x95f   : > { %v4760_v1 = vmin.f32 %v8233_v2, 20.0  ;;  %v8237_v19 = vadd.f32 %v5233_v4, %v4735_v35 }
 0x960   : > { %6004 = vpow2.f32 %v4773_v45  ;;  %v4769_v44 = vmul.f32 1.442695, %v4757_v40 }
 0x961   : > { %v4775_v22 = vmul.f32 1.442695, %v4760_v1  ;;  %v4758_v38 = vmin.f32 %v8237_v19, 20.0 }
 0x962   : > { %6006 = vpow2.f32 %v4769_v44 }
 0x963   : > { %6008 = vpow2.f32 %v4775_v22  ;;  %v4771_v43 = vmul.f32 1.442695, %v4758_v38 }
 0x964   : > { %v5997_v28 = vpop.eup %5996 }
 0x965   : > { %v4779_v3 = vadd.f32 1.0, %v5997_v28  ;;  %6010 = vpow2.f32 %v4771_v43 }
 0x966   : > { %v5999_v5 = vpop.eup %5998 }
 0x967   : > { %v4787_v18 = vmul.f32 %v4779_v3, %v4779_v3  ;;  %v4777_v42 = vadd.f32 1.0, %v5999_v5 }
 0x968   : > { %v6001_v53 = vpop.eup %6000 }
 0x969   : > { %v4811_v9 = vadd.f32 1.0, %v4787_v18  ;;  %v4785_v47 = vmul.f32 %v4777_v42, %v4777_v42  ;;  %v4780_v55 = vadd.f32 1.0, %v6001_v53  ;;  %v5236_v61 = vadd.f32 -1.0, %v4787_v18 }
 0x96a   : > { %v6003_v46 = vpop.eup %6002 }
 0x96b   : > { %6012 = vrcp.f32 %v4811_v9  ;;  %v4809_v30 = vadd.f32 1.0, %v4785_v47  ;;  %v4788_v41 = vmul.f32 %v4780_v55, %v4780_v55  ;;  %v4778_v56 = vadd.f32 1.0, %v6003_v46 }
 0x96c   : > { %v5234_v25 = vadd.f32 -1.0, %v4785_v47  ;;  %v4803_v6 = vmul.f32 %v5236_v61, %v8216_v27 }
 0x96d   : > { %v6005_v51 = vpop.eup %6004  ;;  %6014 = vrcp.f32 %v4809_v30  ;;  %v4812_v49 = vadd.f32 1.0, %v4788_v41  ;;  %v4786_v7 = vmul.f32 %v4778_v56, %v4778_v56  ;;  %v5237_v39 = vadd.f32 -1.0, %v4788_v41 }
 0x96e   : > { %v4783_v4 = vadd.f32 1.0, %v6005_v51  ;;  %v4801_v57 = vmul.f32 %v5234_v25, %v8219_v59 }
 0x96f   : > { %v6007_v31 = vpop.eup %6006  ;;  %6016 = vrcp.f32 %v4812_v49  ;;  %v4810_v12 = vadd.f32 1.0, %v4786_v7  ;;  %v5235_v52 = vadd.f32 -1.0, %v4786_v7  ;;  %v4804_v27 = vmul.f32 %v5237_v39, %v8222_v17 }
 0x970   : > { %v6009_v63 = vpop.eup %6008  ;;  %v4791_v32 = vmul.f32 %v4783_v4, %v4783_v4  ;;  %v4781_v33 = vadd.f32 1.0, %v6007_v31 }
 0x971   : > { %v4784_v15 = vadd.f32 1.0, %v6009_v63  ;;  %6018 = vrcp.f32 %v4810_v12  ;;  %v4802_v59 = vmul.f32 %v5235_v52, %v8225_v34 }
 0x972   : > { %v6011_v26 = vpop.eup %6010  ;;  %v4815_v60 = vadd.f32 1.0, %v4791_v32  ;;  %v4789_v29 = vmul.f32 %v4781_v33, %v4781_v33  ;;  %v5240_v36 = vadd.f32 -1.0, %v4791_v32 }
 0x973   : > { %v4792_v24 = vmul.f32 %v4784_v15, %v4784_v15  ;;  %v4782_v14 = vadd.f32 1.0, %v6011_v26 }
 0x974   : > { %6020 = vrcp.f32 %v4815_v60  ;;  %v4813_v58 = vadd.f32 1.0, %v4789_v29  ;;  %v5238_v10 = vadd.f32 -1.0, %v4789_v29  ;;  %v4807_v45 = vmul.f32 %v5240_v36, %v8228_v16 }
 0x975   : > { %v4816_v20 = vadd.f32 1.0, %v4792_v24  ;;  %v4790_v62 = vmul.f32 %v4782_v14, %v4782_v14  ;;  %v5241_v35 = vadd.f32 -1.0, %v4792_v24 }
 0x976   : > { %6022 = vrcp.f32 %v4813_v58  ;;  %v4805_v44 = vmul.f32 %v5238_v10, %v8231_v37 }
 0x977   : > { %6024 = vrcp.f32 %v4816_v20  ;;  %v4814_v11 = vadd.f32 1.0, %v4790_v62  ;;  %v5239_v17 = vadd.f32 -1.0, %v4790_v62  ;;  %v4808_v34 = vmul.f32 %v5241_v35, %v8233_v2 }
 0x978   : > { %v6013_v54 = vpop.eup %6012 }
 0x979   : > { %v4827_v0 = vmul.f32 %v6013_v54, %v4803_v6  ;;  %6026 = vrcp.f32 %v4814_v11  ;;  %v4806_v28 = vmul.f32 %v5239_v17, %v8237_v19 }
 0x97a   : > { %v6015_v48 = vpop.eup %6014 }
 0x97b   : > { %4835 = vst [vmem:[%s8245_s3 + $0x10] sm:$0xff] %v4827_v0  ;;  %v4825_v23 = vmul.f32 %v6015_v48, %v4801_v57 }
 0x97c   : > { %v6017_v8 = vpop.eup %6016 }
 0x97d   : > { %4833 = vst [vmem:[%s8245_s3] sm:$0xff] %v4825_v23  ;;  %v4828_v50 = vmul.f32 %v6017_v8, %v4804_v27 }
 0x97e   : > { %v6019_v21 = vpop.eup %6018 }
 0x97f   : > { %4836 = vst [vmem:[%s8245_s3 + $0x18] sm:$0xff] %v4828_v50  ;;  %v4826_v13 = vmul.f32 %v6019_v21, %v4802_v59 }
 0x981   : > { %v6021_v40 = vpop.eup %6020  ;;  %4834 = vst [vmem:[%s8245_s3 + $0x8] sm:$0xff] %v4826_v13 }
 0x982   : > { %v4831_v1 = vmul.f32 %v6021_v40, %v4807_v45 }
 0x983   : > { %v6023_v22 = vpop.eup %6022 }
 0x984   : > { %v6025_v38 = vpop.eup %6024  ;;  %4839 = vst [vmem:[%s8245_s3 + $0x30] sm:$0xff] %v4831_v1  ;;  %v4829_v43 = vmul.f32 %v6023_v22, %v4805_v44 }
 0x985   : > { %v4832_v16 = vmul.f32 %v6025_v38, %v4808_v34 }
 0x986   : > { %v6027_v3 = vpop.eup %6026  ;;  %4837 = vst [vmem:[%s8245_s3 + $0x20] sm:$0xff] %v4829_v43 }
 0x987   : > { %4840 = vst [vmem:[%s8245_s3 + $0x38] sm:$0xff] %v4832_v16  ;;  %v4830_v37 = vmul.f32 %v6027_v3, %v4806_v28 }
 0x989   : > { %4838 = vst [vmem:[%s8245_s3 + $0x28] sm:$0xff] %v4830_v37 }
 0x98a   : > { %6043 = shalt.err (!%p6040_p3)
}
 0x98b   : > { %s6044_s4 = scalar_lea.hbm %s8264_s26, 1024  ;;  %s6048_s28 = scalar_lea.hbm %s8611_s2, 2048 }
 0x98c   : > { %p6045_p4 = scmp.ne.s32.totalorder %s8264_s26, %s6044_s4  ;;  %p6049_p9 = scmp.lt.s32.totalorder %s8264_s26, %s8611_s2 }
 0x98d   : > { %p6050_p10 = scmp.lt.s32.totalorder %s6048_s28, %s6044_s4 }
 0x98e   : > { %p6046_p7 = pnand %p6045_p4, %p6255_p5 }
 0x98f   : > { %p6051_p11 = por %p6050_p10, %p6049_p9 }
 0x990   : > { %p6047_p8 = pneg %p6046_p7 }
 0x992   : > { %p6052_p12 = pnand %p6051_p11, %p6047_p8 }
 0x994   : > { %6055 = shalt.err (!%p6052_p12)
}
 0x995   : > { %s6095_s6 = smov 128   ;;  %s6096_s25 = smov 8  }
 0x996   : > { %5497 = dma.vmem_to_hbm [thread:$0]  (%p6255_p5), %s8266_s27, 1024, %s8264_s26, %s8272_s5, %s6095_s6, %s6095_s6, %s6096_s25  }
 0x997 PF: > { %s8612_s1 = sld [smem:[#allocation7_spill]] }
 0x998   : > { %s8613_s3 = sld [smem:[#allocation5_spill]] }
 0x99d   : > { %p5503_p13 = scmp.ge.s32.totalorder %s8612_s1, 2 }
 0x99e   : > { %s4870_s9 = sand.u32 1, %s8613_s3  }
 0x99f   : > { %p5500_p0 = pnand %p5503_p13, %p6259_p6  ;;  %s4871_s8 = scalar_lea.sflag [#allocation3], %s4870_s9 }
 0x9a1   : > { %p5501_p1 = pneg %p5500_p0 }
 0x9a3   : > { %6073 = dma.done.wait (%p5501_p1), %s4871_s8, 1024  }
 0x9a4   : > { %6075 = vsyncadd (%p5501_p1), %s4871_s8, 4294966272  ;;  %s8615_s25 = sld [smem:[#allocation8_spill]]  ;;  %s8618_s4 = smov %s6082_s30 }
 0x9a5   : > { %s8616_s0 = sld [smem:[#allocation6_spill]] }
 0x9a6   : > { %s8617_s24 = sld [smem:[#allocation9_spill]] }
 0x9aa   : > { %p33_p2 = scmp.ge.s32.totalorder %s8615_s25, 4  }
 0x9ab   : > { %s8619_s30 = smov %s8616_s0 }
 0x9ac   :  { %35 = sbr.rel (!%p33_p2) target bundleno = 15 (0xf), region = 153 }
 0x9b1   :  { %4876 = vsyncpa [#allocation3], 1 }
 0x9b2   :  { %4878 = vsyncpa [#allocation3 + $0x1], 1 }

</bundles_post_ra>
